<compile_context>
chip_gen: v6e
topology: v6e:2x2x1
jax: 0.10.0
libtpu: 0.0.40
codegen_flags: <defaults>
</compile_context>

<pallas_src>
import numpy as np

import jax
import jax.numpy as jnp
from jax.experimental import pallas as pl
from jax.experimental.pallas import tpu as pltpu


# ----------------------------------------------------------------------------
# Pallas kernels
# ----------------------------------------------------------------------------
def _enc_stage_kernel(x_ref, w_ref, brow_ref, sl_ref, sr_ref, pv_ref, qh_ref,
                      skip_ref, pool_ref):
    """Fused encoder stage: conv3x3 + bias + ReLU, then
       (a) zero-padded skip output (decoder-ready) and
       (b) 2x2 avg-pooled + zero-padded output (next-conv-ready).

    x_ref:   (1, H+2, (W+2)*Cin)   padded input rows (bf16)
    w_ref:   (3, (W+2)*Cin, W*Cout) banded conv weights (bf16)
    brow_ref:(1, W*Cout)            bias row (f32)
    sl/sr:   pad-selection matrices, pv/qh: pool(+pad) matrices (exact bf16)
    """
    f32 = jnp.float32
    H = sl_ref.shape[1]
    acc = jnp.dot(x_ref[0, 0:H, :], w_ref[0], preferred_element_type=f32)
    for ky in (1, 2):
        acc = acc + jnp.dot(x_ref[0, ky:ky + H, :], w_ref[ky],
                            preferred_element_type=f32)
    y = jnp.maximum(acc + brow_ref[...], 0.0).astype(jnp.bfloat16)

    # decoder-ready zero-padded skip:  SL @ y @ SR
    ysr = jnp.dot(y, sr_ref[...], preferred_element_type=f32).astype(jnp.bfloat16)
    skip_ref[0] = jnp.dot(sl_ref[...], ysr,
                          preferred_element_type=f32).astype(skip_ref.dtype)

    # fused 2x2 average pool (+ next-layer zero padding):  PV @ y @ QH
    yqh = jnp.dot(y, qh_ref[...], preferred_element_type=f32).astype(jnp.bfloat16)
    pool_ref[0] = jnp.dot(pv_ref[...], yqh,
                          preferred_element_type=f32).astype(pool_ref.dtype)


def _conv_relu_kernel(x_ref, w_ref, brow_ref, out_ref):
    """Plain banded conv3x3 + bias + ReLU (mid layer), unpadded output rows."""
    f32 = jnp.float32
    H = out_ref.shape[1]
    acc = jnp.dot(x_ref[0, 0:H, :], w_ref[0], preferred_element_type=f32)
    for ky in (1, 2):
        acc = acc + jnp.dot(x_ref[0, ky:ky + H, :], w_ref[ky],
                            preferred_element_type=f32)
    out_ref[0] = jnp.maximum(acc + brow_ref[...], 0.0).astype(out_ref.dtype)


def _decoder_kernel(x_ref, u0_ref, u1_ref, bup_ref, r0_ref, r1_ref, skip_ref,
                    bu_ref, bs_ref, bconv_ref, out_ref):
    """Fused decoder block:
       ConvTranspose2d(k=2,s=2) (incl. the 2x interleave and zero padding, via
       selection matmuls) + "concat"-free conv3x3 (up-half and skip-half banded
       weights summed into one accumulator) + bias + ReLU.

    x_ref:    (1, H, W*Cin)                 previous stage output (bf16)
    u0/u1:    (W*Cin, (2W+2)*C)             per-row up-conv block matrices
    bup_ref:  (1, (2W+2)*C)                 up-conv bias row (zero in pad cols)
    r0/r1:    (3, 2H, H)                    row-interleave selection, pre-shifted
                                            per conv tap ky (exact bf16)
    skip_ref: (1, 2H+2, (2W+2)*C)           padded skip from the encoder
    bu/bs:    (3, (2W+2)*C, 2W*C)           banded conv weights (up / skip half)
    bconv:    (1, 2W*C)                     conv bias row
    out_ref:  (1, 2H, 2W*C)
    """
    f32 = jnp.float32
    H2 = out_ref.shape[1]
    x = x_ref[0]
    z0 = (jnp.dot(x, u0_ref[...], preferred_element_type=f32)
          + bup_ref[...]).astype(jnp.bfloat16)
    z1 = (jnp.dot(x, u1_ref[...], preferred_element_type=f32)
          + bup_ref[...]).astype(jnp.bfloat16)

    acc = None
    for ky in range(3):
        up_ky = (jnp.dot(r0_ref[ky], z0, preferred_element_type=f32)
                 + jnp.dot(r1_ref[ky], z1, preferred_element_type=f32)
                 ).astype(jnp.bfloat16)
        part = (jnp.dot(up_ky, bu_ref[ky], preferred_element_type=f32)
                + jnp.dot(skip_ref[0, ky:ky + H2, :], bs_ref[ky],
                          preferred_element_type=f32))
        acc = part if acc is None else acc + part
    out_ref[0] = jnp.maximum(acc + bconv_ref[...], 0.0).astype(out_ref.dtype)


def _bottom_kernel(z_ref, w_ref, b_ref, out_ref):
    """LinearBlock1D (Conv1d k=1):  out = W @ z + b.

    z_ref: (1, C*H, W)  w_ref: (Fout, C*H)  b_ref: (Fout, 1)  out: (1, Fout, W)
    """
    out_ref[0] = (jnp.dot(w_ref[...], z_ref[0],
                          preferred_element_type=jnp.float32)
                  + b_ref[...]).astype(out_ref.dtype)


# ----------------------------------------------------------------------------
# pallas_call wrappers
# ----------------------------------------------------------------------------
def _bspec(shape):
    nd = len(shape)
    return pl.BlockSpec((1,) + tuple(shape[1:]),
                        lambda n: (n,) + (0,) * (nd - 1))


def _cspec(shape):
    nd = len(shape)
    return pl.BlockSpec(tuple(shape), lambda n: (0,) * nd)


def _cparams():
    return pltpu.CompilerParams(dimension_semantics=("parallel",))


def _enc_stage_call(x, p):
    N = x.shape[0]
    skip_shape = (N, p["sl"].shape[0], p["sr"].shape[1])
    pool_shape = (N, p["pvp"].shape[0], p["qhp"].shape[1])
    return pl.pallas_call(
        _enc_stage_kernel,
        grid=(N,),
        in_specs=[_bspec(x.shape), _cspec(p["w"].shape), _cspec(p["brow"].shape),
                  _cspec(p["sl"].shape), _cspec(p["sr"].shape),
                  _cspec(p["pvp"].shape), _cspec(p["qhp"].shape)],
        out_specs=(_bspec(skip_shape), _bspec(pool_shape)),
        out_shape=(jax.ShapeDtypeStruct(skip_shape, jnp.bfloat16),
                   jax.ShapeDtypeStruct(pool_shape, jnp.bfloat16)),
        compiler_params=_cparams(),
    )(x, p["w"], p["brow"], p["sl"], p["sr"], p["pvp"], p["qhp"])


def _conv_relu_call(x, p):
    N = x.shape[0]
    out_shape = (N, x.shape[1] - 2, p["brow"].shape[1])
    return pl.pallas_call(
        _conv_relu_kernel,
        grid=(N,),
        in_specs=[_bspec(x.shape), _cspec(p["w"].shape), _cspec(p["brow"].shape)],
        out_specs=_bspec(out_shape),
        out_shape=jax.ShapeDtypeStruct(out_shape, jnp.bfloat16),
        compiler_params=_cparams(),
    )(x, p["w"], p["brow"])


def _decoder_call(x, skip_pad, p):
    N = x.shape[0]
    out_shape = (N, 2 * x.shape[1], p["bconv"].shape[1])
    return pl.pallas_call(
        _decoder_kernel,
        grid=(N,),
        in_specs=[_bspec(x.shape), _cspec(p["u0"].shape), _cspec(p["u1"].shape),
                  _cspec(p["bup"].shape), _cspec(p["r0"].shape),
                  _cspec(p["r1"].shape), _bspec(skip_pad.shape),
                  _cspec(p["bu"].shape), _cspec(p["bs"].shape),
                  _cspec(p["bconv"].shape)],
        out_specs=_bspec(out_shape),
        out_shape=jax.ShapeDtypeStruct(out_shape, jnp.bfloat16),
        compiler_params=_cparams(),
    )(x, p["u0"], p["u1"], p["bup"], p["r0"], p["r1"], skip_pad,
      p["bu"], p["bs"], p["bconv"])


def _bottom_call(z, p):
    N = z.shape[0]
    out_shape = (N, p["w"].shape[0], z.shape[2])
    return pl.pallas_call(
        _bottom_kernel,
        grid=(N,),
        in_specs=[_bspec(z.shape), _cspec(p["w"].shape), _cspec(p["b"].shape)],
        out_specs=_bspec(out_shape),
        out_shape=jax.ShapeDtypeStruct(out_shape, jnp.float32),
        compiler_params=_cparams(),
    )(z, p["w"], p["b"])


# ----------------------------------------------------------------------------
# RepUnet forward
# ----------------------------------------------------------------------------
def rep_unet_forward(x_nchw, params):
    N, C0, H, W = x_nchw.shape
    # NCHW -> zero-padded NHWC row tensor (free reshape after one pad copy).
    x = jnp.transpose(x_nchw, (0, 2, 3, 1))
    x = jnp.pad(x, ((0, 0), (1, 1), (1, 1), (0, 0)))
    x = x.reshape(N, H + 2, (W + 2) * C0).astype(jnp.bfloat16)

    skips = []
    for st in params["enc"]:
        skip, x = _enc_stage_call(x, st)     # skip is already decoder-padded
        skips.append(skip)                   # x is already pooled + padded

    x = _conv_relu_call(x, params["mid"])    # unpadded rows (feeds upconv)

    for i, st in enumerate(params["dec"]):
        x = _decoder_call(x, skips[-1 - i], st)

    # bottom: rows (N, H, W*C) == NHWC  ->  (N, C*H, W) to match
    # x.flatten(1, 2) on NCHW, then Conv1d(C*H -> Fout, kernel_size=1).
    Hf = x.shape[1]
    Cf = params["bottom"]["w"].shape[1] // Hf
    Wf = x.shape[2] // Cf
    z = x.reshape(N, Hf, Wf, Cf).transpose(0, 3, 1, 2).reshape(N, Cf * Hf, Wf)
    return _bottom_call(z, params["bottom"])


# ----------------------------------------------------------------------------
# Structured-weight construction (host-side, once at init)
# ----------------------------------------------------------------------------
def _banded_conv_w(K, W):
    """K: (3, 3, Cin, Cout) -> (3, (W+2)*Cin, W*Cout) block-Toeplitz weights."""
    Cin, Cout = K.shape[2], K.shape[3]
    B = np.zeros((3, (W + 2) * Cin, W * Cout), np.float32)
    for ky in range(3):
        blk = K[ky].reshape(3 * Cin, Cout)
        for w in range(W):
            B[ky, w * Cin:(w + 3) * Cin, w * Cout:(w + 1) * Cout] = blk
    return B


def _pad_left(H):
    M = np.zeros((H + 2, H), np.float32)
    M[np.arange(1, H + 1), np.arange(H)] = 1.0
    return M


def _pad_right(W, C):
    M = np.zeros((W * C, (W + 2) * C), np.float32)
    for w in range(W):
        M[w * C:(w + 1) * C, (w + 1) * C:(w + 2) * C] = np.eye(C)
    return M


def _pool_left(H):
    Hh = H // 2
    M = np.zeros((Hh + 2, H), np.float32)
    for hh in range(Hh):
        M[1 + hh, 2 * hh] = 1.0
        M[1 + hh, 2 * hh + 1] = 1.0
    return M


def _pool_right(W, C):
    Wh = W // 2
    M = np.zeros((W * C, (Wh + 2) * C), np.float32)
    for ww in range(Wh):
        for d in range(2):
            M[(2 * ww + d) * C:(2 * ww + d + 1) * C,
              (1 + ww) * C:(2 + ww) * C] = 0.25 * np.eye(C)
    return M


def _upconv_u(Kt, W):
    """Kt: (2, 2, Cin, Cout) -> two (W*Cin, (2W+2)*Cout) matrices (ry=0,1)."""
    Cin, Cout = Kt.shape[2], Kt.shape[3]
    Us = []
    for ry in range(2):
        U = np.zeros((W * Cin, (2 * W + 2) * Cout), np.float32)
        for w in range(W):
            for rx in range(2):
                j = 1 + 2 * w + rx
                U[w * Cin:(w + 1) * Cin, j * Cout:(j + 1) * Cout] = Kt[ry, rx]
        Us.append(U)
    return Us


def _upconv_r_shifted(H):
    """Row interleave+pad selection matrices, pre-shifted per conv tap ky."""
    outs = []
    for ry in range(2):
        R = np.zeros((2 * H + 2, H), np.float32)
        R[1 + 2 * np.arange(H) + ry, np.arange(H)] = 1.0
        outs.append(np.stack([R[ky:ky + 2 * H, :] for ky in range(3)], axis=0))
    return outs


def _bias_row(b, W):
    return np.tile(b, W)[None, :].astype(np.float32)


def _bias_row_padded(b, W2):
    C = b.shape[0]
    row = np.zeros(((W2 + 2) * C,), np.float32)
    for j in range(1, W2 + 1):
        row[j * C:(j + 1) * C] = b
    return row[None, :]


def init_params(key, enc_chs, mid_chs, dec_chs, bottom_chs, input_size, H, W):
    keys = jax.random.split(key, 64)
    ctr = [0]

    def nrm(shape, scale):
        k = keys[ctr[0]]
        ctr[0] += 1
        return np.asarray(jax.random.normal(k, shape, jnp.float32)) * scale

    bf16 = lambda a: jnp.asarray(a, jnp.bfloat16)
    f32 = lambda a: jnp.asarray(a, jnp.float32)

    params = {}
    enc = []
    h, w = H, W
    for i in range(len(enc_chs) - 1):
        cin, cout = enc_chs[i], enc_chs[i + 1]
        K = nrm((3, 3, cin, cout), 1.0 / (3.0 * float(cin) ** 0.5))
        b = nrm((cout,), 0.01)
        enc.append({
            "w": bf16(_banded_conv_w(K, w)),
            "brow": f32(_bias_row(b, w)),
            "sl": bf16(_pad_left(h)),
            "sr": bf16(_pad_right(w, cout)),
            "pvp": bf16(_pool_left(h)),
            "qhp": bf16(_pool_right(w, cout)),
        })
        h //= 2
        w //= 2
    params["enc"] = enc

    Km = nrm((3, 3, mid_chs[0], mid_chs[1]), 1.0 / (3.0 * float(mid_chs[0]) ** 0.5))
    bm = nrm((mid_chs[1],), 0.01)
    params["mid"] = {"w": bf16(_banded_conv_w(Km, w)), "brow": f32(_bias_row(bm, w))}

    dec = []
    for i in range(len(dec_chs) - 1):
        cin, cout = dec_chs[i], dec_chs[i + 1]
        Kt = nrm((2, 2, cin, cout), 1.0 / (2.0 * float(cin) ** 0.5))
        bt = nrm((cout,), 0.01)
        Kd = nrm((3, 3, 2 * cout, cout), 1.0 / (3.0 * float(2 * cout) ** 0.5))
        bd = nrm((cout,), 0.01)
        u0, u1 = _upconv_u(Kt, w)
        r0, r1 = _upconv_r_shifted(h)
        dec.append({
            "u0": bf16(u0), "u1": bf16(u1),
            "bup": f32(_bias_row_padded(bt, 2 * w)),
            "r0": bf16(r0), "r1": bf16(r1),
            "bu": bf16(_banded_conv_w(Kd[:, :, :cout, :], 2 * w)),   # up half
            "bs": bf16(_banded_conv_w(Kd[:, :, cout:, :], 2 * w)),   # skip half
            "bconv": f32(_bias_row(bd, 2 * w)),
        })
        h *= 2
        w *= 2
    params["dec"] = dec

    fin = bottom_chs[0] * input_size
    wb = nrm((bottom_chs[1], fin), 1.0 / float(fin) ** 0.5)
    bb = nrm((bottom_chs[1], 1), 0.01)
    params["bottom"] = {"w": bf16(wb), "b": f32(bb)}
    return params


if __name__ == "__main__":
    N, H, W = 2, 16, 16
    enc_chs = (4, 8, 16)
    mid_chs = (16, 32)
    dec_chs = (32, 16, 8)
    bottom_chs = (dec_chs[-1], 32)     # bottom in_features = 8 * 16 = 128
    input_size = H

    key = jax.random.PRNGKey(0)
    kp, kx = jax.random.split(key)
    params = init_params(kp, enc_chs, mid_chs, dec_chs, bottom_chs,
                         input_size, H, W)
    x = jax.random.normal(kx, (N, enc_chs[0], H, W), jnp.float32)   # NCHW

    fwd = jax.jit(rep_unet_forward)
    out = jax.block_until_ready(fwd(x, params))
    assert out.shape == (N, bottom_chs[1], W), out.shape
    assert bool(jnp.all(jnp.isfinite(out)))
    print("KERNEL_OK")
</pallas_src>

<mosaic_0001>
module attributes {stable_mosaic.version = 11 : i64} {
  func.func @_enc_stage_kernel(%arg0: i32, %arg1: memref<1x18x72xbf16, #tpu.memory_space<vmem>>, %arg2: memref<3x72x128xbf16, #tpu.memory_space<vmem>>, %arg3: memref<1x128xf32, #tpu.memory_space<vmem>>, %arg4: memref<18x16xbf16, #tpu.memory_space<vmem>>, %arg5: memref<128x144xbf16, #tpu.memory_space<vmem>>, %arg6: memref<10x16xbf16, #tpu.memory_space<vmem>>, %arg7: memref<128x80xbf16, #tpu.memory_space<vmem>>, %arg8: memref<1x18x144xbf16, #tpu.memory_space<vmem>>, %arg9: memref<1x10x80xbf16, #tpu.memory_space<vmem>>) attributes {dimension_semantics = [#tpu.dimension_semantics<parallel>], iteration_bounds = array<i64: 2>, scalar_prefetch = 0 : i64, scratch_operands = 0 : i64, tpu.core_type = #tpu.core_type<tc>, window_params = [{transform_indices = @transform_0, window_bounds = array<i64: 1, 18, 72>}, {pipeline_mode = #tpu.pipeline_mode<synchronous>, transform_indices = @transform_1, window_bounds = array<i64: 3, 72, 128>}, {pipeline_mode = #tpu.pipeline_mode<synchronous>, transform_indices = @transform_2, window_bounds = array<i64: 1, 128>}, {pipeline_mode = #tpu.pipeline_mode<synchronous>, transform_indices = @transform_3, window_bounds = array<i64: 18, 16>}, {pipeline_mode = #tpu.pipeline_mode<synchronous>, transform_indices = @transform_4, window_bounds = array<i64: 128, 144>}, {pipeline_mode = #tpu.pipeline_mode<synchronous>, transform_indices = @transform_5, window_bounds = array<i64: 10, 16>}, {pipeline_mode = #tpu.pipeline_mode<synchronous>, transform_indices = @transform_6, window_bounds = array<i64: 128, 80>}, {transform_indices = @transform_7, window_bounds = array<i64: 1, 18, 144>}, {transform_indices = @transform_8, window_bounds = array<i64: 1, 10, 80>}]} {
    %c0 = arith.constant 0 : index
    %c0_0 = arith.constant 0 : index
    %c0_1 = arith.constant 0 : index
    %0 = vector.load %arg1[%c0, %c0_0, %c0_1] : memref<1x18x72xbf16, #tpu.memory_space<vmem>>, vector<1x16x72xbf16>
    %1 = vector.shape_cast %0 : vector<1x16x72xbf16> to vector<16x72xbf16>
    %c0_2 = arith.constant 0 : index
    %c0_3 = arith.constant 0 : index
    %c0_4 = arith.constant 0 : index
    %2 = vector.load %arg2[%c0_2, %c0_3, %c0_4] : memref<3x72x128xbf16, #tpu.memory_space<vmem>>, vector<1x72x128xbf16>
    %3 = vector.shape_cast %2 : vector<1x72x128xbf16> to vector<72x128xbf16>
    %cst = arith.constant dense<0.000000e+00> : vector<16x128xf32>
    %4 = tpu.matmul %1, %3, %cst {dimension_numbers = #tpu.dot_dimension_numbers<[1], [0], [0], [1], [0, 0, 1, 1], [], []>} : vector<16x72xbf16>, vector<72x128xbf16>, vector<16x128xf32> -> vector<16x128xf32>
    %c0_5 = arith.constant 0 : index
    %c1 = arith.constant 1 : index
    %c0_6 = arith.constant 0 : index
    %5 = vector.load %arg1[%c0_5, %c1, %c0_6] : memref<1x18x72xbf16, #tpu.memory_space<vmem>>, vector<1x16x72xbf16>
    %6 = vector.shape_cast %5 : vector<1x16x72xbf16> to vector<16x72xbf16>
    %c1_7 = arith.constant 1 : index
    %c0_8 = arith.constant 0 : index
    %c0_9 = arith.constant 0 : index
    %7 = vector.load %arg2[%c1_7, %c0_8, %c0_9] : memref<3x72x128xbf16, #tpu.memory_space<vmem>>, vector<1x72x128xbf16>
    %8 = vector.shape_cast %7 : vector<1x72x128xbf16> to vector<72x128xbf16>
    %cst_10 = arith.constant dense<0.000000e+00> : vector<16x128xf32>
    %9 = tpu.matmul %6, %8, %cst_10 {dimension_numbers = #tpu.dot_dimension_numbers<[1], [0], [0], [1], [0, 0, 1, 1], [], []>} : vector<16x72xbf16>, vector<72x128xbf16>, vector<16x128xf32> -> vector<16x128xf32>
    %10 = arith.addf %4, %9 : vector<16x128xf32>
    %c0_11 = arith.constant 0 : index
    %c2 = arith.constant 2 : index
    %c0_12 = arith.constant 0 : index
    %11 = vector.load %arg1[%c0_11, %c2, %c0_12] : memref<1x18x72xbf16, #tpu.memory_space<vmem>>, vector<1x16x72xbf16>
    %12 = vector.shape_cast %11 : vector<1x16x72xbf16> to vector<16x72xbf16>
    %c2_13 = arith.constant 2 : index
    %c0_14 = arith.constant 0 : index
    %c0_15 = arith.constant 0 : index
    %13 = vector.load %arg2[%c2_13, %c0_14, %c0_15] : memref<3x72x128xbf16, #tpu.memory_space<vmem>>, vector<1x72x128xbf16>
    %14 = vector.shape_cast %13 : vector<1x72x128xbf16> to vector<72x128xbf16>
    %cst_16 = arith.constant dense<0.000000e+00> : vector<16x128xf32>
    %15 = tpu.matmul %12, %14, %cst_16 {dimension_numbers = #tpu.dot_dimension_numbers<[1], [0], [0], [1], [0, 0, 1, 1], [], []>} : vector<16x72xbf16>, vector<72x128xbf16>, vector<16x128xf32> -> vector<16x128xf32>
    %16 = arith.addf %10, %15 : vector<16x128xf32>
    %c0_17 = arith.constant 0 : index
    %c0_18 = arith.constant 0 : index
    %17 = vector.load %arg3[%c0_17, %c0_18] : memref<1x128xf32, #tpu.memory_space<vmem>>, vector<1x128xf32>
    %18 = vector.broadcast %17 : vector<1x128xf32> to vector<16x128xf32>
    %19 = arith.addf %16, %18 : vector<16x128xf32>
    %cst_19 = arith.constant 0.000000e+00 : f32
    %20 = vector.broadcast %cst_19 : f32 to vector<16x128xf32>
    %21 = arith.maximumf %19, %20 : vector<16x128xf32>
    %22 = arith.truncf %21 : vector<16x128xf32> to vector<16x128xbf16>
    %c0_20 = arith.constant 0 : index
    %c0_21 = arith.constant 0 : index
    %23 = vector.load %arg5[%c0_20, %c0_21] : memref<128x144xbf16, #tpu.memory_space<vmem>>, vector<128x144xbf16>
    %cst_22 = arith.constant dense<0.000000e+00> : vector<16x144xf32>
    %24 = tpu.matmul %22, %23, %cst_22 {dimension_numbers = #tpu.dot_dimension_numbers<[1], [0], [0], [1], [0, 0, 1, 1], [], []>} : vector<16x128xbf16>, vector<128x144xbf16>, vector<16x144xf32> -> vector<16x144xf32>
    %25 = arith.truncf %24 : vector<16x144xf32> to vector<16x144xbf16>
    %c0_23 = arith.constant 0 : index
    %c0_24 = arith.constant 0 : index
    %26 = vector.load %arg4[%c0_23, %c0_24] : memref<18x16xbf16, #tpu.memory_space<vmem>>, vector<18x16xbf16>
    %cst_25 = arith.constant dense<0.000000e+00> : vector<18x144xf32>
    %27 = tpu.matmul %26, %25, %cst_25 {dimension_numbers = #tpu.dot_dimension_numbers<[1], [0], [0], [1], [0, 0, 1, 1], [], []>} : vector<18x16xbf16>, vector<16x144xbf16>, vector<18x144xf32> -> vector<18x144xf32>
    %28 = arith.truncf %27 : vector<18x144xf32> to vector<18x144xbf16>
    %c0_26 = arith.constant 0 : index
    %c0_27 = arith.constant 0 : index
    %c0_28 = arith.constant 0 : index
    %29 = vector.load %arg8[%c0_26, %c0_27, %c0_28] : memref<1x18x144xbf16, #tpu.memory_space<vmem>>, vector<1x18x144xbf16>
    %30 = vector.shape_cast %29 : vector<1x18x144xbf16> to vector<18x144xbf16>
    %31 = vector.shape_cast %28 : vector<18x144xbf16> to vector<1x18x144xbf16>
    tpu.vector_store %arg8[%c0_26, %c0_27, %c0_28], %31 {strides = array<i32>} : memref<1x18x144xbf16, #tpu.memory_space<vmem>>, vector<1x18x144xbf16>,
    %c0_29 = arith.constant 0 : index
    %c0_30 = arith.constant 0 : index
    %32 = vector.load %arg7[%c0_29, %c0_30] : memref<128x80xbf16, #tpu.memory_space<vmem>>, vector<128x80xbf16>
    %cst_31 = arith.constant dense<0.000000e+00> : vector<16x80xf32>
    %33 = tpu.matmul %22, %32, %cst_31 {dimension_numbers = #tpu.dot_dimension_numbers<[1], [0], [0], [1], [0, 0, 1, 1], [], []>} : vector<16x128xbf16>, vector<128x80xbf16>, vector<16x80xf32> -> vector<16x80xf32>
    %34 = arith.truncf %33 : vector<16x80xf32> to vector<16x80xbf16>
    %c0_32 = arith.constant 0 : index
    %c0_33 = arith.constant 0 : index
    %35 = vector.load %arg6[%c0_32, %c0_33] : memref<10x16xbf16, #tpu.memory_space<vmem>>, vector<10x16xbf16>
    %cst_34 = arith.constant dense<0.000000e+00> : vector<10x80xf32>
    %36 = tpu.matmul %35, %34, %cst_34 {dimension_numbers = #tpu.dot_dimension_numbers<[1], [0], [0], [1], [0, 0, 1, 1], [], []>} : vector<10x16xbf16>, vector<16x80xbf16>, vector<10x80xf32> -> vector<10x80xf32>
    %37 = arith.truncf %36 : vector<10x80xf32> to vector<10x80xbf16>
    %c0_35 = arith.constant 0 : index
    %c0_36 = arith.constant 0 : index
    %c0_37 = arith.constant 0 : index
    %38 = vector.load %arg9[%c0_35, %c0_36, %c0_37] : memref<1x10x80xbf16, #tpu.memory_space<vmem>>, vector<1x10x80xbf16>
    %39 = vector.shape_cast %38 : vector<1x10x80xbf16> to vector<10x80xbf16>
    %40 = vector.shape_cast %37 : vector<10x80xbf16> to vector<1x10x80xbf16>
    tpu.vector_store %arg9[%c0_35, %c0_36, %c0_37], %40 {strides = array<i32>} : memref<1x10x80xbf16, #tpu.memory_space<vmem>>, vector<1x10x80xbf16>,
    return
  }
  func.func @transform_0(%arg0: i32) -> (i32, i32, i32) {
    %c0_i32 = arith.constant 0 : i32
    %c0_i32_0 = arith.constant 0 : i32
    %c0_i32_1 = arith.constant 0 : i32
    return %arg0, %c0_i32, %c0_i32_0 : i32, i32, i32
  }
  func.func @transform_1(%arg0: i32) -> (i32, i32, i32) {
    %c0_i32 = arith.constant 0 : i32
    %c0_i32_0 = arith.constant 0 : i32
    %c0_i32_1 = arith.constant 0 : i32
    %c0_i32_2 = arith.constant 0 : i32
    return %c0_i32, %c0_i32_0, %c0_i32_1 : i32, i32, i32
  }
  func.func @transform_2(%arg0: i32) -> (i32, i32) {
    %c0_i32 = arith.constant 0 : i32
    %c0_i32_0 = arith.constant 0 : i32
    %c0_i32_1 = arith.constant 0 : i32
    return %c0_i32, %c0_i32_0 : i32, i32
  }
  func.func @transform_3(%arg0: i32) -> (i32, i32) {
    %c0_i32 = arith.constant 0 : i32
    %c0_i32_0 = arith.constant 0 : i32
    %c0_i32_1 = arith.constant 0 : i32
    return %c0_i32, %c0_i32_0 : i32, i32
  }
  func.func @transform_4(%arg0: i32) -> (i32, i32) {
    %c0_i32 = arith.constant 0 : i32
    %c0_i32_0 = arith.constant 0 : i32
    %c0_i32_1 = arith.constant 0 : i32
    return %c0_i32, %c0_i32_0 : i32, i32
  }
  func.func @transform_5(%arg0: i32) -> (i32, i32) {
    %c0_i32 = arith.constant 0 : i32
    %c0_i32_0 = arith.constant 0 : i32
    %c0_i32_1 = arith.constant 0 : i32
    return %c0_i32, %c0_i32_0 : i32, i32
  }
  func.func @transform_6(%arg0: i32) -> (i32, i32) {
    %c0_i32 = arith.constant 0 : i32
    %c0_i32_0 = arith.constant 0 : i32
    %c0_i32_1 = arith.constant 0 : i32
    return %c0_i32, %c0_i32_0 : i32, i32
  }
  func.func @transform_7(%arg0: i32) -> (i32, i32, i32) {
    %c0_i32 = arith.constant 0 : i32
    %c0_i32_0 = arith.constant 0 : i32
    %c0_i32_1 = arith.constant 0 : i32
    return %arg0, %c0_i32, %c0_i32_0 : i32, i32, i32
  }
  func.func @transform_8(%arg0: i32) -> (i32, i32, i32) {
    %c0_i32 = arith.constant 0 : i32
    %c0_i32_0 = arith.constant 0 : i32
    %c0_i32_1 = arith.constant 0 : i32
    return %arg0, %c0_i32, %c0_i32_0 : i32, i32, i32
  }
}

module attributes {stable_mosaic.version = 11 : i64} {
  func.func @_enc_stage_kernel(%arg0: i32, %arg1: memref<1x10x80xbf16, #tpu.memory_space<vmem>>, %arg2: memref<3x80x128xbf16, #tpu.memory_space<vmem>>, %arg3: memref<1x128xf32, #tpu.memory_space<vmem>>, %arg4: memref<10x8xbf16, #tpu.memory_space<vmem>>, %arg5: memref<128x160xbf16, #tpu.memory_space<vmem>>, %arg6: memref<6x8xbf16, #tpu.memory_space<vmem>>, %arg7: memref<128x96xbf16, #tpu.memory_space<vmem>>, %arg8: memref<1x10x160xbf16, #tpu.memory_space<vmem>>, %arg9: memref<1x6x96xbf16, #tpu.memory_space<vmem>>) attributes {dimension_semantics = [#tpu.dimension_semantics<parallel>], iteration_bounds = array<i64: 2>, scalar_prefetch = 0 : i64, scratch_operands = 0 : i64, tpu.core_type = #tpu.core_type<tc>, window_params = [{transform_indices = @transform_0, window_bounds = array<i64: 1, 10, 80>}, {pipeline_mode = #tpu.pipeline_mode<synchronous>, transform_indices = @transform_1, window_bounds = array<i64: 3, 80, 128>}, {pipeline_mode = #tpu.pipeline_mode<synchronous>, transform_indices = @transform_2, window_bounds = array<i64: 1, 128>}, {pipeline_mode = #tpu.pipeline_mode<synchronous>, transform_indices = @transform_3, window_bounds = array<i64: 10, 8>}, {pipeline_mode = #tpu.pipeline_mode<synchronous>, transform_indices = @transform_4, window_bounds = array<i64: 128, 160>}, {pipeline_mode = #tpu.pipeline_mode<synchronous>, transform_indices = @transform_5, window_bounds = array<i64: 6, 8>}, {pipeline_mode = #tpu.pipeline_mode<synchronous>, transform_indices = @transform_6, window_bounds = array<i64: 128, 96>}, {transform_indices = @transform_7, window_bounds = array<i64: 1, 10, 160>}, {transform_indices = @transform_8, window_bounds = array<i64: 1, 6, 96>}]} {
    %c0 = arith.constant 0 : index
    %c0_0 = arith.constant 0 : index
    %c0_1 = arith.constant 0 : index
    %0 = vector.load %arg1[%c0, %c0_0, %c0_1] : memref<1x10x80xbf16, #tpu.memory_space<vmem>>, vector<1x8x80xbf16>
    %1 = vector.shape_cast %0 : vector<1x8x80xbf16> to vector<8x80xbf16>
    %c0_2 = arith.constant 0 : index
    %c0_3 = arith.constant 0 : index
    %c0_4 = arith.constant 0 : index
    %2 = vector.load %arg2[%c0_2, %c0_3, %c0_4] : memref<3x80x128xbf16, #tpu.memory_space<vmem>>, vector<1x80x128xbf16>
    %3 = vector.shape_cast %2 : vector<1x80x128xbf16> to vector<80x128xbf16>
    %cst = arith.constant dense<0.000000e+00> : vector<8x128xf32>
    %4 = tpu.matmul %1, %3, %cst {dimension_numbers = #tpu.dot_dimension_numbers<[1], [0], [0], [1], [0, 0, 1, 1], [], []>} : vector<8x80xbf16>, vector<80x128xbf16>, vector<8x128xf32> -> vector<8x128xf32>
    %c0_5 = arith.constant 0 : index
    %c1 = arith.constant 1 : index
    %c0_6 = arith.constant 0 : index
    %5 = vector.load %arg1[%c0_5, %c1, %c0_6] : memref<1x10x80xbf16, #tpu.memory_space<vmem>>, vector<1x8x80xbf16>
    %6 = vector.shape_cast %5 : vector<1x8x80xbf16> to vector<8x80xbf16>
    %c1_7 = arith.constant 1 : index
    %c0_8 = arith.constant 0 : index
    %c0_9 = arith.constant 0 : index
    %7 = vector.load %arg2[%c1_7, %c0_8, %c0_9] : memref<3x80x128xbf16, #tpu.memory_space<vmem>>, vector<1x80x128xbf16>
    %8 = vector.shape_cast %7 : vector<1x80x128xbf16> to vector<80x128xbf16>
    %cst_10 = arith.constant dense<0.000000e+00> : vector<8x128xf32>
    %9 = tpu.matmul %6, %8, %cst_10 {dimension_numbers = #tpu.dot_dimension_numbers<[1], [0], [0], [1], [0, 0, 1, 1], [], []>} : vector<8x80xbf16>, vector<80x128xbf16>, vector<8x128xf32> -> vector<8x128xf32>
    %10 = arith.addf %4, %9 : vector<8x128xf32>
    %c0_11 = arith.constant 0 : index
    %c2 = arith.constant 2 : index
    %c0_12 = arith.constant 0 : index
    %11 = vector.load %arg1[%c0_11, %c2, %c0_12] : memref<1x10x80xbf16, #tpu.memory_space<vmem>>, vector<1x8x80xbf16>
    %12 = vector.shape_cast %11 : vector<1x8x80xbf16> to vector<8x80xbf16>
    %c2_13 = arith.constant 2 : index
    %c0_14 = arith.constant 0 : index
    %c0_15 = arith.constant 0 : index
    %13 = vector.load %arg2[%c2_13, %c0_14, %c0_15] : memref<3x80x128xbf16, #tpu.memory_space<vmem>>, vector<1x80x128xbf16>
    %14 = vector.shape_cast %13 : vector<1x80x128xbf16> to vector<80x128xbf16>
    %cst_16 = arith.constant dense<0.000000e+00> : vector<8x128xf32>
    %15 = tpu.matmul %12, %14, %cst_16 {dimension_numbers = #tpu.dot_dimension_numbers<[1], [0], [0], [1], [0, 0, 1, 1], [], []>} : vector<8x80xbf16>, vector<80x128xbf16>, vector<8x128xf32> -> vector<8x128xf32>
    %16 = arith.addf %10, %15 : vector<8x128xf32>
    %c0_17 = arith.constant 0 : index
    %c0_18 = arith.constant 0 : index
    %17 = vector.load %arg3[%c0_17, %c0_18] : memref<1x128xf32, #tpu.memory_space<vmem>>, vector<1x128xf32>
    %18 = vector.broadcast %17 : vector<1x128xf32> to vector<8x128xf32>
    %19 = arith.addf %16, %18 : vector<8x128xf32>
    %cst_19 = arith.constant 0.000000e+00 : f32
    %20 = vector.broadcast %cst_19 : f32 to vector<8x128xf32>
    %21 = arith.maximumf %19, %20 : vector<8x128xf32>
    %22 = arith.truncf %21 : vector<8x128xf32> to vector<8x128xbf16>
    %c0_20 = arith.constant 0 : index
    %c0_21 = arith.constant 0 : index
    %23 = vector.load %arg5[%c0_20, %c0_21] : memref<128x160xbf16, #tpu.memory_space<vmem>>, vector<128x160xbf16>
    %cst_22 = arith.constant dense<0.000000e+00> : vector<8x160xf32>
    %24 = tpu.matmul %22, %23, %cst_22 {dimension_numbers = #tpu.dot_dimension_numbers<[1], [0], [0], [1], [0, 0, 1, 1], [], []>} : vector<8x128xbf16>, vector<128x160xbf16>, vector<8x160xf32> -> vector<8x160xf32>
    %25 = arith.truncf %24 : vector<8x160xf32> to vector<8x160xbf16>
    %c0_23 = arith.constant 0 : index
    %c0_24 = arith.constant 0 : index
    %26 = vector.load %arg4[%c0_23, %c0_24] : memref<10x8xbf16, #tpu.memory_space<vmem>>, vector<10x8xbf16>
    %cst_25 = arith.constant dense<0.000000e+00> : vector<10x160xf32>
    %27 = tpu.matmul %26, %25, %cst_25 {dimension_numbers = #tpu.dot_dimension_numbers<[1], [0], [0], [1], [0, 0, 1, 1], [], []>} : vector<10x8xbf16>, vector<8x160xbf16>, vector<10x160xf32> -> vector<10x160xf32>
    %28 = arith.truncf %27 : vector<10x160xf32> to vector<10x160xbf16>
    %c0_26 = arith.constant 0 : index
    %c0_27 = arith.constant 0 : index
    %c0_28 = arith.constant 0 : index
    %29 = vector.load %arg8[%c0_26, %c0_27, %c0_28] : memref<1x10x160xbf16, #tpu.memory_space<vmem>>, vector<1x10x160xbf16>
    %30 = vector.shape_cast %29 : vector<1x10x160xbf16> to vector<10x160xbf16>
    %31 = vector.shape_cast %28 : vector<10x160xbf16> to vector<1x10x160xbf16>
    tpu.vector_store %arg8[%c0_26, %c0_27, %c0_28], %31 {strides = array<i32>} : memref<1x10x160xbf16, #tpu.memory_space<vmem>>, vector<1x10x160xbf16>,
    %c0_29 = arith.constant 0 : index
    %c0_30 = arith.constant 0 : index
    %32 = vector.load %arg7[%c0_29, %c0_30] : memref<128x96xbf16, #tpu.memory_space<vmem>>, vector<128x96xbf16>
    %cst_31 = arith.constant dense<0.000000e+00> : vector<8x96xf32>
    %33 = tpu.matmul %22, %32, %cst_31 {dimension_numbers = #tpu.dot_dimension_numbers<[1], [0], [0], [1], [0, 0, 1, 1], [], []>} : vector<8x128xbf16>, vector<128x96xbf16>, vector<8x96xf32> -> vector<8x96xf32>
    %34 = arith.truncf %33 : vector<8x96xf32> to vector<8x96xbf16>
    %c0_32 = arith.constant 0 : index
    %c0_33 = arith.constant 0 : index
    %35 = vector.load %arg6[%c0_32, %c0_33] : memref<6x8xbf16, #tpu.memory_space<vmem>>, vector<6x8xbf16>
    %cst_34 = arith.constant dense<0.000000e+00> : vector<6x96xf32>
    %36 = tpu.matmul %35, %34, %cst_34 {dimension_numbers = #tpu.dot_dimension_numbers<[1], [0], [0], [1], [0, 0, 1, 1], [], []>} : vector<6x8xbf16>, vector<8x96xbf16>, vector<6x96xf32> -> vector<6x96xf32>
    %37 = arith.truncf %36 : vector<6x96xf32> to vector<6x96xbf16>
    %c0_35 = arith.constant 0 : index
    %c0_36 = arith.constant 0 : index
    %c0_37 = arith.constant 0 : index
    %38 = vector.load %arg9[%c0_35, %c0_36, %c0_37] : memref<1x6x96xbf16, #tpu.memory_space<vmem>>, vector<1x6x96xbf16>
    %39 = vector.shape_cast %38 : vector<1x6x96xbf16> to vector<6x96xbf16>
    %40 = vector.shape_cast %37 : vector<6x96xbf16> to vector<1x6x96xbf16>
    tpu.vector_store %arg9[%c0_35, %c0_36, %c0_37], %40 {strides = array<i32>} : memref<1x6x96xbf16, #tpu.memory_space<vmem>>, vector<1x6x96xbf16>,
    return
  }
  func.func @transform_0(%arg0: i32) -> (i32, i32, i32) {
    %c0_i32 = arith.constant 0 : i32
    %c0_i32_0 = arith.constant 0 : i32
    %c0_i32_1 = arith.constant 0 : i32
    return %arg0, %c0_i32, %c0_i32_0 : i32, i32, i32
  }
  func.func @transform_1(%arg0: i32) -> (i32, i32, i32) {
    %c0_i32 = arith.constant 0 : i32
    %c0_i32_0 = arith.constant 0 : i32
    %c0_i32_1 = arith.constant 0 : i32
    %c0_i32_2 = arith.constant 0 : i32
    return %c0_i32, %c0_i32_0, %c0_i32_1 : i32, i32, i32
  }
  func.func @transform_2(%arg0: i32) -> (i32, i32) {
    %c0_i32 = arith.constant 0 : i32
    %c0_i32_0 = arith.constant 0 : i32
    %c0_i32_1 = arith.constant 0 : i32
    return %c0_i32, %c0_i32_0 : i32, i32
  }
  func.func @transform_3(%arg0: i32) -> (i32, i32) {
    %c0_i32 = arith.constant 0 : i32
    %c0_i32_0 = arith.constant 0 : i32
    %c0_i32_1 = arith.constant 0 : i32
    return %c0_i32, %c0_i32_0 : i32, i32
  }
  func.func @transform_4(%arg0: i32) -> (i32, i32) {
    %c0_i32 = arith.constant 0 : i32
    %c0_i32_0 = arith.constant 0 : i32
    %c0_i32_1 = arith.constant 0 : i32
    return %c0_i32, %c0_i32_0 : i32, i32
  }
  func.func @transform_5(%arg0: i32) -> (i32, i32) {
    %c0_i32 = arith.constant 0 : i32
    %c0_i32_0 = arith.constant 0 : i32
    %c0_i32_1 = arith.constant 0 : i32
    return %c0_i32, %c0_i32_0 : i32, i32
  }
  func.func @transform_6(%arg0: i32) -> (i32, i32) {
    %c0_i32 = arith.constant 0 : i32
    %c0_i32_0 = arith.constant 0 : i32
    %c0_i32_1 = arith.constant 0 : i32
    return %c0_i32, %c0_i32_0 : i32, i32
  }
  func.func @transform_7(%arg0: i32) -> (i32, i32, i32) {
    %c0_i32 = arith.constant 0 : i32
    %c0_i32_0 = arith.constant 0 : i32
    %c0_i32_1 = arith.constant 0 : i32
    return %arg0, %c0_i32, %c0_i32_0 : i32, i32, i32
  }
  func.func @transform_8(%arg0: i32) -> (i32, i32, i32) {
    %c0_i32 = arith.constant 0 : i32
    %c0_i32_0 = arith.constant 0 : i32
    %c0_i32_1 = arith.constant 0 : i32
    return %arg0, %c0_i32, %c0_i32_0 : i32, i32, i32
  }
}

module attributes {stable_mosaic.version = 11 : i64} {
  func.func @_conv_relu_kernel(%arg0: i32, %arg1: memref<1x6x96xbf16, #tpu.memory_space<vmem>>, %arg2: memref<3x96x128xbf16, #tpu.memory_space<vmem>>, %arg3: memref<1x128xf32, #tpu.memory_space<vmem>>, %arg4: memref<1x4x128xbf16, #tpu.memory_space<vmem>>) attributes {dimension_semantics = [#tpu.dimension_semantics<parallel>], iteration_bounds = array<i64: 2>, scalar_prefetch = 0 : i64, scratch_operands = 0 : i64, tpu.core_type = #tpu.core_type<tc>, window_params = [{transform_indices = @transform_0, window_bounds = array<i64: 1, 6, 96>}, {pipeline_mode = #tpu.pipeline_mode<synchronous>, transform_indices = @transform_1, window_bounds = array<i64: 3, 96, 128>}, {pipeline_mode = #tpu.pipeline_mode<synchronous>, transform_indices = @transform_2, window_bounds = array<i64: 1, 128>}, {transform_indices = @transform_3, window_bounds = array<i64: 1, 4, 128>}]} {
    %c0 = arith.constant 0 : index
    %c0_0 = arith.constant 0 : index
    %c0_1 = arith.constant 0 : index
    %0 = vector.load %arg1[%c0, %c0_0, %c0_1] : memref<1x6x96xbf16, #tpu.memory_space<vmem>>, vector<1x4x96xbf16>
    %1 = vector.shape_cast %0 : vector<1x4x96xbf16> to vector<4x96xbf16>
    %c0_2 = arith.constant 0 : index
    %c0_3 = arith.constant 0 : index
    %c0_4 = arith.constant 0 : index
    %2 = vector.load %arg2[%c0_2, %c0_3, %c0_4] : memref<3x96x128xbf16, #tpu.memory_space<vmem>>, vector<1x96x128xbf16>
    %3 = vector.shape_cast %2 : vector<1x96x128xbf16> to vector<96x128xbf16>
    %cst = arith.constant dense<0.000000e+00> : vector<4x128xf32>
    %4 = tpu.matmul %1, %3, %cst {dimension_numbers = #tpu.dot_dimension_numbers<[1], [0], [0], [1], [0, 0, 1, 1], [], []>} : vector<4x96xbf16>, vector<96x128xbf16>, vector<4x128xf32> -> vector<4x128xf32>
    %c0_5 = arith.constant 0 : index
    %c1 = arith.constant 1 : index
    %c0_6 = arith.constant 0 : index
    %5 = vector.load %arg1[%c0_5, %c1, %c0_6] : memref<1x6x96xbf16, #tpu.memory_space<vmem>>, vector<1x4x96xbf16>
    %6 = vector.shape_cast %5 : vector<1x4x96xbf16> to vector<4x96xbf16>
    %c1_7 = arith.constant 1 : index
    %c0_8 = arith.constant 0 : index
    %c0_9 = arith.constant 0 : index
    %7 = vector.load %arg2[%c1_7, %c0_8, %c0_9] : memref<3x96x128xbf16, #tpu.memory_space<vmem>>, vector<1x96x128xbf16>
    %8 = vector.shape_cast %7 : vector<1x96x128xbf16> to vector<96x128xbf16>
    %cst_10 = arith.constant dense<0.000000e+00> : vector<4x128xf32>
    %9 = tpu.matmul %6, %8, %cst_10 {dimension_numbers = #tpu.dot_dimension_numbers<[1], [0], [0], [1], [0, 0, 1, 1], [], []>} : vector<4x96xbf16>, vector<96x128xbf16>, vector<4x128xf32> -> vector<4x128xf32>
    %10 = arith.addf %4, %9 : vector<4x128xf32>
    %c0_11 = arith.constant 0 : index
    %c2 = arith.constant 2 : index
    %c0_12 = arith.constant 0 : index
    %11 = vector.load %arg1[%c0_11, %c2, %c0_12] : memref<1x6x96xbf16, #tpu.memory_space<vmem>>, vector<1x4x96xbf16>
    %12 = vector.shape_cast %11 : vector<1x4x96xbf16> to vector<4x96xbf16>
    %c2_13 = arith.constant 2 : index
    %c0_14 = arith.constant 0 : index
    %c0_15 = arith.constant 0 : index
    %13 = vector.load %arg2[%c2_13, %c0_14, %c0_15] : memref<3x96x128xbf16, #tpu.memory_space<vmem>>, vector<1x96x128xbf16>
    %14 = vector.shape_cast %13 : vector<1x96x128xbf16> to vector<96x128xbf16>
    %cst_16 = arith.constant dense<0.000000e+00> : vector<4x128xf32>
    %15 = tpu.matmul %12, %14, %cst_16 {dimension_numbers = #tpu.dot_dimension_numbers<[1], [0], [0], [1], [0, 0, 1, 1], [], []>} : vector<4x96xbf16>, vector<96x128xbf16>, vector<4x128xf32> -> vector<4x128xf32>
    %16 = arith.addf %10, %15 : vector<4x128xf32>
    %c0_17 = arith.constant 0 : index
    %c0_18 = arith.constant 0 : index
    %17 = vector.load %arg3[%c0_17, %c0_18] : memref<1x128xf32, #tpu.memory_space<vmem>>, vector<1x128xf32>
    %18 = vector.broadcast %17 : vector<1x128xf32> to vector<4x128xf32>
    %19 = arith.addf %16, %18 : vector<4x128xf32>
    %cst_19 = arith.constant 0.000000e+00 : f32
    %20 = vector.broadcast %cst_19 : f32 to vector<4x128xf32>
    %21 = arith.maximumf %19, %20 : vector<4x128xf32>
    %22 = arith.truncf %21 : vector<4x128xf32> to vector<4x128xbf16>
    %c0_20 = arith.constant 0 : index
    %c0_21 = arith.constant 0 : index
    %c0_22 = arith.constant 0 : index
    %23 = vector.load %arg4[%c0_20, %c0_21, %c0_22] : memref<1x4x128xbf16, #tpu.memory_space<vmem>>, vector<1x4x128xbf16>
    %24 = vector.shape_cast %23 : vector<1x4x128xbf16> to vector<4x128xbf16>
    %25 = vector.shape_cast %22 : vector<4x128xbf16> to vector<1x4x128xbf16>
    tpu.vector_store %arg4[%c0_20, %c0_21, %c0_22], %25 {strides = array<i32>} : memref<1x4x128xbf16, #tpu.memory_space<vmem>>, vector<1x4x128xbf16>,
    return
  }
  func.func @transform_0(%arg0: i32) -> (i32, i32, i32) {
    %c0_i32 = arith.constant 0 : i32
    %c0_i32_0 = arith.constant 0 : i32
    %c0_i32_1 = arith.constant 0 : i32
    return %arg0, %c0_i32, %c0_i32_0 : i32, i32, i32
  }
  func.func @transform_1(%arg0: i32) -> (i32, i32, i32) {
    %c0_i32 = arith.constant 0 : i32
    %c0_i32_0 = arith.constant 0 : i32
    %c0_i32_1 = arith.constant 0 : i32
    %c0_i32_2 = arith.constant 0 : i32
    return %c0_i32, %c0_i32_0, %c0_i32_1 : i32, i32, i32
  }
  func.func @transform_2(%arg0: i32) -> (i32, i32) {
    %c0_i32 = arith.constant 0 : i32
    %c0_i32_0 = arith.constant 0 : i32
    %c0_i32_1 = arith.constant 0 : i32
    return %c0_i32, %c0_i32_0 : i32, i32
  }
  func.func @transform_3(%arg0: i32) -> (i32, i32, i32) {
    %c0_i32 = arith.constant 0 : i32
    %c0_i32_0 = arith.constant 0 : i32
    %c0_i32_1 = arith.constant 0 : i32
    return %arg0, %c0_i32, %c0_i32_0 : i32, i32, i32
  }
}

module attributes {stable_mosaic.version = 11 : i64} {
  func.func @_decoder_kernel(%arg0: i32, %arg1: memref<1x4x128xbf16, #tpu.memory_space<vmem>>, %arg2: memref<128x160xbf16, #tpu.memory_space<vmem>>, %arg3: memref<128x160xbf16, #tpu.memory_space<vmem>>, %arg4: memref<1x160xf32, #tpu.memory_space<vmem>>, %arg5: memref<3x8x4xbf16, #tpu.memory_space<vmem>>, %arg6: memref<3x8x4xbf16, #tpu.memory_space<vmem>>, %arg7: memref<1x10x160xbf16, #tpu.memory_space<vmem>>, %arg8: memref<3x160x128xbf16, #tpu.memory_space<vmem>>, %arg9: memref<3x160x128xbf16, #tpu.memory_space<vmem>>, %arg10: memref<1x128xf32, #tpu.memory_space<vmem>>, %arg11: memref<1x8x128xbf16, #tpu.memory_space<vmem>>) attributes {dimension_semantics = [#tpu.dimension_semantics<parallel>], iteration_bounds = array<i64: 2>, scalar_prefetch = 0 : i64, scratch_operands = 0 : i64, tpu.core_type = #tpu.core_type<tc>, window_params = [{transform_indices = @transform_0, window_bounds = array<i64: 1, 4, 128>}, {pipeline_mode = #tpu.pipeline_mode<synchronous>, transform_indices = @transform_1, window_bounds = array<i64: 128, 160>}, {pipeline_mode = #tpu.pipeline_mode<synchronous>, transform_indices = @transform_2, window_bounds = array<i64: 128, 160>}, {pipeline_mode = #tpu.pipeline_mode<synchronous>, transform_indices = @transform_3, window_bounds = array<i64: 1, 160>}, {pipeline_mode = #tpu.pipeline_mode<synchronous>, transform_indices = @transform_4, window_bounds = array<i64: 3, 8, 4>}, {pipeline_mode = #tpu.pipeline_mode<synchronous>, transform_indices = @transform_5, window_bounds = array<i64: 3, 8, 4>}, {transform_indices = @transform_6, window_bounds = array<i64: 1, 10, 160>}, {pipeline_mode = #tpu.pipeline_mode<synchronous>, transform_indices = @transform_7, window_bounds = array<i64: 3, 160, 128>}, {pipeline_mode = #tpu.pipeline_mode<synchronous>, transform_indices = @transform_8, window_bounds = array<i64: 3, 160, 128>}, {pipeline_mode = #tpu.pipeline_mode<synchronous>, transform_indices = @transform_9, window_bounds = array<i64: 1, 128>}, {transform_indices = @transform_10, window_bounds = array<i64: 1, 8, 128>}]} {
    %c0 = arith.constant 0 : index
    %c0_0 = arith.constant 0 : index
    %c0_1 = arith.constant 0 : index
    %0 = vector.load %arg1[%c0, %c0_0, %c0_1] : memref<1x4x128xbf16, #tpu.memory_space<vmem>>, vector<1x4x128xbf16>
    %1 = vector.shape_cast %0 : vector<1x4x128xbf16> to vector<4x128xbf16>
    %c0_2 = arith.constant 0 : index
    %c0_3 = arith.constant 0 : index
    %2 = vector.load %arg2[%c0_2, %c0_3] : memref<128x160xbf16, #tpu.memory_space<vmem>>, vector<128x160xbf16>
    %cst = arith.constant dense<0.000000e+00> : vector<4x160xf32>
    %3 = tpu.matmul %1, %2, %cst {dimension_numbers = #tpu.dot_dimension_numbers<[1], [0], [0], [1], [0, 0, 1, 1], [], []>} : vector<4x128xbf16>, vector<128x160xbf16>, vector<4x160xf32> -> vector<4x160xf32>
    %c0_4 = arith.constant 0 : index
    %c0_5 = arith.constant 0 : index
    %4 = vector.load %arg4[%c0_4, %c0_5] : memref<1x160xf32, #tpu.memory_space<vmem>>, vector<1x160xf32>
    %5 = vector.broadcast %4 : vector<1x160xf32> to vector<4x160xf32>
    %6 = arith.addf %3, %5 : vector<4x160xf32>
    %7 = arith.truncf %6 : vector<4x160xf32> to vector<4x160xbf16>
    %c0_6 = arith.constant 0 : index
    %c0_7 = arith.constant 0 : index
    %8 = vector.load %arg3[%c0_6, %c0_7] : memref<128x160xbf16, #tpu.memory_space<vmem>>, vector<128x160xbf16>
    %cst_8 = arith.constant dense<0.000000e+00> : vector<4x160xf32>
    %9 = tpu.matmul %1, %8, %cst_8 {dimension_numbers = #tpu.dot_dimension_numbers<[1], [0], [0], [1], [0, 0, 1, 1], [], []>} : vector<4x128xbf16>, vector<128x160xbf16>, vector<4x160xf32> -> vector<4x160xf32>
    %c0_9 = arith.constant 0 : index
    %c0_10 = arith.constant 0 : index
    %10 = vector.load %arg4[%c0_9, %c0_10] : memref<1x160xf32, #tpu.memory_space<vmem>>, vector<1x160xf32>
    %11 = vector.broadcast %10 : vector<1x160xf32> to vector<4x160xf32>
    %12 = arith.addf %9, %11 : vector<4x160xf32>
    %13 = arith.truncf %12 : vector<4x160xf32> to vector<4x160xbf16>
    %c0_11 = arith.constant 0 : index
    %c0_12 = arith.constant 0 : index
    %c0_13 = arith.constant 0 : index
    %14 = vector.load %arg5[%c0_11, %c0_12, %c0_13] : memref<3x8x4xbf16, #tpu.memory_space<vmem>>, vector<1x8x4xbf16>
    %15 = vector.shape_cast %14 : vector<1x8x4xbf16> to vector<8x4xbf16>
    %cst_14 = arith.constant dense<0.000000e+00> : vector<8x160xf32>
    %16 = tpu.matmul %15, %7, %cst_14 {dimension_numbers = #tpu.dot_dimension_numbers<[1], [0], [0], [1], [0, 0, 1, 1], [], []>} : vector<8x4xbf16>, vector<4x160xbf16>, vector<8x160xf32> -> vector<8x160xf32>
    %c0_15 = arith.constant 0 : index
    %c0_16 = arith.constant 0 : index
    %c0_17 = arith.constant 0 : index
    %17 = vector.load %arg6[%c0_15, %c0_16, %c0_17] : memref<3x8x4xbf16, #tpu.memory_space<vmem>>, vector<1x8x4xbf16>
    %18 = vector.shape_cast %17 : vector<1x8x4xbf16> to vector<8x4xbf16>
    %cst_18 = arith.constant dense<0.000000e+00> : vector<8x160xf32>
    %19 = tpu.matmul %18, %13, %cst_18 {dimension_numbers = #tpu.dot_dimension_numbers<[1], [0], [0], [1], [0, 0, 1, 1], [], []>} : vector<8x4xbf16>, vector<4x160xbf16>, vector<8x160xf32> -> vector<8x160xf32>
    %20 = arith.addf %16, %19 : vector<8x160xf32>
    %21 = arith.truncf %20 : vector<8x160xf32> to vector<8x160xbf16>
    %c0_19 = arith.constant 0 : index
    %c0_20 = arith.constant 0 : index
    %c0_21 = arith.constant 0 : index
    %22 = vector.load %arg8[%c0_19, %c0_20, %c0_21] : memref<3x160x128xbf16, #tpu.memory_space<vmem>>, vector<1x160x128xbf16>
    %23 = vector.shape_cast %22 : vector<1x160x128xbf16> to vector<160x128xbf16>
    %cst_22 = arith.constant dense<0.000000e+00> : vector<8x128xf32>
    %24 = tpu.matmul %21, %23, %cst_22 {dimension_numbers = #tpu.dot_dimension_numbers<[1], [0], [0], [1], [0, 0, 1, 1], [], []>} : vector<8x160xbf16>, vector<160x128xbf16>, vector<8x128xf32> -> vector<8x128xf32>
    %c0_23 = arith.constant 0 : index
    %c0_24 = arith.constant 0 : index
    %c0_25 = arith.constant 0 : index
    %25 = vector.load %arg7[%c0_23, %c0_24, %c0_25] : memref<1x10x160xbf16, #tpu.memory_space<vmem>>, vector<1x8x160xbf16>
    %26 = vector.shape_cast %25 : vector<1x8x160xbf16> to vector<8x160xbf16>
    %c0_26 = arith.constant 0 : index
    %c0_27 = arith.constant 0 : index
    %c0_28 = arith.constant 0 : index
    %27 = vector.load %arg9[%c0_26, %c0_27, %c0_28] : memref<3x160x128xbf16, #tpu.memory_space<vmem>>, vector<1x160x128xbf16>
    %28 = vector.shape_cast %27 : vector<1x160x128xbf16> to vector<160x128xbf16>
    %cst_29 = arith.constant dense<0.000000e+00> : vector<8x128xf32>
    %29 = tpu.matmul %26, %28, %cst_29 {dimension_numbers = #tpu.dot_dimension_numbers<[1], [0], [0], [1], [0, 0, 1, 1], [], []>} : vector<8x160xbf16>, vector<160x128xbf16>, vector<8x128xf32> -> vector<8x128xf32>
    %30 = arith.addf %24, %29 : vector<8x128xf32>
    %c1 = arith.constant 1 : index
    %c0_30 = arith.constant 0 : index
    %c0_31 = arith.constant 0 : index
    %31 = vector.load %arg5[%c1, %c0_30, %c0_31] : memref<3x8x4xbf16, #tpu.memory_space<vmem>>, vector<1x8x4xbf16>
    %32 = vector.shape_cast %31 : vector<1x8x4xbf16> to vector<8x4xbf16>
    %cst_32 = arith.constant dense<0.000000e+00> : vector<8x160xf32>
    %33 = tpu.matmul %32, %7, %cst_32 {dimension_numbers = #tpu.dot_dimension_numbers<[1], [0], [0], [1], [0, 0, 1, 1], [], []>} : vector<8x4xbf16>, vector<4x160xbf16>, vector<8x160xf32> -> vector<8x160xf32>
    %c1_33 = arith.constant 1 : index
    %c0_34 = arith.constant 0 : index
    %c0_35 = arith.constant 0 : index
    %34 = vector.load %arg6[%c1_33, %c0_34, %c0_35] : memref<3x8x4xbf16, #tpu.memory_space<vmem>>, vector<1x8x4xbf16>
    %35 = vector.shape_cast %34 : vector<1x8x4xbf16> to vector<8x4xbf16>
    %cst_36 = arith.constant dense<0.000000e+00> : vector<8x160xf32>
    %36 = tpu.matmul %35, %13, %cst_36 {dimension_numbers = #tpu.dot_dimension_numbers<[1], [0], [0], [1], [0, 0, 1, 1], [], []>} : vector<8x4xbf16>, vector<4x160xbf16>, vector<8x160xf32> -> vector<8x160xf32>
    %37 = arith.addf %33, %36 : vector<8x160xf32>
    %38 = arith.truncf %37 : vector<8x160xf32> to vector<8x160xbf16>
    %c1_37 = arith.constant 1 : index
    %c0_38 = arith.constant 0 : index
    %c0_39 = arith.constant 0 : index
    %39 = vector.load %arg8[%c1_37, %c0_38, %c0_39] : memref<3x160x128xbf16, #tpu.memory_space<vmem>>, vector<1x160x128xbf16>
    %40 = vector.shape_cast %39 : vector<1x160x128xbf16> to vector<160x128xbf16>
    %cst_40 = arith.constant dense<0.000000e+00> : vector<8x128xf32>
    %41 = tpu.matmul %38, %40, %cst_40 {dimension_numbers = #tpu.dot_dimension_numbers<[1], [0], [0], [1], [0, 0, 1, 1], [], []>} : vector<8x160xbf16>, vector<160x128xbf16>, vector<8x128xf32> -> vector<8x128xf32>
    %c0_41 = arith.constant 0 : index
    %c1_42 = arith.constant 1 : index
    %c0_43 = arith.constant 0 : index
    %42 = vector.load %arg7[%c0_41, %c1_42, %c0_43] : memref<1x10x160xbf16, #tpu.memory_space<vmem>>, vector<1x8x160xbf16>
    %43 = vector.shape_cast %42 : vector<1x8x160xbf16> to vector<8x160xbf16>
    %c1_44 = arith.constant 1 : index
    %c0_45 = arith.constant 0 : index
    %c0_46 = arith.constant 0 : index
    %44 = vector.load %arg9[%c1_44, %c0_45, %c0_46] : memref<3x160x128xbf16, #tpu.memory_space<vmem>>, vector<1x160x128xbf16>
    %45 = vector.shape_cast %44 : vector<1x160x128xbf16> to vector<160x128xbf16>
    %cst_47 = arith.constant dense<0.000000e+00> : vector<8x128xf32>
    %46 = tpu.matmul %43, %45, %cst_47 {dimension_numbers = #tpu.dot_dimension_numbers<[1], [0], [0], [1], [0, 0, 1, 1], [], []>} : vector<8x160xbf16>, vector<160x128xbf16>, vector<8x128xf32> -> vector<8x128xf32>
    %47 = arith.addf %41, %46 : vector<8x128xf32>
    %48 = arith.addf %30, %47 : vector<8x128xf32>
    %c2 = arith.constant 2 : index
    %c0_48 = arith.constant 0 : index
    %c0_49 = arith.constant 0 : index
    %49 = vector.load %arg5[%c2, %c0_48, %c0_49] : memref<3x8x4xbf16, #tpu.memory_space<vmem>>, vector<1x8x4xbf16>
    %50 = vector.shape_cast %49 : vector<1x8x4xbf16> to vector<8x4xbf16>
    %cst_50 = arith.constant dense<0.000000e+00> : vector<8x160xf32>
    %51 = tpu.matmul %50, %7, %cst_50 {dimension_numbers = #tpu.dot_dimension_numbers<[1], [0], [0], [1], [0, 0, 1, 1], [], []>} : vector<8x4xbf16>, vector<4x160xbf16>, vector<8x160xf32> -> vector<8x160xf32>
    %c2_51 = arith.constant 2 : index
    %c0_52 = arith.constant 0 : index
    %c0_53 = arith.constant 0 : index
    %52 = vector.load %arg6[%c2_51, %c0_52, %c0_53] : memref<3x8x4xbf16, #tpu.memory_space<vmem>>, vector<1x8x4xbf16>
    %53 = vector.shape_cast %52 : vector<1x8x4xbf16> to vector<8x4xbf16>
    %cst_54 = arith.constant dense<0.000000e+00> : vector<8x160xf32>
    %54 = tpu.matmul %53, %13, %cst_54 {dimension_numbers = #tpu.dot_dimension_numbers<[1], [0], [0], [1], [0, 0, 1, 1], [], []>} : vector<8x4xbf16>, vector<4x160xbf16>, vector<8x160xf32> -> vector<8x160xf32>
    %55 = arith.addf %51, %54 : vector<8x160xf32>
    %56 = arith.truncf %55 : vector<8x160xf32> to vector<8x160xbf16>
    %c2_55 = arith.constant 2 : index
    %c0_56 = arith.constant 0 : index
    %c0_57 = arith.constant 0 : index
    %57 = vector.load %arg8[%c2_55, %c0_56, %c0_57] : memref<3x160x128xbf16, #tpu.memory_space<vmem>>, vector<1x160x128xbf16>
    %58 = vector.shape_cast %57 : vector<1x160x128xbf16> to vector<160x128xbf16>
    %cst_58 = arith.constant dense<0.000000e+00> : vector<8x128xf32>
    %59 = tpu.matmul %56, %58, %cst_58 {dimension_numbers = #tpu.dot_dimension_numbers<[1], [0], [0], [1], [0, 0, 1, 1], [], []>} : vector<8x160xbf16>, vector<160x128xbf16>, vector<8x128xf32> -> vector<8x128xf32>
    %c0_59 = arith.constant 0 : index
    %c2_60 = arith.constant 2 : index
    %c0_61 = arith.constant 0 : index
    %60 = vector.load %arg7[%c0_59, %c2_60, %c0_61] : memref<1x10x160xbf16, #tpu.memory_space<vmem>>, vector<1x8x160xbf16>
    %61 = vector.shape_cast %60 : vector<1x8x160xbf16> to vector<8x160xbf16>
    %c2_62 = arith.constant 2 : index
    %c0_63 = arith.constant 0 : index
    %c0_64 = arith.constant 0 : index
    %62 = vector.load %arg9[%c2_62, %c0_63, %c0_64] : memref<3x160x128xbf16, #tpu.memory_space<vmem>>, vector<1x160x128xbf16>
    %63 = vector.shape_cast %62 : vector<1x160x128xbf16> to vector<160x128xbf16>
    %cst_65 = arith.constant dense<0.000000e+00> : vector<8x128xf32>
    %64 = tpu.matmul %61, %63, %cst_65 {dimension_numbers = #tpu.dot_dimension_numbers<[1], [0], [0], [1], [0, 0, 1, 1], [], []>} : vector<8x160xbf16>, vector<160x128xbf16>, vector<8x128xf32> -> vector<8x128xf32>
    %65 = arith.addf %59, %64 : vector<8x128xf32>
    %66 = arith.addf %48, %65 : vector<8x128xf32>
    %c0_66 = arith.constant 0 : index
    %c0_67 = arith.constant 0 : index
    %67 = vector.load %arg10[%c0_66, %c0_67] : memref<1x128xf32, #tpu.memory_space<vmem>>, vector<1x128xf32>
    %68 = vector.broadcast %67 : vector<1x128xf32> to vector<8x128xf32>
    %69 = arith.addf %66, %68 : vector<8x128xf32>
    %cst_68 = arith.constant 0.000000e+00 : f32
    %70 = vector.broadcast %cst_68 : f32 to vector<8x128xf32>
    %71 = arith.maximumf %69, %70 : vector<8x128xf32>
    %72 = arith.truncf %71 : vector<8x128xf32> to vector<8x128xbf16>
    %c0_69 = arith.constant 0 : index
    %c0_70 = arith.constant 0 : index
    %c0_71 = arith.constant 0 : index
    %73 = vector.load %arg11[%c0_69, %c0_70, %c0_71] : memref<1x8x128xbf16, #tpu.memory_space<vmem>>, vector<1x8x128xbf16>
    %74 = vector.shape_cast %73 : vector<1x8x128xbf16> to vector<8x128xbf16>
    %75 = vector.shape_cast %72 : vector<8x128xbf16> to vector<1x8x128xbf16>
    tpu.vector_store %arg11[%c0_69, %c0_70, %c0_71], %75 {strides = array<i32>} : memref<1x8x128xbf16, #tpu.memory_space<vmem>>, vector<1x8x128xbf16>,
    return
  }
  func.func @transform_0(%arg0: i32) -> (i32, i32, i32) {
    %c0_i32 = arith.constant 0 : i32
    %c0_i32_0 = arith.constant 0 : i32
    %c0_i32_1 = arith.constant 0 : i32
    return %arg0, %c0_i32, %c0_i32_0 : i32, i32, i32
  }
  func.func @transform_1(%arg0: i32) -> (i32, i32) {
    %c0_i32 = arith.constant 0 : i32
    %c0_i32_0 = arith.constant 0 : i32
    %c0_i32_1 = arith.constant 0 : i32
    return %c0_i32, %c0_i32_0 : i32, i32
  }
  func.func @transform_2(%arg0: i32) -> (i32, i32) {
    %c0_i32 = arith.constant 0 : i32
    %c0_i32_0 = arith.constant 0 : i32
    %c0_i32_1 = arith.constant 0 : i32
    return %c0_i32, %c0_i32_0 : i32, i32
  }
  func.func @transform_3(%arg0: i32) -> (i32, i32) {
    %c0_i32 = arith.constant 0 : i32
    %c0_i32_0 = arith.constant 0 : i32
    %c0_i32_1 = arith.constant 0 : i32
    return %c0_i32, %c0_i32_0 : i32, i32
  }
  func.func @transform_4(%arg0: i32) -> (i32, i32, i32) {
    %c0_i32 = arith.constant 0 : i32
    %c0_i32_0 = arith.constant 0 : i32
    %c0_i32_1 = arith.constant 0 : i32
    %c0_i32_2 = arith.constant 0 : i32
    return %c0_i32, %c0_i32_0, %c0_i32_1 : i32, i32, i32
  }
  func.func @transform_5(%arg0: i32) -> (i32, i32, i32) {
    %c0_i32 = arith.constant 0 : i32
    %c0_i32_0 = arith.constant 0 : i32
    %c0_i32_1 = arith.constant 0 : i32
    %c0_i32_2 = arith.constant 0 : i32
    return %c0_i32, %c0_i32_0, %c0_i32_1 : i32, i32, i32
  }
  func.func @transform_6(%arg0: i32) -> (i32, i32, i32) {
    %c0_i32 = arith.constant 0 : i32
    %c0_i32_0 = arith.constant 0 : i32
    %c0_i32_1 = arith.constant 0 : i32
    return %arg0, %c0_i32, %c0_i32_0 : i32, i32, i32
  }
  func.func @transform_7(%arg0: i32) -> (i32, i32, i32) {
    %c0_i32 = arith.constant 0 : i32
    %c0_i32_0 = arith.constant 0 : i32
    %c0_i32_1 = arith.constant 0 : i32
    %c0_i32_2 = arith.constant 0 : i32
    return %c0_i32, %c0_i32_0, %c0_i32_1 : i32, i32, i32
  }
  func.func @transform_8(%arg0: i32) -> (i32, i32, i32) {
    %c0_i32 = arith.constant 0 : i32
    %c0_i32_0 = arith.constant 0 : i32
    %c0_i32_1 = arith.constant 0 : i32
    %c0_i32_2 = arith.constant 0 : i32
    return %c0_i32, %c0_i32_0, %c0_i32_1 : i32, i32, i32
  }
  func.func @transform_9(%arg0: i32) -> (i32, i32) {
    %c0_i32 = arith.constant 0 : i32
    %c0_i32_0 = arith.constant 0 : i32
    %c0_i32_1 = arith.constant 0 : i32
    return %c0_i32, %c0_i32_0 : i32, i32
  }
  func.func @transform_10(%arg0: i32) -> (i32, i32, i32) {
    %c0_i32 = arith.constant 0 : i32
    %c0_i32_0 = arith.constant 0 : i32
    %c0_i32_1 = arith.constant 0 : i32
    return %arg0, %c0_i32, %c0_i32_0 : i32, i32, i32
  }
}

module attributes {stable_mosaic.version = 11 : i64} {
  func.func @_bottom_kernel(%arg0: i32, %arg1: memref<1x128x16xbf16, #tpu.memory_space<vmem>>, %arg2: memref<32x128xbf16, #tpu.memory_space<vmem>>, %arg3: memref<32x1xf32, #tpu.memory_space<vmem>>, %arg4: memref<1x32x16xf32, #tpu.memory_space<vmem>>) attributes {dimension_semantics = [#tpu.dimension_semantics<parallel>], iteration_bounds = array<i64: 2>, scalar_prefetch = 0 : i64, scratch_operands = 0 : i64, tpu.core_type = #tpu.core_type<tc>, window_params = [{transform_indices = @transform_0, window_bounds = array<i64: 1, 128, 16>}, {pipeline_mode = #tpu.pipeline_mode<synchronous>, transform_indices = @transform_1, window_bounds = array<i64: 32, 128>}, {pipeline_mode = #tpu.pipeline_mode<synchronous>, transform_indices = @transform_2, window_bounds = array<i64: 32, 1>}, {transform_indices = @transform_3, window_bounds = array<i64: 1, 32, 16>}]} {
    %c0 = arith.constant 0 : index
    %c0_0 = arith.constant 0 : index
    %0 = vector.load %arg2[%c0, %c0_0] : memref<32x128xbf16, #tpu.memory_space<vmem>>, vector<32x128xbf16>
    %c0_1 = arith.constant 0 : index
    %c0_2 = arith.constant 0 : index
    %c0_3 = arith.constant 0 : index
    %1 = vector.load %arg1[%c0_1, %c0_2, %c0_3] : memref<1x128x16xbf16, #tpu.memory_space<vmem>>, vector<1x128x16xbf16>
    %2 = vector.shape_cast %1 : vector<1x128x16xbf16> to vector<128x16xbf16>
    %cst = arith.constant dense<0.000000e+00> : vector<32x16xf32>
    %3 = tpu.matmul %0, %2, %cst {dimension_numbers = #tpu.dot_dimension_numbers<[1], [0], [0], [1], [0, 0, 1, 1], [], []>} : vector<32x128xbf16>, vector<128x16xbf16>, vector<32x16xf32> -> vector<32x16xf32>
    %c0_4 = arith.constant 0 : index
    %c0_5 = arith.constant 0 : index
    %4 = vector.load %arg3[%c0_4, %c0_5] : memref<32x1xf32, #tpu.memory_space<vmem>>, vector<32x1xf32>
    %5 = vector.broadcast %4 : vector<32x1xf32> to vector<32x16xf32>
    %6 = arith.addf %3, %5 : vector<32x16xf32>
    %c0_6 = arith.constant 0 : index
    %c0_7 = arith.constant 0 : index
    %c0_8 = arith.constant 0 : index
    %7 = vector.load %arg4[%c0_6, %c0_7, %c0_8] : memref<1x32x16xf32, #tpu.memory_space<vmem>>, vector<1x32x16xf32>
    %8 = vector.shape_cast %7 : vector<1x32x16xf32> to vector<32x16xf32>
    %9 = vector.shape_cast %6 : vector<32x16xf32> to vector<1x32x16xf32>
    tpu.vector_store %arg4[%c0_6, %c0_7, %c0_8], %9 {strides = array<i32>} : memref<1x32x16xf32, #tpu.memory_space<vmem>>, vector<1x32x16xf32>,
    return
  }
  func.func @transform_0(%arg0: i32) -> (i32, i32, i32) {
    %c0_i32 = arith.constant 0 : i32
    %c0_i32_0 = arith.constant 0 : i32
    %c0_i32_1 = arith.constant 0 : i32
    return %arg0, %c0_i32, %c0_i32_0 : i32, i32, i32
  }
  func.func @transform_1(%arg0: i32) -> (i32, i32) {
    %c0_i32 = arith.constant 0 : i32
    %c0_i32_0 = arith.constant 0 : i32
    %c0_i32_1 = arith.constant 0 : i32
    return %c0_i32, %c0_i32_0 : i32, i32
  }
  func.func @transform_2(%arg0: i32) -> (i32, i32) {
    %c0_i32 = arith.constant 0 : i32
    %c0_i32_0 = arith.constant 0 : i32
    %c0_i32_1 = arith.constant 0 : i32
    return %c0_i32, %c0_i32_0 : i32, i32
  }
  func.func @transform_3(%arg0: i32) -> (i32, i32, i32) {
    %c0_i32 = arith.constant 0 : i32
    %c0_i32_0 = arith.constant 0 : i32
    %c0_i32_1 = arith.constant 0 : i32
    return %arg0, %c0_i32, %c0_i32_0 : i32, i32, i32
  }
}

module attributes {stable_mosaic.version = 11 : i64} {
  func.func @_decoder_kernel(%arg0: i32, %arg1: memref<1x8x128xbf16, #tpu.memory_space<vmem>>, %arg2: memref<128x144xbf16, #tpu.memory_space<vmem>>, %arg3: memref<128x144xbf16, #tpu.memory_space<vmem>>, %arg4: memref<1x144xf32, #tpu.memory_space<vmem>>, %arg5: memref<3x16x8xbf16, #tpu.memory_space<vmem>>, %arg6: memref<3x16x8xbf16, #tpu.memory_space<vmem>>, %arg7: memref<1x18x144xbf16, #tpu.memory_space<vmem>>, %arg8: memref<3x144x128xbf16, #tpu.memory_space<vmem>>, %arg9: memref<3x144x128xbf16, #tpu.memory_space<vmem>>, %arg10: memref<1x128xf32, #tpu.memory_space<vmem>>, %arg11: memref<1x16x128xbf16, #tpu.memory_space<vmem>>) attributes {dimension_semantics = [#tpu.dimension_semantics<parallel>], iteration_bounds = array<i64: 2>, scalar_prefetch = 0 : i64, scratch_operands = 0 : i64, tpu.core_type = #tpu.core_type<tc>, window_params = [{transform_indices = @transform_0, window_bounds = array<i64: 1, 8, 128>}, {pipeline_mode = #tpu.pipeline_mode<synchronous>, transform_indices = @transform_1, window_bounds = array<i64: 128, 144>}, {pipeline_mode = #tpu.pipeline_mode<synchronous>, transform_indices = @transform_2, window_bounds = array<i64: 128, 144>}, {pipeline_mode = #tpu.pipeline_mode<synchronous>, transform_indices = @transform_3, window_bounds = array<i64: 1, 144>}, {pipeline_mode = #tpu.pipeline_mode<synchronous>, transform_indices = @transform_4, window_bounds = array<i64: 3, 16, 8>}, {pipeline_mode = #tpu.pipeline_mode<synchronous>, transform_indices = @transform_5, window_bounds = array<i64: 3, 16, 8>}, {transform_indices = @transform_6, window_bounds = array<i64: 1, 18, 144>}, {pipeline_mode = #tpu.pipeline_mode<synchronous>, transform_indices = @transform_7, window_bounds = array<i64: 3, 144, 128>}, {pipeline_mode = #tpu.pipeline_mode<synchronous>, transform_indices = @transform_8, window_bounds = array<i64: 3, 144, 128>}, {pipeline_mode = #tpu.pipeline_mode<synchronous>, transform_indices = @transform_9, window_bounds = array<i64: 1, 128>}, {transform_indices = @transform_10, window_bounds = array<i64: 1, 16, 128>}]} {
    %c0 = arith.constant 0 : index
    %c0_0 = arith.constant 0 : index
    %c0_1 = arith.constant 0 : index
    %0 = vector.load %arg1[%c0, %c0_0, %c0_1] : memref<1x8x128xbf16, #tpu.memory_space<vmem>>, vector<1x8x128xbf16>
    %1 = vector.shape_cast %0 : vector<1x8x128xbf16> to vector<8x128xbf16>
    %c0_2 = arith.constant 0 : index
    %c0_3 = arith.constant 0 : index
    %2 = vector.load %arg2[%c0_2, %c0_3] : memref<128x144xbf16, #tpu.memory_space<vmem>>, vector<128x144xbf16>
    %cst = arith.constant dense<0.000000e+00> : vector<8x144xf32>
    %3 = tpu.matmul %1, %2, %cst {dimension_numbers = #tpu.dot_dimension_numbers<[1], [0], [0], [1], [0, 0, 1, 1], [], []>} : vector<8x128xbf16>, vector<128x144xbf16>, vector<8x144xf32> -> vector<8x144xf32>
    %c0_4 = arith.constant 0 : index
    %c0_5 = arith.constant 0 : index
    %4 = vector.load %arg4[%c0_4, %c0_5] : memref<1x144xf32, #tpu.memory_space<vmem>>, vector<1x144xf32>
    %5 = vector.broadcast %4 : vector<1x144xf32> to vector<8x144xf32>
    %6 = arith.addf %3, %5 : vector<8x144xf32>
    %7 = arith.truncf %6 : vector<8x144xf32> to vector<8x144xbf16>
    %c0_6 = arith.constant 0 : index
    %c0_7 = arith.constant 0 : index
    %8 = vector.load %arg3[%c0_6, %c0_7] : memref<128x144xbf16, #tpu.memory_space<vmem>>, vector<128x144xbf16>
    %cst_8 = arith.constant dense<0.000000e+00> : vector<8x144xf32>
    %9 = tpu.matmul %1, %8, %cst_8 {dimension_numbers = #tpu.dot_dimension_numbers<[1], [0], [0], [1], [0, 0, 1, 1], [], []>} : vector<8x128xbf16>, vector<128x144xbf16>, vector<8x144xf32> -> vector<8x144xf32>
    %c0_9 = arith.constant 0 : index
    %c0_10 = arith.constant 0 : index
    %10 = vector.load %arg4[%c0_9, %c0_10] : memref<1x144xf32, #tpu.memory_space<vmem>>, vector<1x144xf32>
    %11 = vector.broadcast %10 : vector<1x144xf32> to vector<8x144xf32>
    %12 = arith.addf %9, %11 : vector<8x144xf32>
    %13 = arith.truncf %12 : vector<8x144xf32> to vector<8x144xbf16>
    %c0_11 = arith.constant 0 : index
    %c0_12 = arith.constant 0 : index
    %c0_13 = arith.constant 0 : index
    %14 = vector.load %arg5[%c0_11, %c0_12, %c0_13] : memref<3x16x8xbf16, #tpu.memory_space<vmem>>, vector<1x16x8xbf16>
    %15 = vector.shape_cast %14 : vector<1x16x8xbf16> to vector<16x8xbf16>
    %cst_14 = arith.constant dense<0.000000e+00> : vector<16x144xf32>
    %16 = tpu.matmul %15, %7, %cst_14 {dimension_numbers = #tpu.dot_dimension_numbers<[1], [0], [0], [1], [0, 0, 1, 1], [], []>} : vector<16x8xbf16>, vector<8x144xbf16>, vector<16x144xf32> -> vector<16x144xf32>
    %c0_15 = arith.constant 0 : index
    %c0_16 = arith.constant 0 : index
    %c0_17 = arith.constant 0 : index
    %17 = vector.load %arg6[%c0_15, %c0_16, %c0_17] : memref<3x16x8xbf16, #tpu.memory_space<vmem>>, vector<1x16x8xbf16>
    %18 = vector.shape_cast %17 : vector<1x16x8xbf16> to vector<16x8xbf16>
    %cst_18 = arith.constant dense<0.000000e+00> : vector<16x144xf32>
    %19 = tpu.matmul %18, %13, %cst_18 {dimension_numbers = #tpu.dot_dimension_numbers<[1], [0], [0], [1], [0, 0, 1, 1], [], []>} : vector<16x8xbf16>, vector<8x144xbf16>, vector<16x144xf32> -> vector<16x144xf32>
    %20 = arith.addf %16, %19 : vector<16x144xf32>
    %21 = arith.truncf %20 : vector<16x144xf32> to vector<16x144xbf16>
    %c0_19 = arith.constant 0 : index
    %c0_20 = arith.constant 0 : index
    %c0_21 = arith.constant 0 : index
    %22 = vector.load %arg8[%c0_19, %c0_20, %c0_21] : memref<3x144x128xbf16, #tpu.memory_space<vmem>>, vector<1x144x128xbf16>
    %23 = vector.shape_cast %22 : vector<1x144x128xbf16> to vector<144x128xbf16>
    %cst_22 = arith.constant dense<0.000000e+00> : vector<16x128xf32>
    %24 = tpu.matmul %21, %23, %cst_22 {dimension_numbers = #tpu.dot_dimension_numbers<[1], [0], [0], [1], [0, 0, 1, 1], [], []>} : vector<16x144xbf16>, vector<144x128xbf16>, vector<16x128xf32> -> vector<16x128xf32>
    %c0_23 = arith.constant 0 : index
    %c0_24 = arith.constant 0 : index
    %c0_25 = arith.constant 0 : index
    %25 = vector.load %arg7[%c0_23, %c0_24, %c0_25] : memref<1x18x144xbf16, #tpu.memory_space<vmem>>, vector<1x16x144xbf16>
    %26 = vector.shape_cast %25 : vector<1x16x144xbf16> to vector<16x144xbf16>
    %c0_26 = arith.constant 0 : index
    %c0_27 = arith.constant 0 : index
    %c0_28 = arith.constant 0 : index
    %27 = vector.load %arg9[%c0_26, %c0_27, %c0_28] : memref<3x144x128xbf16, #tpu.memory_space<vmem>>, vector<1x144x128xbf16>
    %28 = vector.shape_cast %27 : vector<1x144x128xbf16> to vector<144x128xbf16>
    %cst_29 = arith.constant dense<0.000000e+00> : vector<16x128xf32>
    %29 = tpu.matmul %26, %28, %cst_29 {dimension_numbers = #tpu.dot_dimension_numbers<[1], [0], [0], [1], [0, 0, 1, 1], [], []>} : vector<16x144xbf16>, vector<144x128xbf16>, vector<16x128xf32> -> vector<16x128xf32>
    %30 = arith.addf %24, %29 : vector<16x128xf32>
    %c1 = arith.constant 1 : index
    %c0_30 = arith.constant 0 : index
    %c0_31 = arith.constant 0 : index
    %31 = vector.load %arg5[%c1, %c0_30, %c0_31] : memref<3x16x8xbf16, #tpu.memory_space<vmem>>, vector<1x16x8xbf16>
    %32 = vector.shape_cast %31 : vector<1x16x8xbf16> to vector<16x8xbf16>
    %cst_32 = arith.constant dense<0.000000e+00> : vector<16x144xf32>
    %33 = tpu.matmul %32, %7, %cst_32 {dimension_numbers = #tpu.dot_dimension_numbers<[1], [0], [0], [1], [0, 0, 1, 1], [], []>} : vector<16x8xbf16>, vector<8x144xbf16>, vector<16x144xf32> -> vector<16x144xf32>
    %c1_33 = arith.constant 1 : index
    %c0_34 = arith.constant 0 : index
    %c0_35 = arith.constant 0 : index
    %34 = vector.load %arg6[%c1_33, %c0_34, %c0_35] : memref<3x16x8xbf16, #tpu.memory_space<vmem>>, vector<1x16x8xbf16>
    %35 = vector.shape_cast %34 : vector<1x16x8xbf16> to vector<16x8xbf16>
    %cst_36 = arith.constant dense<0.000000e+00> : vector<16x144xf32>
    %36 = tpu.matmul %35, %13, %cst_36 {dimension_numbers = #tpu.dot_dimension_numbers<[1], [0], [0], [1], [0, 0, 1, 1], [], []>} : vector<16x8xbf16>, vector<8x144xbf16>, vector<16x144xf32> -> vector<16x144xf32>
    %37 = arith.addf %33, %36 : vector<16x144xf32>
    %38 = arith.truncf %37 : vector<16x144xf32> to vector<16x144xbf16>
    %c1_37 = arith.constant 1 : index
    %c0_38 = arith.constant 0 : index
    %c0_39 = arith.constant 0 : index
    %39 = vector.load %arg8[%c1_37, %c0_38, %c0_39] : memref<3x144x128xbf16, #tpu.memory_space<vmem>>, vector<1x144x128xbf16>
    %40 = vector.shape_cast %39 : vector<1x144x128xbf16> to vector<144x128xbf16>
    %cst_40 = arith.constant dense<0.000000e+00> : vector<16x128xf32>
    %41 = tpu.matmul %38, %40, %cst_40 {dimension_numbers = #tpu.dot_dimension_numbers<[1], [0], [0], [1], [0, 0, 1, 1], [], []>} : vector<16x144xbf16>, vector<144x128xbf16>, vector<16x128xf32> -> vector<16x128xf32>
    %c0_41 = arith.constant 0 : index
    %c1_42 = arith.constant 1 : index
    %c0_43 = arith.constant 0 : index
    %42 = vector.load %arg7[%c0_41, %c1_42, %c0_43] : memref<1x18x144xbf16, #tpu.memory_space<vmem>>, vector<1x16x144xbf16>
    %43 = vector.shape_cast %42 : vector<1x16x144xbf16> to vector<16x144xbf16>
    %c1_44 = arith.constant 1 : index
    %c0_45 = arith.constant 0 : index
    %c0_46 = arith.constant 0 : index
    %44 = vector.load %arg9[%c1_44, %c0_45, %c0_46] : memref<3x144x128xbf16, #tpu.memory_space<vmem>>, vector<1x144x128xbf16>
    %45 = vector.shape_cast %44 : vector<1x144x128xbf16> to vector<144x128xbf16>
    %cst_47 = arith.constant dense<0.000000e+00> : vector<16x128xf32>
    %46 = tpu.matmul %43, %45, %cst_47 {dimension_numbers = #tpu.dot_dimension_numbers<[1], [0], [0], [1], [0, 0, 1, 1], [], []>} : vector<16x144xbf16>, vector<144x128xbf16>, vector<16x128xf32> -> vector<16x128xf32>
    %47 = arith.addf %41, %46 : vector<16x128xf32>
    %48 = arith.addf %30, %47 : vector<16x128xf32>
    %c2 = arith.constant 2 : index
    %c0_48 = arith.constant 0 : index
    %c0_49 = arith.constant 0 : index
    %49 = vector.load %arg5[%c2, %c0_48, %c0_49] : memref<3x16x8xbf16, #tpu.memory_space<vmem>>, vector<1x16x8xbf16>
    %50 = vector.shape_cast %49 : vector<1x16x8xbf16> to vector<16x8xbf16>
    %cst_50 = arith.constant dense<0.000000e+00> : vector<16x144xf32>
    %51 = tpu.matmul %50, %7, %cst_50 {dimension_numbers = #tpu.dot_dimension_numbers<[1], [0], [0], [1], [0, 0, 1, 1], [], []>} : vector<16x8xbf16>, vector<8x144xbf16>, vector<16x144xf32> -> vector<16x144xf32>
    %c2_51 = arith.constant 2 : index
    %c0_52 = arith.constant 0 : index
    %c0_53 = arith.constant 0 : index
    %52 = vector.load %arg6[%c2_51, %c0_52, %c0_53] : memref<3x16x8xbf16, #tpu.memory_space<vmem>>, vector<1x16x8xbf16>
    %53 = vector.shape_cast %52 : vector<1x16x8xbf16> to vector<16x8xbf16>
    %cst_54 = arith.constant dense<0.000000e+00> : vector<16x144xf32>
    %54 = tpu.matmul %53, %13, %cst_54 {dimension_numbers = #tpu.dot_dimension_numbers<[1], [0], [0], [1], [0, 0, 1, 1], [], []>} : vector<16x8xbf16>, vector<8x144xbf16>, vector<16x144xf32> -> vector<16x144xf32>
    %55 = arith.addf %51, %54 : vector<16x144xf32>
    %56 = arith.truncf %55 : vector<16x144xf32> to vector<16x144xbf16>
    %c2_55 = arith.constant 2 : index
    %c0_56 = arith.constant 0 : index
    %c0_57 = arith.constant 0 : index
    %57 = vector.load %arg8[%c2_55, %c0_56, %c0_57] : memref<3x144x128xbf16, #tpu.memory_space<vmem>>, vector<1x144x128xbf16>
    %58 = vector.shape_cast %57 : vector<1x144x128xbf16> to vector<144x128xbf16>
    %cst_58 = arith.constant dense<0.000000e+00> : vector<16x128xf32>
    %59 = tpu.matmul %56, %58, %cst_58 {dimension_numbers = #tpu.dot_dimension_numbers<[1], [0], [0], [1], [0, 0, 1, 1], [], []>} : vector<16x144xbf16>, vector<144x128xbf16>, vector<16x128xf32> -> vector<16x128xf32>
    %c0_59 = arith.constant 0 : index
    %c2_60 = arith.constant 2 : index
    %c0_61 = arith.constant 0 : index
    %60 = vector.load %arg7[%c0_59, %c2_60, %c0_61] : memref<1x18x144xbf16, #tpu.memory_space<vmem>>, vector<1x16x144xbf16>
    %61 = vector.shape_cast %60 : vector<1x16x144xbf16> to vector<16x144xbf16>
    %c2_62 = arith.constant 2 : index
    %c0_63 = arith.constant 0 : index
    %c0_64 = arith.constant 0 : index
    %62 = vector.load %arg9[%c2_62, %c0_63, %c0_64] : memref<3x144x128xbf16, #tpu.memory_space<vmem>>, vector<1x144x128xbf16>
    %63 = vector.shape_cast %62 : vector<1x144x128xbf16> to vector<144x128xbf16>
    %cst_65 = arith.constant dense<0.000000e+00> : vector<16x128xf32>
    %64 = tpu.matmul %61, %63, %cst_65 {dimension_numbers = #tpu.dot_dimension_numbers<[1], [0], [0], [1], [0, 0, 1, 1], [], []>} : vector<16x144xbf16>, vector<144x128xbf16>, vector<16x128xf32> -> vector<16x128xf32>
    %65 = arith.addf %59, %64 : vector<16x128xf32>
    %66 = arith.addf %48, %65 : vector<16x128xf32>
    %c0_66 = arith.constant 0 : index
    %c0_67 = arith.constant 0 : index
    %67 = vector.load %arg10[%c0_66, %c0_67] : memref<1x128xf32, #tpu.memory_space<vmem>>, vector<1x128xf32>
    %68 = vector.broadcast %67 : vector<1x128xf32> to vector<16x128xf32>
    %69 = arith.addf %66, %68 : vector<16x128xf32>
    %cst_68 = arith.constant 0.000000e+00 : f32
    %70 = vector.broadcast %cst_68 : f32 to vector<16x128xf32>
    %71 = arith.maximumf %69, %70 : vector<16x128xf32>
    %72 = arith.truncf %71 : vector<16x128xf32> to vector<16x128xbf16>
    %c0_69 = arith.constant 0 : index
    %c0_70 = arith.constant 0 : index
    %c0_71 = arith.constant 0 : index
    %73 = vector.load %arg11[%c0_69, %c0_70, %c0_71] : memref<1x16x128xbf16, #tpu.memory_space<vmem>>, vector<1x16x128xbf16>
    %74 = vector.shape_cast %73 : vector<1x16x128xbf16> to vector<16x128xbf16>
    %75 = vector.shape_cast %72 : vector<16x128xbf16> to vector<1x16x128xbf16>
    tpu.vector_store %arg11[%c0_69, %c0_70, %c0_71], %75 {strides = array<i32>} : memref<1x16x128xbf16, #tpu.memory_space<vmem>>, vector<1x16x128xbf16>,
    return
  }
  func.func @transform_0(%arg0: i32) -> (i32, i32, i32) {
    %c0_i32 = arith.constant 0 : i32
    %c0_i32_0 = arith.constant 0 : i32
    %c0_i32_1 = arith.constant 0 : i32
    return %arg0, %c0_i32, %c0_i32_0 : i32, i32, i32
  }
  func.func @transform_1(%arg0: i32) -> (i32, i32) {
    %c0_i32 = arith.constant 0 : i32
    %c0_i32_0 = arith.constant 0 : i32
    %c0_i32_1 = arith.constant 0 : i32
    return %c0_i32, %c0_i32_0 : i32, i32
  }
  func.func @transform_2(%arg0: i32) -> (i32, i32) {
    %c0_i32 = arith.constant 0 : i32
    %c0_i32_0 = arith.constant 0 : i32
    %c0_i32_1 = arith.constant 0 : i32
    return %c0_i32, %c0_i32_0 : i32, i32
  }
  func.func @transform_3(%arg0: i32) -> (i32, i32) {
    %c0_i32 = arith.constant 0 : i32
    %c0_i32_0 = arith.constant 0 : i32
    %c0_i32_1 = arith.constant 0 : i32
    return %c0_i32, %c0_i32_0 : i32, i32
  }
  func.func @transform_4(%arg0: i32) -> (i32, i32, i32) {
    %c0_i32 = arith.constant 0 : i32
    %c0_i32_0 = arith.constant 0 : i32
    %c0_i32_1 = arith.constant 0 : i32
    %c0_i32_2 = arith.constant 0 : i32
    return %c0_i32, %c0_i32_0, %c0_i32_1 : i32, i32, i32
  }
  func.func @transform_5(%arg0: i32) -> (i32, i32, i32) {
    %c0_i32 = arith.constant 0 : i32
    %c0_i32_0 = arith.constant 0 : i32
    %c0_i32_1 = arith.constant 0 : i32
    %c0_i32_2 = arith.constant 0 : i32
    return %c0_i32, %c0_i32_0, %c0_i32_1 : i32, i32, i32
  }
  func.func @transform_6(%arg0: i32) -> (i32, i32, i32) {
    %c0_i32 = arith.constant 0 : i32
    %c0_i32_0 = arith.constant 0 : i32
    %c0_i32_1 = arith.constant 0 : i32
    return %arg0, %c0_i32, %c0_i32_0 : i32, i32, i32
  }
  func.func @transform_7(%arg0: i32) -> (i32, i32, i32) {
    %c0_i32 = arith.constant 0 : i32
    %c0_i32_0 = arith.constant 0 : i32
    %c0_i32_1 = arith.constant 0 : i32
    %c0_i32_2 = arith.constant 0 : i32
    return %c0_i32, %c0_i32_0, %c0_i32_1 : i32, i32, i32
  }
  func.func @transform_8(%arg0: i32) -> (i32, i32, i32) {
    %c0_i32 = arith.constant 0 : i32
    %c0_i32_0 = arith.constant 0 : i32
    %c0_i32_1 = arith.constant 0 : i32
    %c0_i32_2 = arith.constant 0 : i32
    return %c0_i32, %c0_i32_0, %c0_i32_1 : i32, i32, i32
  }
  func.func @transform_9(%arg0: i32) -> (i32, i32) {
    %c0_i32 = arith.constant 0 : i32
    %c0_i32_0 = arith.constant 0 : i32
    %c0_i32_1 = arith.constant 0 : i32
    return %c0_i32, %c0_i32_0 : i32, i32
  }
  func.func @transform_10(%arg0: i32) -> (i32, i32, i32) {
    %c0_i32 = arith.constant 0 : i32
    %c0_i32_0 = arith.constant 0 : i32
    %c0_i32_1 = arith.constant 0 : i32
    return %arg0, %c0_i32, %c0_i32_0 : i32, i32, i32
  }
}

</mosaic_0001>

<bundles_post_ra>
// kernel: rep_unet_forward.8
= control target key start
LH: loop header
LB: loop body
LE: loop exit
PB: predicated region body
PF: predicated region fallthrough
CT: control target
= control target key end

     0   :  { %s711_s12 = smov 0   ;;  %s821_s0 = inlined_call_operand.vmem [shape: bf16[2,6,96], index: 0, kind: input, shape index: {}]   ;;  %s822_s1 = inlined_call_operand.vmem [shape: bf16[3,96,128], index: 1, kind: input, shape index: {}]   ;;  %s823_s2 = inlined_call_operand.vmem [shape: f32[1,128], index: 2, kind: input, shape index: {}]   ;;  %s824_s3 = inlined_call_operand.vmem [shape: bf16[2,4,128], index: 3, kind: output, shape index: {}]  }
   0x1 LB: > { %s525_s13 = sadd.s32 4294967295, %s687_s12   ;;  %p529_p0 = scmp.ge.s32.totalorder %s687_s12, 1  ;;  %s687_s12 = sphi %s711_s12, %s13_s12  }
   0x2   : > { %p136_p1 = scmp.lt.s32.totalorder %s687_s12, 3 }
   0x4   : > { %p137_p2 = pnand %p529_p0, %p136_p1 }
   0x5   : > { %p158_p3 = scmp.lt.s32.totalorder (!%p137_p2), %s525_s13, 1 }
   0x6   : > { %140 = sbr.rel (%p137_p2) target bundleno = 262 (0x106), region = 32 }
   0xb   : > { %v661_v0 = vld [vmem:[%s822_s1 + $0x58] sm:$0xff]   ;;  %v689_v1 = vmov 0.0   ;;  %v662_v2 = vld [vmem:[%s822_s1 + $0x28] sm:$0xff]   ;;  %v663_v3 = vld [vmem:[%s822_s1 + $0x50] sm:$0xff]   ;;  %vm690_vm0 = vmmov 0   ;;  %s826_s13 = smov (!%p158_p3, %s525_s13), 1 }
   0xc   : > { %603 = vmatprep.subr.bf16.mxu0 %v689_v1  ;;  %619 = vmatprep.subr.bf16.mxu1 %v689_v1  ;;  %v664_v4 = vld [vmem:[%s822_s1 + $0x20] sm:$0xff]   ;;  %v665_v5 = vld [vmem:[%s822_s1 + $0x48] sm:$0xff]   ;;  %s530_s24 = sshll.u32 %s826_s13, 2  ;;  %v666_v6 = vld [vmem:[%s822_s1 + $0x18] sm:$0xff]   ;;  %vm240_vm1 = vcmask 785408   ;;  %s531_s4 = sshll.u32 %s826_s13, 1 }
   0xd   : > { %604 = vmatpush3.bf16.msra.mxu0 %v661_v0  ;;  %615 = vmatprep.mubr.msk.bf16.mxu0 %vm690_vm0, %v689_v1  ;;  %s753_s29 = scalar_lea.vmem %s821_s0, %s530_s24  ;;  %v667_v7 = vld [vmem:[%s822_s1 + $0x40] sm:$0xff]   ;;  %v668_v8 = vld [vmem:[%s822_s1 + $0x10] sm:$0xff]   ;;  %v669_v10 = vld [vmem:[%s822_s1 + $0x38] sm:$0xff]   ;;  %s165_s7 = scalar_lea.vmem %s824_s3, %s531_s4 }
   0xe   : > { %620 = vmatpush3.bf16.msra.mxu1 %v662_v2  ;;  %605 = vmatprep.subr.bf16.mxu0 %v689_v1  ;;  %v673_v9 = vld [vmem:[%s753_s29] ss:$0 sps:$4 sm:$0x77]   ;;  %v670_v12 = vld [vmem:[%s822_s1 + $0x8] sm:$0xff]   ;;  %v671_v15 = vld [vmem:[%s822_s1 + $0x30] sm:$0xff]  }
   0xf   : > { %621 = vmatprep.subr.bf16.mxu1 %v689_v1  ;;  %631 = vmatprep.mubr.msk.bf16.mxu1 %vm690_vm0, %v689_v1  ;;  %v200_v11 = vshll.u32 %v673_v9, 16  ;;  %v198_v13 = vshrl.u32 %v673_v9, 16  ;;  %v672_v16 = vld [vmem:[%s822_s1] sm:$0xff]   ;;  %v674_v18 = vld [vmem:[%s822_s1 + $0x88] sm:$0xff]   ;;  %v676_v21 = vld [vmem:[%s822_s1 + $0x78] sm:$0xff]  }
  0x10   : > { %v167_v19 = vld [vmem:[%s753_s29] sm:$0x3]  ;;  %v677_v22 = vld [vmem:[%s822_s1 + $0x70] sm:$0xff]   ;;  %v678_v23 = vld [vmem:[%s822_s1 + $0x68] sm:$0xff]  }
  0x11   : > { %606 = vmatpush3.bf16.msra.mxu0 %v663_v3  ;;  %v202_v14 = vrot.slane %v200_v11, 1  ;;  %v675_v20 = vld [vmem:[%s822_s1 + $0x80] sm:$0xff]  }
  0x12   : > { %622 = vmatpush3.bf16.msra.mxu1 %v664_v4  ;;  %607 = vmatprep.subr.bf16.mxu0 %v689_v1  ;;  %v680_v24 = vld [vmem:[%s753_s29] ss:$0 sps:$4 sm:$0x66]  }
  0x13   : > { %623 = vmatprep.subr.bf16.mxu1 %v689_v1  ;;  %v203_v17 = vor.u32 %v202_v14, %v198_v13  ;;  %v679_v25 = vld [vmem:[%s822_s1 + $0x60] sm:$0xff]   ;;  %v380_v26 = vrot.slane %v680_v24, 1 }
  0x14   : > { %v579_v37 = vld [vmem:[%s823_s2] ss:$0 sm:$0xff] }
  0x15   : > { %608 = vmatpush3.bf16.msra.mxu0 %v665_v5 }
  0x16   : > { %624 = vmatpush3.bf16.msra.mxu1 %v666_v6  ;;  %609 = vmatprep.subr.bf16.mxu0 %v689_v1 }
  0x17   : > { %625 = vmatprep.subr.bf16.mxu1 %v689_v1 }
  0x19   : > { %610 = vmatpush3.bf16.msra.mxu0 %v667_v7 }
  0x1a   : > { %626 = vmatpush3.bf16.msra.mxu1 %v668_v8  ;;  %611 = vmatprep.subr.bf16.mxu0 %v689_v1 }
  0x1b   : > { %627 = vmatprep.subr.bf16.mxu1 %v689_v1 }
  0x1d   : > { %612 = vmatpush3.bf16.msra.mxu0 %v669_v10 }
  0x1e   : > { %628 = vmatpush3.bf16.msra.mxu1 %v670_v12  ;;  %613 = vmatprep.subr.bf16.mxu0 %v689_v1 }
  0x1f   : > { %629 = vmatprep.subr.bf16.mxu1 %v689_v1 }
  0x21   : > { %614 = vmatpush3.bf16.msra.mxu0 %v671_v15 }
  0x22   : > { %630 = vmatpush3.bf16.msra.mxu1 %v672_v16  ;;  %635 = vmatprep.subr.bf16.mxu0 %v689_v1 }
  0x24   : > { %616 = vmatmul.mubr.msk.bf16.vlgmr.msra.gmra.mxu0 %vm240_vm1, %v203_v17 }
  0x25   : > { %632 = vmatmul.mubr.msk.bf16.vlgmr.msra.gmra.mxu1 %vm240_vm1, %v167_v19  ;;  %636 = vmatpush3.bf16.msra.mxu0 %v674_v18 }
  0x26   : > { %637 = vmatprep.subr.bf16.mxu0 %v689_v1  ;;  %647 = vmatprep.mubr.msk.bf16.mxu0 %vm690_vm0, %v689_v1 }
  0x29   : > { %638 = vmatpush3.bf16.msra.mxu0 %v675_v20 }
  0x2a   : > { %639 = vmatprep.subr.bf16.mxu0 %v689_v1 }
  0x2d   : > { %640 = vmatpush3.bf16.msra.mxu0 %v676_v21 }
  0x2e   : > { %641 = vmatprep.subr.bf16.mxu0 %v689_v1 }
  0x31   : > { %642 = vmatpush3.bf16.msra.mxu0 %v677_v22 }
  0x32   : > { %643 = vmatprep.subr.bf16.mxu0 %v689_v1 }
  0x35   : > { %644 = vmatpush3.bf16.msra.mxu0 %v678_v23 }
  0x36   : > { %645 = vmatprep.subr.bf16.mxu0 %v689_v1 }
  0x39   : > { %646 = vmatpush3.bf16.msra.mxu0 %v679_v25 }
  0x3c   : > { %648 = vmatmul.mubr.msk.bf16.vlgmr.msra.gmra.mxu0 %vm240_vm1, %v380_v26 }
  0xe4   : > { %v278_v27 = vpop.f32.mrf.mxu0 }
  0xe5   : > { %v357_v28 = vpop.f32.mrf.mxu1 }
  0xe6   : > { %v617_v29 = vpop.f32.mrf.mxu0  ;;  %v358_v35 = vadd.f32 %v357_v28, %v278_v27 }
  0xe7   : > { %v633_v30 = vpop.f32.mrf.mxu1 }
  0xe8   : > { %v281_v31 = vpop.f32.mrf.mxu0 }
  0xe9   : > { %v360_v32 = vpop.f32.mrf.mxu1 }
  0xea   : > { %v618_v33 = vpop.f32.mrf.mxu0 }
  0xeb   : > { %v634_v34 = vpop.f32.mrf.mxu1 }
  0xfc   : > { %v454_v36 = vpop.f32.mrf.mxu0 }
  0xfd   : > { %v460_v38 = vadd.f32 %v454_v36, %v358_v35 }
  0xfe   : > { %v649_v39 = vpop.f32.mrf.mxu0 }
  0xff   : > { %v468_v40 = vadd.f32 %v579_v37, %v460_v38 }
 0x100   : > { %v457_v41 = vpop.f32.mrf.mxu0 }
 0x101   : > { %v469_v42 = vmax.f32 %v468_v40, 0.0 }
 0x102   : > { %v650_v43 = vpop.f32.mrf.mxu0 }
 0x103   : > { %v470_v44 = vpack.c.bf16 %v469_v42, %v469_v42 }
 0x105   : > { %471 = vst [vmem:[%s165_s7] sm:$0x3] %v470_v44 }
 0x106 PF: > { %s13_s12 = sadd.s32 1, %s687_s12  }
 0x107   : > { %p10_p4 = scmp.ge.s32.totalorder %s13_s12, 4  }
 0x109   :  { %12 = sbr.rel (!%p10_p4) target bundleno = 1 (0x1), region = 64 }

// kernel: rep_unet_forward.7
= control target key start
LH: loop header
LB: loop body
LE: loop exit
PB: predicated region body
PF: predicated region fallthrough
CT: control target
= control target key end

     0   :  { %s1361_s27 = smov 0   ;;  %s1558_s0 = inlined_call_operand.vmem [shape: bf16[2,10,80], index: 0, kind: input, shape index: {}]   ;;  %s1559_s1 = inlined_call_operand.vmem [shape: bf16[3,80,128], index: 1, kind: input, shape index: {}]   ;;  %s1560_s2 = inlined_call_operand.vmem [shape: f32[1,128], index: 2, kind: input, shape index: {}]   ;;  %s1561_s3 = inlined_call_operand.vmem [shape: bf16[10,8], index: 3, kind: input, shape index: {}]   ;;  %s1562_s4 = inlined_call_operand.vmem [shape: bf16[128,160], index: 4, kind: input, shape index: {}]   ;;  %s1563_s5 = inlined_call_operand.vmem [shape: bf16[6,8], index: 5, kind: input, shape index: {}]   ;;  %s1564_s6 = inlined_call_operand.vmem [shape: bf16[128,96], index: 6, kind: input, shape index: {}]   ;;  %s1565_s7 = inlined_call_operand.vmem [shape: bf16[2,10,160], index: 7, kind: output, shape index: {0}]   ;;  %s1566_s8 = inlined_call_operand.vmem [shape: bf16[2,6,96], index: 8, kind: output, shape index: {1}]  }
   0x1 LB: > { %s1060_s28 = sadd.s32 4294967295, %s1311_s27   ;;  %p1064_p0 = scmp.ge.s32.totalorder %s1311_s27, 1  ;;  %s1311_s27 = sphi %s1361_s27, %s19_s27  }
   0x2   : > { %p265_p1 = scmp.lt.s32.totalorder %s1311_s27, 3 }
   0x4   : > { %p266_p2 = pnand %p1064_p0, %p265_p1 }
   0x5   : > { %p303_p3 = scmp.lt.s32.totalorder (!%p266_p2), %s1060_s28, 1 }
   0x6   : > { %269 = sbr.rel (%p266_p2) target bundleno = 661 (0x295), region = 48 }
   0xb   : > { %v1255_v0 = vld [vmem:[%s1559_s1 + $0x48] sm:$0xff]   ;;  %v1313_v1 = vmov 0.0   ;;  %v1256_v2 = vld [vmem:[%s1559_s1 + $0x20] sm:$0xff]   ;;  %vm1314_vm0 = vmmov 0   ;;  %v1258_v4 = vld [vmem:[%s1559_s1 + $0x18] sm:$0xff]   ;;  %s1568_s28 = smov (!%p303_p3, %s1060_s28), 1 }
   0xc   : > { %1176 = vmatprep.subr.bf16.mxu0 %v1313_v1  ;;  %1190 = vmatprep.subr.bf16.mxu1 %v1313_v1  ;;  %v1257_v3 = vld [vmem:[%s1559_s1 + $0x40] sm:$0xff]   ;;  %v1259_v5 = vld [vmem:[%s1559_s1 + $0x38] sm:$0xff]   ;;  %s1143_s17 = sshll.u32 %s1568_s28, 3  ;;  %v1260_v6 = vld [vmem:[%s1559_s1 + $0x10] sm:$0xff]   ;;  %vm383_vm1 = vcmask 654336   ;;  %v1315_v50 = vmov 0  }
   0xd   : > { %1177 = vmatpush3.bf16.msra.mxu0 %v1255_v0  ;;  %1186 = vmatprep.mubr.msk.bf16.mxu0 %vm1314_vm0, %v1313_v1  ;;  %s1402_s22 = scalar_lea.vmem %s1558_s0, %s1143_s17  ;;  %v1261_v7 = vld [vmem:[%s1559_s1 + $0x30] sm:$0xff]   ;;  %v1262_v10 = vld [vmem:[%s1559_s1 + $0x8] sm:$0xff]   ;;  %v1264_v15 = vld [vmem:[%s1559_s1] sm:$0xff]   ;;  %vm750_vm2 = vcmask 1043456   ;;  %vm746_vm3 = vcmask 64512   ;;  %s1144_s15 = sshll.u32 %s1568_s28, 4 }
   0xe   : > { %1191 = vmatpush3.bf16.msra.mxu1 %v1256_v2  ;;  %1178 = vmatprep.subr.bf16.mxu0 %v1313_v1  ;;  %v318_v8 = vld [vmem:[%s1402_s22] sm:$0xf]  ;;  %v329_v9 = vld [vmem:[%s1402_s22 + $0x4] sm:$0x1]  ;;  %v1263_v12 = vld [vmem:[%s1559_s1 + $0x28] sm:$0xff]   ;;  %vm812_vm4 = vcmask 261124   ;;  %s312_s18 = scalar_lea.vmem %s1565_s7, %s1144_s15 }
   0xf   : > { %1192 = vmatprep.subr.bf16.mxu1 %v1313_v1  ;;  %1200 = vmatprep.mubr.msk.bf16.mxu1 %vm1314_vm0, %v1313_v1  ;;  %v1080_v11 = vcombine.low %v318_v8, %v329_v9  ;;  %v1266_v17 = vld [vmem:[%s1559_s1 + $0x70] sm:$0xff]   ;;  %v1267_v21 = vld [vmem:[%s1559_s1 + $0x68] sm:$0xff]   ;;  %v1268_v22 = vld [vmem:[%s1559_s1 + $0x60] sm:$0xff]   ;;  %vm815_vm6 = vcmask 1040384   ;;  %vm816_vm7 = vcmask 258052   ;;  %s1069_s19 = sshll.u32 %s1568_s28, 2 }
  0x10   : > { %v1274_v19 = vld [vmem:[%s1562_s4 + $0x74] ss:$8 sps:$4 sm:$0xff]   ;;  %v1272_v20 = vld [vmem:[%s1562_s4 + $0x70] ss:$8 sps:$4 sm:$0xff]   ;;  %v500_v24 = vld [vmem:[%s1402_s22] sm:$0xe]  ;;  %s316_s23 = scalar_lea.vmem %s1566_s8, %s1069_s19 }
  0x11   : > { %1179 = vmatpush3.bf16.msra.mxu0 %v1257_v3  ;;  %v347_v13 = vshrl.u32 %v1080_v11, 16  ;;  %v349_v14 = vshll.u32 %v1080_v11, 16  ;;  %v1269_v23 = vld [vmem:[%s1559_s1 + $0x58] sm:$0xff]   ;;  %v1103_v25 = vcombine.low %v500_v24, %v329_v9  ;;  %v1270_v26 = vld [vmem:[%s1559_s1 + $0x50] sm:$0xff]   ;;  %v1278_v29 = vld [vmem:[%s1562_s4 + $0x64] ss:$8 sps:$4 sm:$0xff]  }
  0x12   : > { %1193 = vmatpush3.bf16.msra.mxu1 %v1258_v4  ;;  %1180 = vmatprep.subr.bf16.mxu0 %v1313_v1  ;;  %v1275_v28 = vld [vmem:[%s1564_s6 + $0x38] sm:$0xff]   ;;  %v1276_v30 = vld [vmem:[%s1562_s4 + $0x60] ss:$8 sps:$4 sm:$0xff]   ;;  %v1279_v31 = vld [vmem:[%s1564_s6 + $0x30] sm:$0xff]   ;;  %vm972_vm9 = vcmask 780288  }
  0x13   : > { %1194 = vmatprep.subr.bf16.mxu1 %v1313_v1  ;;  %v351_v16 = vrot.slane %v349_v14, 1  ;;  %v515_v27 = vrot.slane %v1103_v25, 1  ;;  %v1282_v32 = vld [vmem:[%s1562_s4 + $0x54] ss:$8 sps:$4 sm:$0xff]   ;;  %v1280_v33 = vld [vmem:[%s1562_s4 + $0x50] ss:$8 sps:$4 sm:$0xff]   ;;  %vm813_vm5 = vmor %vm812_vm4, %vm750_vm2 }
  0x14   : > { %v1283_v34 = vld [vmem:[%s1564_s6 + $0x28] sm:$0xff]   ;;  %v1287_v37 = vld [vmem:[%s1564_s6 + $0x20] sm:$0xff]   ;;  %v1290_v38 = vld [vmem:[%s1562_s4 + $0x34] ss:$8 sps:$4 sm:$0xff]  }
  0x15   : > { %1181 = vmatpush3.bf16.msra.mxu0 %v1259_v5  ;;  %v352_v18 = vor.u32 %v351_v16, %v347_v13  ;;  %v1284_v35 = vld [vmem:[%s1562_s4 + $0x40] ss:$8 sps:$4 sm:$0xff]   ;;  %v1286_v36 = vld [vmem:[%s1562_s4 + $0x44] ss:$8 sps:$4 sm:$0xff]   ;;  %v1288_v39 = vld [vmem:[%s1562_s4 + $0x30] ss:$8 sps:$4 sm:$0xff]  }
  0x16   : > { %1195 = vmatpush3.bf16.msra.mxu1 %v1260_v6  ;;  %1182 = vmatprep.subr.bf16.mxu0 %v1313_v1  ;;  %v1291_v40 = vld [vmem:[%s1564_s6 + $0x18] sm:$0xff]   ;;  %v1294_v41 = vld [vmem:[%s1562_s4 + $0x24] ss:$8 sps:$4 sm:$0xff]   ;;  %v1292_v42 = vld [vmem:[%s1562_s4 + $0x20] ss:$8 sps:$4 sm:$0xff]  }
  0x17   : > { %1196 = vmatprep.subr.bf16.mxu1 %v1313_v1  ;;  %v1295_v43 = vld [vmem:[%s1564_s6 + $0x10] sm:$0xff]   ;;  %v1299_v46 = vld [vmem:[%s1564_s6 + $0x8] sm:$0xff]   ;;  %v1303_v49 = vld [vmem:[%s1564_s6] sm:$0xff]  }
  0x18   : > { %v1298_v44 = vld [vmem:[%s1562_s4 + $0x14] ss:$8 sps:$4 sm:$0xff]   ;;  %v1296_v45 = vld [vmem:[%s1562_s4 + $0x10] ss:$8 sps:$4 sm:$0xff]   ;;  %v1302_v47 = vld [vmem:[%s1562_s4 + $0x4] ss:$8 sps:$4 sm:$0xff]  }
  0x19   : > { %1183 = vmatpush3.bf16.msra.mxu0 %v1261_v7  ;;  %v1300_v48 = vld [vmem:[%s1562_s4] ss:$8 sps:$4 sm:$0xff]   ;;  %vm817_vm8 = vmor %vm816_vm7, %vm815_vm6 }
  0x1a   : > { %1197 = vmatpush3.bf16.msra.mxu1 %v1262_v10  ;;  %1184 = vmatprep.subr.bf16.mxu0 %v1313_v1  ;;  %v1110_v61 = vld [vmem:[%s1560_s2] ss:$0 sm:$0xff] }
  0x1b   : > { %1198 = vmatprep.subr.bf16.mxu1 %v1313_v1  ;;  %v1304_v16 = vld [vmem:[%s1561_s3] sm:$0x1f]  }
  0x1d   : > { %1185 = vmatpush3.bf16.msra.mxu0 %v1263_v12 }
  0x1e   : > { %1199 = vmatpush3.bf16.msra.mxu1 %v1264_v15  ;;  %1204 = vmatprep.subr.bf16.mxu0 %v1313_v1 }
  0x1f   : > { %696 = vmatprep.subr.bf16.mxu1 %v1274_v19 }
  0x20   : > { %1187 = vmatmul.mubr.msk.bf16.vlgmr.msra.gmra.mxu0 %vm383_vm1, %v352_v18 }
  0x21   : > { %1201 = vmatmul.mubr.msk.bf16.vlgmr.msra.gmra.mxu1 %vm383_vm1, %v318_v8  ;;  %1205 = vmatpush3.bf16.msra.mxu0 %v1266_v17 }
  0x22   : > { %1206 = vmatprep.subr.bf16.mxu0 %v1313_v1  ;;  %1214 = vmatprep.mubr.msk.bf16.mxu0 %vm1314_vm0, %v1313_v1 }
  0x23   : > { %697 = vmatpush1.bf16.msra.mxu1 %v1272_v20  ;;  %728 = vmatprep.mubr.bf16.mxu1 %v1315_v50  ;;  %v924_v20 = vld [vmem:[%s1563_s5] sm:$0x7] }
  0x24   : > { %698 = vmatprep.subr.bf16.mxu1 %v1278_v29 }
  0x25   : > { %1207 = vmatpush3.bf16.msra.mxu0 %v1267_v21 }
  0x26   : > { %1208 = vmatprep.subr.bf16.mxu0 %v1313_v1 }
  0x27   : > { %699 = vmatpush1.bf16.msra.mxu1 %v1276_v30 }
  0x28   : > { %700 = vmatprep.subr.bf16.mxu1 %v1282_v32 }
  0x29   : > { %1209 = vmatpush3.bf16.msra.mxu0 %v1268_v22 }
  0x2a   : > { %1210 = vmatprep.subr.bf16.mxu0 %v1313_v1 }
  0x2b   : > { %701 = vmatpush1.bf16.msra.mxu1 %v1280_v33 }
  0x2c   : > { %702 = vmatprep.subr.bf16.mxu1 %v1286_v36 }
  0x2d   : > { %1211 = vmatpush3.bf16.msra.mxu0 %v1269_v23 }
  0x2e   : > { %1212 = vmatprep.subr.bf16.mxu0 %v1313_v1 }
  0x2f   : > { %703 = vmatpush1.bf16.msra.mxu1 %v1284_v35 }
  0x30   : > { %704 = vmatprep.subr.bf16.mxu1 %v1290_v38 }
  0x31   : > { %1213 = vmatpush3.bf16.msra.mxu0 %v1270_v26 }
  0x32   : > { %1218 = vmatprep.subr.bf16.mxu0 %v1313_v1 }
  0x33   : > { %705 = vmatpush1.bf16.msra.mxu1 %v1288_v39 }
  0x34   : > { %1215 = vmatmul.mubr.msk.bf16.vlgmr.msra.gmra.mxu0 %vm383_vm1, %v515_v27  ;;  %706 = vmatprep.subr.bf16.mxu1 %v1294_v41 }
  0x35   : > { %1219 = vmatpush3.bf16.msra.mxu0 %v1275_v28  ;;  %1234 = vmatprep.mubr.msk.bf16.mxu0 %vm1314_vm0, %v1313_v1 }
  0x36   : > { %1220 = vmatprep.subr.bf16.mxu0 %v1313_v1 }
  0x37   : > { %707 = vmatpush1.bf16.msra.mxu1 %v1292_v42 }
  0x38   : > { %708 = vmatprep.subr.bf16.mxu1 %v1298_v44 }
  0x39   : > { %1221 = vmatpush3.bf16.msra.mxu0 %v1279_v31 }
  0x3a   : > { %1222 = vmatprep.subr.bf16.mxu0 %v1313_v1 }
  0x3b   : > { %709 = vmatpush1.bf16.msra.mxu1 %v1296_v45 }
  0x3c   : > { %710 = vmatprep.subr.bf16.mxu1 %v1302_v47 }
  0x3d   : > { %1223 = vmatpush3.bf16.msra.mxu0 %v1283_v34 }
  0x3e   : > { %1224 = vmatprep.subr.bf16.mxu0 %v1313_v1 }
  0x3f   : > { %711 = vmatpush1.bf16.msra.mxu1 %v1300_v48 }
  0x41   : > { %1225 = vmatpush3.bf16.msra.mxu0 %v1287_v37 }
  0x42   : > { %1226 = vmatprep.subr.bf16.mxu0 %v1313_v1 }
  0x45   : > { %1227 = vmatpush3.bf16.msra.mxu0 %v1291_v40 }
  0x46   : > { %1228 = vmatprep.subr.bf16.mxu0 %v1313_v1 }
  0x49   : > { %1229 = vmatpush3.bf16.msra.mxu0 %v1295_v43 }
  0x4a   : > { %1230 = vmatprep.subr.bf16.mxu0 %v1313_v1 }
  0x4d   : > { %1231 = vmatpush3.bf16.msra.mxu0 %v1299_v46 }
  0x4e   : > { %1232 = vmatprep.subr.bf16.mxu0 %v1313_v1 }
  0x51   : > { %1233 = vmatpush3.bf16.msra.mxu0 %v1303_v49 }
  0xe0   : > { %v421_v51 = vpop.f32.mrf.mxu0 }
  0xe1   : > { %v494_v52 = vpop.f32.mrf.mxu1 }
  0xe2   : > { %v1188_v53 = vpop.f32.mrf.mxu0  ;;  %v495_v59 = vadd.f32 %v494_v52, %v421_v51 }
  0xe3   : > { %v1202_v54 = vpop.f32.mrf.mxu1 }
  0xe4   : > { %v424_v55 = vpop.f32.mrf.mxu0 }
  0xe5   : > { %v497_v56 = vpop.f32.mrf.mxu1 }
  0xe6   : > { %v1189_v57 = vpop.f32.mrf.mxu0 }
  0xe7   : > { %v1203_v58 = vpop.f32.mrf.mxu1 }
  0xf4   : > { %v583_v60 = vpop.f32.mrf.mxu0 }
  0xf5   : > { %v589_v62 = vadd.f32 %v583_v60, %v495_v59 }
  0xf6   : > { %v1216_v63 = vpop.f32.mrf.mxu0 }
  0xf7   : > { %v597_v0 = vadd.f32 %v1110_v61, %v589_v62 }
  0xf8   : > { %v586_v2 = vpop.f32.mrf.mxu0 }
  0xf9   : > { %v598_v3 = vmax.f32 %v597_v0, 0.0 }
  0xfa   : > { %v1217_v4 = vpop.f32.mrf.mxu0 }
  0xfb   : > { %v599_v5 = vpack.c.bf16 %v598_v3, %v598_v3 }
  0xfd   : > { %729 = vmatmul.mubr.bf16.vlgmr.msra.gmra.mxu1 %v599_v5  ;;  %1235 = vmatmul.mubr.bf16.vlgmr.msra.gmra.mxu0 %v599_v5 }
  0xfe   : > { %789 = vmatprep.mubr.bf16.mxu1 %v1315_v50 }
 0x1bd   : > { %v730_v6 = vpop.f32.mrf.mxu1  ;;  %v917_v7 = vpop.f32.mrf.mxu0 }
 0x1be   : > { %v737_v8 = vpack.c.bf16 %v730_v6, %v730_v6  ;;  %v923_v15 = vpack.c.bf16 %v917_v7, %v917_v7 }
 0x1bf   : > { %v732_v9 = vpop.f32.mrf.mxu1  ;;  %v1236_v10 = vpop.f32.mrf.mxu0 }
 0x1c0   : > { %v738_v11 = vpack.c.bf16 %v732_v9, %v732_v9  ;;  %v752_v14 = vsel %vm750_vm2, %v737_v8, 0  ;;  %v929_v19 = vsel %vm750_vm2, %v923_v15, 0 }
 0x1c1   : > { %v734_v12 = vpop.f32.mrf.mxu1  ;;  %v920_v13 = vpop.f32.mrf.mxu0 }
 0x1c2   : > { %1128 = vmatprep.subr.msk.bf16.mxu1 %vm750_vm2, %v738_v11 }
 0x1c3   : > { %v735_v17 = vpop.f32.mrf.mxu1  ;;  %772 = vmatpush1.bf16.msra.mxu1 %v752_v14  ;;  %v1237_v18 = vpop.f32.mrf.mxu0 }
 0x1c4   : > { %1238 = vmatprep.subr.bf16.mxu1 %v1313_v1 }
 0x1c6   : > { %1129 = vmatmul.mubr.msk.bf16.vlgmr.msra.gmra.mxu1 %vm746_vm3, %v1304_v16 }
 0x1c7   : > { %1239 = vmatpush3.bf16.msra.mxu1 %v929_v19  ;;  %1240 = vmatprep.mubr.msk.bf16.mxu1 %vm1314_vm0, %v1313_v1 }
 0x1ce   : > { %1241 = vmatmul.mubr.msk.bf16.vlgmr.msra.gmra.mxu1 %vm746_vm3, %v924_v20 }
 0x286   : > { %v791_v21 = vpop.f32.mrf.mxu1 }
 0x288   : > { %v793_v22 = vpop.f32.mrf.mxu1 }
 0x289   : > { %v1145_v23 = vpack.c.bf16 %v793_v22, %v791_v21 }
 0x28a   : > { %v795_v24 = vpop.f32.mrf.mxu1 }
 0x28b   : > { %814 = vst.msk [vmem:[%s312_s18] sm:$0xff] %vm813_vm5, %v1145_v23 }
 0x28c   : > { %v797_v1 = vpop.f32.mrf.mxu1 }
 0x28d   : > { %v1146_v25 = vpack.c.bf16 %v797_v1, %v795_v24 }
 0x28e   : > { %v965_v26 = vpop.f32.mrf.mxu1 }
 0x28f   : > { %818 = vst.msk [vmem:[%s312_s18 + $0x8] sm:$0x11] %vm817_vm8, %v1146_v25  ;;  %v971_v27 = vpack.c.bf16 %v965_v26, %v965_v26 }
 0x290   : > { %v1242_v28 = vpop.f32.mrf.mxu1 }
 0x291   : > { %973 = vst.msk [vmem:[%s316_s23] sm:$0x7] %vm972_vm9, %v971_v27 }
 0x292   : > { %v968_v29 = vpop.f32.mrf.mxu1 }
 0x294   : > { %v1243_v30 = vpop.f32.mrf.mxu1 }
 0x295 PF: > { %s19_s27 = sadd.s32 1, %s1311_s27  }
 0x296   : > { %p16_p4 = scmp.ge.s32.totalorder %s19_s27, 4  }
 0x298   :  { %18 = sbr.rel (!%p16_p4) target bundleno = 1 (0x1), region = 92 }

// kernel: rep_unet_forward.6
= control target key start
LH: loop header
LB: loop body
LE: loop exit
PB: predicated region body
PF: predicated region fallthrough
CT: control target
= control target key end

     0   :  { %s1424_s27 = smov 0   ;;  %s1625_s0 = inlined_call_operand.vmem [shape: bf16[2,18,72], index: 0, kind: input, shape index: {}]   ;;  %s1626_s1 = inlined_call_operand.vmem [shape: bf16[3,72,128], index: 1, kind: input, shape index: {}]   ;;  %s1627_s2 = inlined_call_operand.vmem [shape: f32[1,128], index: 2, kind: input, shape index: {}]   ;;  %s1628_s3 = inlined_call_operand.vmem [shape: bf16[18,16], index: 3, kind: input, shape index: {}]   ;;  %s1629_s4 = inlined_call_operand.vmem [shape: bf16[128,144], index: 4, kind: input, shape index: {}]   ;;  %s1630_s5 = inlined_call_operand.vmem [shape: bf16[10,16], index: 5, kind: input, shape index: {}]   ;;  %s1631_s6 = inlined_call_operand.vmem [shape: bf16[128,80], index: 6, kind: input, shape index: {}]   ;;  %s1632_s7 = inlined_call_operand.vmem [shape: bf16[2,18,144], index: 7, kind: output, shape index: {0}]   ;;  %s1633_s8 = inlined_call_operand.vmem [shape: bf16[2,10,80], index: 8, kind: output, shape index: {1}]  }
   0x1 LB: > { %s1113_s28 = sadd.s32 4294967295, %s1374_s27   ;;  %p1117_p0 = scmp.ge.s32.totalorder %s1374_s27, 1  ;;  %s1374_s27 = sphi %s1424_s27, %s19_s27  }
   0x2   : > { %p265_p1 = scmp.lt.s32.totalorder %s1374_s27, 3 }
   0x4   : > { %p266_p2 = pnand %p1117_p0, %p265_p1 }
   0x5   : > { %p304_p3 = scmp.lt.s32.totalorder (!%p266_p2), %s1113_s28, 1 }
   0x6   : > { %269 = sbr.rel (%p266_p2) target bundleno = 678 (0x2a6), region = 48 }
   0xb   : > { %v1315_v0 = vld [vmem:[%s1626_s1 + $0x44] ss:$0 sps:$4 sm:$0xff]   ;;  %vm394_vm0 = vcmask 1043456   ;;  %v1376_v1 = vmov 0.0   ;;  %v1316_v2 = vld [vmem:[%s1626_s1 + $0x20] ss:$0 sps:$4 sm:$0xff]  }
   0xc   : > { %1234 = vmatprep.subr.bf16.mxu0 %v1376_v1  ;;  %1248 = vmatprep.subr.bf16.mxu1 %v1376_v1  ;;  %v396_v3 = vsel %vm394_vm0, %v1315_v0, 0  ;;  %v469_v4 = vsel %vm394_vm0, %v1316_v2, 0  ;;  %v1317_v5 = vld [vmem:[%s1626_s1 + $0x3c] sm:$0xff]   ;;  %vm1377_vm1 = vmmov 0   ;;  %v1319_v7 = vld [vmem:[%s1626_s1 + $0x34] sm:$0xff]   ;;  %s1635_s28 = smov (!%p304_p3, %s1113_s28), 1 }
   0xd   : > { %1235 = vmatpush3.bf16.msra.mxu0 %v396_v3  ;;  %1249 = vmatpush3.bf16.msra.mxu1 %v469_v4  ;;  %v1318_v6 = vld [vmem:[%s1626_s1 + $0x18] sm:$0xff]   ;;  %v1320_v8 = vld [vmem:[%s1626_s1 + $0x10] sm:$0xff]   ;;  %s1302_s19 = smul.u32 12, %s1635_s28  ;;  %v1322_v10 = vld [vmem:[%s1626_s1 + $0x8] sm:$0xff]   ;;  %vm350_vm2 = vsmask.f32 7424 }
   0xe   : > { %1236 = vmatprep.subr.bf16.mxu0 %v1376_v1  ;;  %1250 = vmatprep.subr.bf16.mxu1 %v1376_v1  ;;  %v1321_v9 = vld [vmem:[%s1626_s1 + $0x2c] sm:$0xff]   ;;  %v1323_v15 = vld [vmem:[%s1626_s1 + $0x24] sm:$0xff]   ;;  %vm390_vm3 = vcmask 588800   ;;  %v1329_v27 = vld [vmem:[%s1626_s1 + $0x58] sm:$0xff]   ;;  %vm526_vm4 = vcmask 1046528   ;;  %v1378_v59 = vmov 0  }
   0xf   : > { %1244 = vmatprep.mubr.msk.bf16.mxu0 %vm1377_vm1, %v1376_v1  ;;  %1258 = vmatprep.mubr.msk.bf16.mxu1 %vm1377_vm1, %v1376_v1  ;;  %s1474_s26 = scalar_lea.vmem %s1625_s0, %s1302_s19  ;;  %v1324_v19 = vld [vmem:[%s1626_s1] sm:$0xff]   ;;  %v1327_v20 = vld [vmem:[%s1626_s1 + $0x68] ss:$0 sps:$4 sm:$0xff]   ;;  %v1330_v29 = vld [vmem:[%s1626_s1 + $0x50] sm:$0xff]   ;;  %vm770_vm5 = vcmask 130048   ;;  %s1303_s17 = smul.u32 24, %s1635_s28 }
  0x10   : > { %v320_v11 = vld [vmem:[%s1474_s26] sm:$0xf]  ;;  %v321_v12 = vld [vmem:[%s1474_s26 + $0x4] sm:$0xf]  ;;  %v561_v24 = vsel %vm394_vm0, %v1327_v20, 0  ;;  %v1331_v31 = vld [vmem:[%s1626_s1 + $0x48] sm:$0xff]  }
  0x11   : > { %1237 = vmatpush3.bf16.msra.mxu0 %v1317_v5  ;;  %1251 = vmatpush3.bf16.msra.mxu1 %v1318_v6  ;;  %v1131_v13 = vcombine.low %v320_v11, %v321_v12  ;;  %v1326_v14 = vld [vmem:[%s1474_s26 + $0x8] ss:$0 sps:$4 sm:$0x11]   ;;  %v1328_v26 = vld [vmem:[%s1626_s1 + $0x60] sm:$0xff]   ;;  %v1335_v35 = vld [vmem:[%s1629_s4 + $0x74] ss:$8 sps:$4 sm:$0xff]   ;;  %s313_s20 = scalar_lea.vmem %s1632_s7, %s1303_s17 }
  0x12   : > { %1238 = vmatprep.subr.bf16.mxu0 %v1376_v1  ;;  %1252 = vmatprep.subr.bf16.mxu1 %v1376_v1  ;;  %v359_v18 = vshll.u32 %v1326_v14, 16  ;;  %v512_v28 = vld [vmem:[%s1474_s26] sm:$0xe]  ;;  %v528_v33 = vrot.slane %v1326_v14, 1  ;;  %v1333_v36 = vld [vmem:[%s1629_s4 + $0x70] ss:$8 sps:$4 sm:$0xff]  }
  0x13   : > { %v352_v16 = vshrl.u32 %v1131_v13, 16  ;;  %v354_v17 = vshll.u32 %v1131_v13, 16  ;;  %v1154_v30 = vcombine.low %v512_v28, %v321_v12  ;;  %v1336_v37 = vld [vmem:[%s1631_s6 + $0x38] sm:$0xff]   ;;  %v1339_v38 = vld [vmem:[%s1629_s4 + $0x64] ss:$8 sps:$4 sm:$0xff]   ;;  %v1340_v40 = vld [vmem:[%s1631_s6 + $0x30] sm:$0xff]  }
  0x14   : > { %v361_v22 = vrot.slane %v359_v18, 1  ;;  %v1337_v39 = vld [vmem:[%s1629_s4 + $0x60] ss:$8 sps:$4 sm:$0xff]   ;;  %v1343_v41 = vld [vmem:[%s1629_s4 + $0x54] ss:$8 sps:$4 sm:$0xff]   ;;  %vm848_vm6 = vcmask 130052  }
  0x15   : > { %1239 = vmatpush3.bf16.msra.mxu0 %v1319_v7  ;;  %1253 = vmatpush3.bf16.msra.mxu1 %v1320_v8  ;;  %v356_v21 = vrot.slane %v354_v17, 1  ;;  %v527_v32 = vrot.slane %v1154_v30, 1  ;;  %v1341_v42 = vld [vmem:[%s1629_s4 + $0x50] ss:$8 sps:$4 sm:$0xff]   ;;  %v1344_v43 = vld [vmem:[%s1631_s6 + $0x28] sm:$0xff]   ;;  %v1348_v46 = vld [vmem:[%s1631_s6 + $0x20] sm:$0xff]  }
  0x16   : > { %1240 = vmatprep.subr.bf16.mxu0 %v1376_v1  ;;  %1254 = vmatprep.subr.bf16.mxu1 %v1376_v1  ;;  %v1347_v44 = vld [vmem:[%s1629_s4 + $0x44] ss:$8 sps:$4 sm:$0xff]   ;;  %v1345_v45 = vld [vmem:[%s1629_s4 + $0x40] ss:$8 sps:$4 sm:$0xff]   ;;  %v1351_v47 = vld [vmem:[%s1629_s4 + $0x34] ss:$8 sps:$4 sm:$0xff]  }
  0x17   : > { %v357_v23 = vor.u32 %v356_v21, %v352_v16  ;;  %v529_v34 = vsel %vm526_vm4, %v527_v32, %v528_v33  ;;  %v1349_v48 = vld [vmem:[%s1629_s4 + $0x30] ss:$8 sps:$4 sm:$0xff]   ;;  %v1355_v50 = vld [vmem:[%s1629_s4 + $0x24] ss:$8 sps:$4 sm:$0xff]   ;;  %v1353_v51 = vld [vmem:[%s1629_s4 + $0x20] ss:$8 sps:$4 sm:$0xff]  }
  0x18   : > { %v1352_v49 = vld [vmem:[%s1631_s6 + $0x18] sm:$0xff]   ;;  %v1356_v52 = vld [vmem:[%s1631_s6 + $0x10] sm:$0xff]   ;;  %v1360_v55 = vld [vmem:[%s1631_s6 + $0x8] sm:$0xff]   ;;  %vm852_vm8 = vcmask 1040384   ;;  %vm853_vm9 = vcmask 126980   ;;  %s1199_s21 = sshll.u32 %s1635_s28, 3 }
  0x19   : > { %1241 = vmatpush3.bf16.msra.mxu0 %v1321_v9  ;;  %1255 = vmatpush3.bf16.msra.mxu1 %v1322_v10  ;;  %v362_v25 = vsel %vm350_vm2, %v357_v23, %v361_v22  ;;  %v1359_v53 = vld [vmem:[%s1629_s4 + $0x14] ss:$8 sps:$4 sm:$0xff]   ;;  %v1357_v54 = vld [vmem:[%s1629_s4 + $0x10] ss:$8 sps:$4 sm:$0xff]   ;;  %v1363_v56 = vld [vmem:[%s1629_s4 + $0x4] ss:$8 sps:$4 sm:$0xff]   ;;  %s318_s24 = scalar_lea.vmem %s1633_s8, %s1199_s21 }
  0x1a   : > { %1242 = vmatprep.subr.bf16.mxu0 %v1376_v1  ;;  %1256 = vmatprep.subr.bf16.mxu1 %v1376_v1  ;;  %v1361_v57 = vld [vmem:[%s1629_s4] ss:$8 sps:$4 sm:$0xff]   ;;  %vm849_vm7 = vmor %vm848_vm6, %vm394_vm0  ;;  %vm1021_vm11 = vcmask 650240   ;;  %vm1023_vm12 = vcmask 647168  }
  0x1b   : > { %v1364_v58 = vld [vmem:[%s1631_s6] sm:$0xff]   ;;  %vm854_vm10 = vmor %vm853_vm9, %vm852_vm8 }
  0x1c   : > { %v1161_v8 = vld [vmem:[%s1627_s2] ss:$0 sm:$0xff] }
  0x1d   : > { %1243 = vmatpush3.bf16.msra.mxu0 %v1323_v15  ;;  %1257 = vmatpush3.bf16.msra.mxu1 %v1324_v19  ;;  %v1367_v32 = vld [vmem:[%s1630_s5] sm:$0x1f]  }
  0x1e   : > { %1262 = vmatprep.subr.bf16.mxu0 %v1376_v1  ;;  %714 = vmatprep.subr.bf16.mxu1 %v1335_v35 }
  0x20   : > { %1245 = vmatmul.mubr.msk.bf16.vlgmr.msra.gmra.mxu0 %vm390_vm3, %v362_v25  ;;  %1259 = vmatmul.mubr.msk.bf16.vlgmr.msra.gmra.mxu1 %vm390_vm3, %v1131_v13 }
  0x21   : > { %1263 = vmatpush3.bf16.msra.mxu0 %v561_v24  ;;  %1272 = vmatprep.mubr.msk.bf16.mxu0 %vm1377_vm1, %v1376_v1 }
  0x22   : > { %1264 = vmatprep.subr.bf16.mxu0 %v1376_v1  ;;  %715 = vmatpush1.bf16.msra.mxu1 %v1333_v36 }
  0x23   : > { %716 = vmatprep.subr.bf16.mxu1 %v1339_v38  ;;  %746 = vmatprep.mubr.bf16.mxu1 %v1378_v59 }
  0x25   : > { %1265 = vmatpush3.bf16.msra.mxu0 %v1328_v26 }
  0x26   : > { %1266 = vmatprep.subr.bf16.mxu0 %v1376_v1  ;;  %717 = vmatpush1.bf16.msra.mxu1 %v1337_v39 }
  0x27   : > { %718 = vmatprep.subr.bf16.mxu1 %v1343_v41 }
  0x29   : > { %1267 = vmatpush3.bf16.msra.mxu0 %v1329_v27 }
  0x2a   : > { %1268 = vmatprep.subr.bf16.mxu0 %v1376_v1  ;;  %719 = vmatpush1.bf16.msra.mxu1 %v1341_v42 }
  0x2b   : > { %720 = vmatprep.subr.bf16.mxu1 %v1347_v44 }
  0x2d   : > { %1269 = vmatpush3.bf16.msra.mxu0 %v1330_v29  ;;  %v1365_v29 = vld [vmem:[%s1628_s3] sm:$0xff]  }
  0x2e   : > { %1270 = vmatprep.subr.bf16.mxu0 %v1376_v1  ;;  %721 = vmatpush1.bf16.msra.mxu1 %v1345_v45 }
  0x2f   : > { %722 = vmatprep.subr.bf16.mxu1 %v1351_v47 }
  0x31   : > { %1271 = vmatpush3.bf16.msra.mxu0 %v1331_v31  ;;  %v1366_v31 = vld [vmem:[%s1628_s3 + $0x8] ss:$0 sps:$4 sm:$0x11]  }
  0x32   : > { %1276 = vmatprep.subr.bf16.mxu0 %v1376_v1  ;;  %723 = vmatpush1.bf16.msra.mxu1 %v1349_v48 }
  0x33   : > { %724 = vmatprep.subr.bf16.mxu1 %v1355_v50 }
  0x34   : > { %1273 = vmatmul.mubr.msk.bf16.vlgmr.msra.gmra.mxu0 %vm390_vm3, %v529_v34 }
  0x35   : > { %1292 = vmatprep.mubr.msk.bf16.mxu0 %vm1377_vm1, %v1376_v1  ;;  %1277 = vmatpush3.bf16.msra.mxu0 %v1336_v37 }
  0x36   : > { %1278 = vmatprep.subr.bf16.mxu0 %v1376_v1  ;;  %725 = vmatpush1.bf16.msra.mxu1 %v1353_v51 }
  0x37   : > { %726 = vmatprep.subr.bf16.mxu1 %v1359_v53 }
  0x39   : > { %1279 = vmatpush3.bf16.msra.mxu0 %v1340_v40 }
  0x3a   : > { %1280 = vmatprep.subr.bf16.mxu0 %v1376_v1  ;;  %727 = vmatpush1.bf16.msra.mxu1 %v1357_v54 }
  0x3b   : > { %728 = vmatprep.subr.bf16.mxu1 %v1363_v56 }
  0x3d   : > { %1281 = vmatpush3.bf16.msra.mxu0 %v1344_v43 }
  0x3e   : > { %1282 = vmatprep.subr.bf16.mxu0 %v1376_v1  ;;  %729 = vmatpush1.bf16.msra.mxu1 %v1361_v57 }
  0x41   : > { %1283 = vmatpush3.bf16.msra.mxu0 %v1348_v46 }
  0x42   : > { %1284 = vmatprep.subr.bf16.mxu0 %v1376_v1 }
  0x45   : > { %1285 = vmatpush3.bf16.msra.mxu0 %v1352_v49 }
  0x46   : > { %1286 = vmatprep.subr.bf16.mxu0 %v1376_v1 }
  0x49   : > { %1287 = vmatpush3.bf16.msra.mxu0 %v1356_v52 }
  0x4a   : > { %1288 = vmatprep.subr.bf16.mxu0 %v1376_v1 }
  0x4d   : > { %1289 = vmatpush3.bf16.msra.mxu0 %v1360_v55 }
  0x4e   : > { %1290 = vmatprep.subr.bf16.mxu0 %v1376_v1 }
  0x51   : > { %1291 = vmatpush3.bf16.msra.mxu0 %v1364_v58 }
  0xe0   : > { %v432_v60 = vpop.f32.mrf.mxu0  ;;  %v505_v61 = vpop.f32.mrf.mxu1 }
  0xe1   : > { %v506_v5 = vadd.f32 %v505_v61, %v432_v60 }
  0xe2   : > { %v1246_v62 = vpop.f32.mrf.mxu0  ;;  %v1260_v63 = vpop.f32.mrf.mxu1 }
  0xe4   : > { %v435_v0 = vpop.f32.mrf.mxu0  ;;  %v508_v2 = vpop.f32.mrf.mxu1 }
  0xe5   : > { %v509_v10 = vadd.f32 %v508_v2, %v435_v0 }
  0xe6   : > { %v1247_v3 = vpop.f32.mrf.mxu0  ;;  %v1261_v4 = vpop.f32.mrf.mxu1 }
  0xf4   : > { %v597_v6 = vpop.f32.mrf.mxu0 }
  0xf5   : > { %v604_v7 = vadd.f32 %v597_v6, %v506_v5 }
  0xf6   : > { %v1274_v9 = vpop.f32.mrf.mxu0 }
  0xf7   : > { %v613_v12 = vadd.f32 %v1161_v8, %v604_v7 }
  0xf8   : > { %v600_v11 = vpop.f32.mrf.mxu0 }
  0xf9   : > { %v605_v13 = vadd.f32 %v600_v11, %v509_v10  ;;  %v615_v16 = vmax.f32 %v613_v12, 0.0 }
  0xfa   : > { %v1275_v14 = vpop.f32.mrf.mxu0 }
  0xfb   : > { %v614_v15 = vadd.f32 %v1161_v8, %v605_v13 }
  0xfd   : > { %v616_v17 = vmax.f32 %v614_v15, 0.0 }
  0xff   : > { %v617_v18 = vpack.c.bf16 %v616_v17, %v615_v16 }
 0x101   : > { %747 = vmatmul.mubr.bf16.vlgmr.msra.gmra.mxu1 %v617_v18  ;;  %1293 = vmatmul.mubr.bf16.vlgmr.msra.gmra.mxu0 %v617_v18 }
 0x102   : > { %809 = vmatprep.mubr.bf16.mxu1 %v1378_v59 }
 0x1c1   : > { %v748_v19 = vpop.f32.mrf.mxu1  ;;  %v954_v20 = vpop.f32.mrf.mxu0 }
 0x1c3   : > { %v750_v21 = vpop.f32.mrf.mxu1  ;;  %v1294_v22 = vpop.f32.mrf.mxu0 }
 0x1c5   : > { %v752_v23 = vpop.f32.mrf.mxu1  ;;  %v957_v24 = vpop.f32.mrf.mxu0 }
 0x1c6   : > { %v757_v28 = vpack.c.bf16 %v752_v23, %v748_v19  ;;  %v961_v30 = vpack.c.bf16 %v957_v24, %v954_v20 }
 0x1c7   : > { %v754_v25 = vpop.f32.mrf.mxu1  ;;  %v1295_v26 = vpop.f32.mrf.mxu0 }
 0x1c8   : > { %v758_v27 = vpack.c.bf16 %v754_v25, %v750_v21 }
 0x1ca   : > { %791 = vmatprep.subr.bf16.mxu1 %v758_v27 }
 0x1cb   : > { %792 = vmatpush1.bf16.msra.mxu1 %v757_v28 }
 0x1cc   : > { %1296 = vmatprep.subr.bf16.mxu1 %v1376_v1 }
 0x1ce   : > { %1180 = vmatmul.mubr.msk.bf16.vlgmr.msra.gmra.mxu1 %vm770_vm5, %v1365_v29 }
 0x1cf   : > { %1297 = vmatpush3.bf16.msra.mxu1 %v961_v30  ;;  %819 = vmatprep.mubr.bf16.mxu1 %v1378_v59 }
 0x1d6   : > { %1181 = vmatmul.mubr.msk.bf16.gmra.mxu1 %vm770_vm5, %v1366_v31 }
 0x1d7   : > { %1298 = vmatprep.mubr.msk.bf16.mxu1 %vm1377_vm1, %v1376_v1 }
 0x1de   : > { %1299 = vmatmul.mubr.msk.bf16.vlgmr.msra.gmra.mxu1 %vm770_vm5, %v1367_v32 }
 0x28e   : > { %v811_v33 = vpop.f32.mrf.mxu1 }
 0x290   : > { %v813_v34 = vpop.f32.mrf.mxu1 }
 0x291   : > { %v1200_v35 = vpack.c.bf16 %v813_v34, %v811_v33 }
 0x292   : > { %v815_v36 = vpop.f32.mrf.mxu1 }
 0x293   : > { %850 = vst.msk [vmem:[%s313_s20] sm:$0xff] %vm849_vm7, %v1200_v35 }
 0x294   : > { %v817_v1 = vpop.f32.mrf.mxu1 }
 0x295   : > { %v1201_v37 = vpack.c.bf16 %v817_v1, %v815_v36 }
 0x296   : > { %v821_v38 = vpop.f32.mrf.mxu1 }
 0x297   : > { %851 = vst.msk [vmem:[%s313_s20 + $0x8] sm:$0xff] %vm849_vm7, %v1201_v37 }
 0x298   : > { %v823_v39 = vpop.f32.mrf.mxu1 }
 0x299   : > { %v1202_v40 = vpack.c.bf16 %v823_v39, %v821_v38 }
 0x29a   : > { %v825_v41 = vpop.f32.mrf.mxu1 }
 0x29b   : > { %855 = vst.msk [vmem:[%s313_s20 + $0x10] sm:$0x11] %vm854_vm10, %v1202_v40 }
 0x29c   : > { %v826_v42 = vpop.f32.mrf.mxu1 }
 0x29e   : > { %v1006_v43 = vpop.f32.mrf.mxu1 }
 0x29f   : > { %v1203_v44 = vpack.c.bf16 %v1006_v43, %v1006_v43 }
 0x2a0   : > { %v1300_v45 = vpop.f32.mrf.mxu1 }
 0x2a1   : > { %1022 = vst.msk [vmem:[%s318_s24] sm:$0xf] %vm1021_vm11, %v1203_v44 }
 0x2a2   : > { %v1009_v46 = vpop.f32.mrf.mxu1 }
 0x2a3   : > { %v1204_v47 = vpack.c.bf16 %v1009_v46, %v1009_v46 }
 0x2a4   : > { %v1301_v48 = vpop.f32.mrf.mxu1 }
 0x2a5   : > { %1024 = vst.msk [vmem:[%s318_s24 + $0x4] sm:$0x1] %vm1023_vm12, %v1204_v47 }
 0x2a6 PF: > { %s19_s27 = sadd.s32 1, %s1374_s27  }
 0x2a7   : > { %p16_p4 = scmp.ge.s32.totalorder %s19_s27, 4  }
 0x2a9   :  { %18 = sbr.rel (!%p16_p4) target bundleno = 1 (0x1), region = 92 }

// kernel: rep_unet_forward.9
= control target key start
LH: loop header
LB: loop body
LE: loop exit
PB: predicated region body
PF: predicated region fallthrough
CT: control target
= control target key end

     0   :  { %s2223_s13 = smov 0   ;;  %s2688_s0 = inlined_call_operand.vmem [shape: bf16[2,4,128], index: 0, kind: input, shape index: {}]   ;;  %s2689_s1 = inlined_call_operand.vmem [shape: bf16[128,160], index: 1, kind: input, shape index: {}]   ;;  %s2690_s2 = inlined_call_operand.vmem [shape: bf16[128,160], index: 2, kind: input, shape index: {}]   ;;  %s2691_s3 = inlined_call_operand.vmem [shape: f32[1,160], index: 3, kind: input, shape index: {}]   ;;  %s2692_s4 = inlined_call_operand.vmem [shape: bf16[3,8,4], index: 4, kind: input, shape index: {}]   ;;  %s2693_s5 = inlined_call_operand.vmem [shape: bf16[3,8,4], index: 5, kind: input, shape index: {}]   ;;  %s2694_s6 = inlined_call_operand.vmem [shape: bf16[2,10,160], index: 6, kind: input, shape index: {}]   ;;  %s2695_s7 = inlined_call_operand.vmem [shape: bf16[3,160,128], index: 7, kind: input, shape index: {}]   ;;  %s2696_s8 = inlined_call_operand.vmem [shape: bf16[3,160,128], index: 8, kind: input, shape index: {}]   ;;  %s2697_s9 = inlined_call_operand.vmem [shape: f32[1,128], index: 9, kind: input, shape index: {}]   ;;  %s2698_s10 = inlined_call_operand.vmem [shape: bf16[2,8,128], index: 10, kind: output, shape index: {}]  }
   0x1 LB: > { %s1823_s14 = sadd.s32 4294967295, %s2165_s13   ;;  %p1827_p0 = scmp.ge.s32.totalorder %s2165_s13, 1  ;;  %s2165_s13 = sphi %s2223_s13, %s20_s13  }
   0x2   : > { %p321_p1 = scmp.lt.s32.totalorder %s2165_s13, 3 }
   0x4   : > { %p322_p2 = pnand %p1827_p0, %p321_p1 }
   0x5   : > { %p362_p3 = scmp.lt.s32.totalorder (!%p322_p2), %s1823_s14, 1 }
   0x6   : > { %325 = sbr.rel (%p322_p2) target bundleno = 1068 (0x42c), region = 60 }
   0xb   : > { %v2045_v0 = vld [vmem:[%s2689_s1 + $0x74] ss:$8 sps:$4 sm:$0xff]   ;;  %v2167_v2 = vmov 0   ;;  %v2049_v3 = vld [vmem:[%s2689_s1 + $0x70] ss:$8 sps:$4 sm:$0xff]   ;;  %s2700_s14 = smov (!%p362_p3, %s1823_s14), 1  ;;  %v395_v34 = vlaneseq }
   0xc   : > { %v2047_v1 = vld [vmem:[%s2690_s2 + $0x74] ss:$8 sps:$4 sm:$0xff]   ;;  %517 = vmatprep.mubr.bf16.mxu0 %v2167_v2  ;;  %656 = vmatprep.mubr.bf16.mxu1 %v2167_v2  ;;  %v2050_v4 = vld [vmem:[%s2690_s2 + $0x70] ss:$8 sps:$4 sm:$0xff]   ;;  %v2051_v5 = vld [vmem:[%s2689_s1 + $0x64] ss:$8 sps:$4 sm:$0xff]  }
   0xd   : > { %485 = vmatprep.subr.bf16.mxu0 %v2045_v0  ;;  %624 = vmatprep.subr.bf16.mxu1 %v2047_v1  ;;  %v2053_v6 = vld [vmem:[%s2690_s2 + $0x64] ss:$8 sps:$4 sm:$0xff]   ;;  %v2055_v7 = vld [vmem:[%s2689_s1 + $0x60] ss:$8 sps:$4 sm:$0xff]   ;;  %v2057_v9 = vld [vmem:[%s2689_s1 + $0x54] ss:$8 sps:$4 sm:$0xff]  }
   0xe   : > { %486 = vmatpush1.bf16.msra.mxu0 %v2049_v3  ;;  %625 = vmatpush1.bf16.msra.mxu1 %v2050_v4  ;;  %v2056_v8 = vld [vmem:[%s2690_s2 + $0x60] ss:$8 sps:$4 sm:$0xff]   ;;  %v2059_v10 = vld [vmem:[%s2690_s2 + $0x54] ss:$8 sps:$4 sm:$0xff]   ;;  %v2061_v11 = vld [vmem:[%s2689_s1 + $0x50] ss:$8 sps:$4 sm:$0xff]  }
   0xf   : > { %487 = vmatprep.subr.bf16.mxu0 %v2051_v5  ;;  %626 = vmatprep.subr.bf16.mxu1 %v2053_v6  ;;  %v2062_v12 = vld [vmem:[%s2690_s2 + $0x50] ss:$8 sps:$4 sm:$0xff]   ;;  %v2063_v13 = vld [vmem:[%s2689_s1 + $0x44] ss:$8 sps:$4 sm:$0xff]   ;;  %v2067_v15 = vld [vmem:[%s2689_s1 + $0x40] ss:$8 sps:$4 sm:$0xff]  }
  0x10   : > { %v2065_v14 = vld [vmem:[%s2690_s2 + $0x44] ss:$8 sps:$4 sm:$0xff]   ;;  %v2068_v16 = vld [vmem:[%s2690_s2 + $0x40] ss:$8 sps:$4 sm:$0xff]   ;;  %v2069_v17 = vld [vmem:[%s2689_s1 + $0x34] ss:$8 sps:$4 sm:$0xff]  }
  0x11   : > { %v2071_v18 = vld [vmem:[%s2690_s2 + $0x34] ss:$8 sps:$4 sm:$0xff]   ;;  %v2073_v19 = vld [vmem:[%s2689_s1 + $0x30] ss:$8 sps:$4 sm:$0xff]   ;;  %v2075_v21 = vld [vmem:[%s2689_s1 + $0x24] ss:$8 sps:$4 sm:$0xff]  }
  0x12   : > { %488 = vmatpush1.bf16.msra.mxu0 %v2055_v7  ;;  %627 = vmatpush1.bf16.msra.mxu1 %v2056_v8  ;;  %v2074_v20 = vld [vmem:[%s2690_s2 + $0x30] ss:$8 sps:$4 sm:$0xff]   ;;  %v2077_v22 = vld [vmem:[%s2690_s2 + $0x24] ss:$8 sps:$4 sm:$0xff]   ;;  %v2079_v23 = vld [vmem:[%s2689_s1 + $0x20] ss:$8 sps:$4 sm:$0xff]  }
  0x13   : > { %489 = vmatprep.subr.bf16.mxu0 %v2057_v9  ;;  %628 = vmatprep.subr.bf16.mxu1 %v2059_v10  ;;  %v2080_v24 = vld [vmem:[%s2690_s2 + $0x20] ss:$8 sps:$4 sm:$0xff]   ;;  %v2081_v25 = vld [vmem:[%s2689_s1 + $0x14] ss:$8 sps:$4 sm:$0xff]   ;;  %s1828_s11 = sshll.u32 %s2700_s14, 1  ;;  %v396_v35 = vshrl.u32 %v395_v34, 7 }
  0x14   : > { %v2083_v26 = vld [vmem:[%s2690_s2 + $0x14] ss:$8 sps:$4 sm:$0xff]   ;;  %v2085_v27 = vld [vmem:[%s2689_s1 + $0x10] ss:$8 sps:$4 sm:$0xff]   ;;  %v2087_v29 = vld [vmem:[%s2689_s1 + $0x4] ss:$8 sps:$4 sm:$0xff]   ;;  %s365_s28 = scalar_lea.vmem %s2688_s0, %s1828_s11 }
  0x15   : > { %v2086_v28 = vld [vmem:[%s2690_s2 + $0x10] ss:$8 sps:$4 sm:$0xff]   ;;  %v2089_v30 = vld [vmem:[%s2690_s2 + $0x4] ss:$8 sps:$4 sm:$0xff]   ;;  %v2091_v31 = vld [vmem:[%s2689_s1] ss:$8 sps:$4 sm:$0xff]  }
  0x16   : > { %490 = vmatpush1.bf16.msra.mxu0 %v2061_v11  ;;  %629 = vmatpush1.bf16.msra.mxu1 %v2062_v12  ;;  %v2092_v32 = vld [vmem:[%s2690_s2] ss:$8 sps:$4 sm:$0xff]   ;;  %v397_v36 = vsub.s32 0, %v396_v35  ;;  %v401_v38 = vsub.s32 1, %v396_v35  ;;  %s2035_s11 = sshll.u32 %s2700_s14, 4  ;;  %vm673_vm0 = vcmask 1041408  }
  0x17   : > { %491 = vmatprep.subr.bf16.mxu0 %v2063_v13  ;;  %630 = vmatprep.subr.bf16.mxu1 %v2065_v14  ;;  %v376_v33 = vld [vmem:[%s365_s28] sm:$0x3]  ;;  %s2348_s16 = scalar_lea.vmem %s2694_s6, %s2035_s11  ;;  %vm669_vm1 = vcmask 31744   ;;  %v2093_v62 = vld [vmem:[%s2696_s8 + $0x38] sm:$0xff]   ;;  %vm880_vm2 = vcmask 261120   ;;  %v2095_v1 = vld [vmem:[%s2696_s8 + $0x30] sm:$0xff]  }
  0x18   : > { %v393_v37 = vld [vmem:[%s2691_s3] sm:$0x3]  ;;  %v2094_v63 = vld [vmem:[%s2695_s7 + $0x38] sm:$0xff]   ;;  %v2096_v3 = vld [vmem:[%s2695_s7 + $0x30] sm:$0xff]   ;;  %s1831_s11 = sshll.u32 %s2700_s14, 2 }
  0x19   : > { %v398_v39 = vrot.slane %v393_v37, %v397_v36  ;;  %v402_v40 = vrot.slane %v393_v37, %v401_v38  ;;  %v668_v59 = vld [vmem:[%s2693_s5] sm:$0xf]  ;;  %v2097_v4 = vld [vmem:[%s2696_s8 + $0x28] sm:$0xff]   ;;  %v2101_v8 = vld [vmem:[%s2696_s8 + $0x18] sm:$0xff]   ;;  %s374_s17 = scalar_lea.vmem %s2698_s10, %s1831_s11 }
  0x1a   : > { %492 = vmatpush1.bf16.msra.mxu0 %v2067_v15  ;;  %631 = vmatpush1.bf16.msra.mxu1 %v2068_v16  ;;  %v2368_v60 = vld [vmem:[%s2348_s16] sm:$0xff]  ;;  %v2098_v5 = vld [vmem:[%s2695_s7 + $0x28] sm:$0xff]   ;;  %v2102_v9 = vld [vmem:[%s2695_s7 + $0x18] sm:$0xff]  }
  0x1b   : > { %493 = vmatprep.subr.bf16.mxu0 %v2069_v17  ;;  %632 = vmatprep.subr.bf16.mxu1 %v2071_v18  ;;  %v667_v61 = vld [vmem:[%s2692_s4] sm:$0xf]  ;;  %v1869_v0 = vcombine.high %v2368_v60, %v2368_v60  ;;  %v2103_v10 = vld [vmem:[%s2696_s8 + $0x10] sm:$0xff]   ;;  %v2105_v12 = vld [vmem:[%s2696_s8 + $0x8] sm:$0xff]  }
  0x1c   : > { %v2099_v6 = vld [vmem:[%s2696_s8 + $0x20] sm:$0xff]   ;;  %v2104_v11 = vld [vmem:[%s2695_s7 + $0x10] sm:$0xff]   ;;  %v2106_v13 = vld [vmem:[%s2695_s7 + $0x8] sm:$0xff]  }
  0x1d   : > { %v2100_v7 = vld [vmem:[%s2695_s7 + $0x20] sm:$0xff]   ;;  %v2109_v16 = vld [vmem:[%s2696_s8 + $0x48] sm:$0xff]   ;;  %v2121_v34 = vld [vmem:[%s2696_s8 + $0x58] sm:$0xff]  }
  0x1e   : > { %494 = vmatpush1.bf16.msra.mxu0 %v2073_v19  ;;  %633 = vmatpush1.bf16.msra.mxu1 %v2074_v20  ;;  %v2107_v14 = vld [vmem:[%s2696_s8] sm:$0xff]   ;;  %v2110_v17 = vld [vmem:[%s2695_s7 + $0x48] sm:$0xff]   ;;  %v2122_v36 = vld [vmem:[%s2696_s8 + $0x50] sm:$0xff]  }
  0x1f   : > { %495 = vmatprep.subr.bf16.mxu0 %v2075_v21  ;;  %634 = vmatprep.subr.bf16.mxu1 %v2077_v22  ;;  %v2108_v15 = vld [vmem:[%s2695_s7] sm:$0xff]   ;;  %v2453_v18 = vld [vmem:[%s2348_s16 + $0x8] sm:$0x11]  ;;  %v1868_v22 = vcombine.low %v2368_v60, %v2368_v60  ;;  %v2123_v38 = vld [vmem:[%s2696_s8 + $0x98] sm:$0xff]  }
  0x20   : > { %v2111_v19 = vld [vmem:[%s2696_s8 + $0x40] sm:$0xff]   ;;  %v1939_v21 = vcombine.high %v2368_v60, %v2453_v18  ;;  %v1938_v35 = vcombine.low %v2368_v60, %v2453_v18  ;;  %v2129_v60 = vld [vmem:[%s2695_s7 + $0x78] sm:$0xff]  }
  0x21   : > { %v2112_v20 = vld [vmem:[%s2695_s7 + $0x40] sm:$0xff]  }
  0x22   : > { %496 = vmatpush1.bf16.msra.mxu0 %v2079_v23  ;;  %635 = vmatpush1.bf16.msra.mxu1 %v2080_v24  ;;  %v1183_v23 = vshll.u32 %v1939_v21, 16  ;;  %v1181_v24 = vshrl.u32 %v1939_v21, 16  ;;  %v1176_v37 = vshll.u32 %v1938_v35, 16 }
  0x23   : > { %497 = vmatprep.subr.bf16.mxu0 %v2081_v25  ;;  %636 = vmatprep.subr.bf16.mxu1 %v2083_v26  ;;  %v1893_v26 = vld [vmem:[%s2693_s5 + $0x4] sm:$0xf] }
  0x24   : > { %v1185_v25 = vrot.slane %v1183_v23, 1 }
  0x26   : > { %498 = vmatpush1.bf16.msra.mxu0 %v2085_v27  ;;  %637 = vmatpush1.bf16.msra.mxu1 %v2086_v28  ;;  %v2115_v27 = vld [vmem:[%s2696_s8 + $0x88] sm:$0xff]   ;;  %v1186_v28 = vor.u32 %v1185_v25, %v1181_v24 }
  0x27   : > { %499 = vmatprep.subr.bf16.mxu0 %v2087_v29  ;;  %638 = vmatprep.subr.bf16.mxu1 %v2089_v30  ;;  %v2116_v29 = vld [vmem:[%s2696_s8 + $0x80] sm:$0xff]   ;;  %v2117_v30 = vld [vmem:[%s2696_s8 + $0x78] sm:$0xff]  }
  0x2a   : > { %500 = vmatpush1.bf16.msra.mxu0 %v2091_v31  ;;  %639 = vmatpush1.bf16.msra.mxu1 %v2092_v32  ;;  %v2118_v31 = vld [vmem:[%s2696_s8 + $0x70] sm:$0xff]   ;;  %v2119_v32 = vld [vmem:[%s2696_s8 + $0x68] sm:$0xff]  }
  0x2d   : > { %518 = vmatmul.mubr.bf16.vlgmr.msra.gmra.mxu0 %v376_v33  ;;  %657 = vmatmul.mubr.bf16.vlgmr.msra.gmra.mxu1 %v376_v33  ;;  %v2120_v33 = vld [vmem:[%s2696_s8 + $0x60] sm:$0xff]  }
  0x2e   : > { %712 = vmatprep.mubr.bf16.mxu0 %v2167_v2  ;;  %762 = vmatprep.mubr.bf16.mxu1 %v2167_v2 }
  0xed   : > { %v519_v41 = vpop.f32.mrf.mxu0  ;;  %v658_v42 = vpop.f32.mrf.mxu1 }
  0xee   : > { %v520_v43 = vadd.f32 %v519_v41, %v398_v39  ;;  %v659_v44 = vadd.f32 %v658_v42, %v398_v39  ;;  %v1174_v39 = vshrl.u32 %v1938_v35, 16  ;;  %v2124_v41 = vld [vmem:[%s2696_s8 + $0x90] sm:$0xff]  }
  0xef   : > { %v521_v45 = vpop.f32.mrf.mxu0  ;;  %v660_v46 = vpop.f32.mrf.mxu1 }
  0xf0   : > { %v526_v47 = vpack.c.bf16 %v520_v43, %v520_v43  ;;  %v665_v48 = vpack.c.bf16 %v659_v44, %v659_v44  ;;  %v522_v49 = vadd.f32 %v521_v45, %v402_v40  ;;  %v661_v50 = vadd.f32 %v660_v46, %v402_v40 }
  0xf1   : > { %v523_v51 = vpop.f32.mrf.mxu0  ;;  %v662_v52 = vpop.f32.mrf.mxu1  ;;  %v1178_v40 = vrot.slane %v1176_v37, 1  ;;  %v2138_v37 = vld [vmem:[%s2695_s7 + $0xd8] sm:$0xff]  }
  0xf2   : > { %v2350_v53 = vpack.c.bf16 %v522_v49, %v522_v49  ;;  %v2352_v54 = vpack.c.bf16 %v661_v50, %v661_v50  ;;  %v2355_v57 = vsel %vm673_vm0, %v526_v47, 0  ;;  %v2358_v58 = vsel %vm673_vm0, %v665_v48, 0 }
  0xf3   : > { %v524_v55 = vpop.f32.mrf.mxu0  ;;  %v663_v56 = vpop.f32.mrf.mxu1  ;;  %v1179_v42 = vor.u32 %v1178_v40, %v1174_v39  ;;  %v2144_v39 = vld [vmem:[%s2695_s7 + $0xc0] sm:$0xff]   ;;  %v2146_v40 = vld [vmem:[%s2695_s7 + $0xb8] sm:$0xff]  }
  0xf4   : > { %1864 = vmatprep.subr.msk.bf16.mxu0 %vm673_vm0, %v2352_v54  ;;  %1866 = vmatprep.subr.msk.bf16.mxu1 %vm673_vm0, %v2350_v53 }
  0xf5   : > { %695 = vmatpush1.bf16.msra.mxu0 %v2358_v58  ;;  %745 = vmatpush1.bf16.msra.mxu1 %v2355_v57 }
  0xf6   : > { %884 = vmatprep.subr.bf16.mxu0 %v2167_v2  ;;  %987 = vmatprep.subr.bf16.mxu1 %v2167_v2 }
  0xf8   : > { %1865 = vmatmul.mubr.msk.bf16.vlgmr.msra.gmra.mxu0 %vm669_vm1, %v668_v59  ;;  %1867 = vmatmul.mubr.msk.bf16.vlgmr.msra.gmra.mxu1 %vm669_vm1, %v667_v61  ;;  %v2128_v59 = vld [vmem:[%s2695_s7 + $0x80] sm:$0xff]   ;;  %v2130_v61 = vld [vmem:[%s2695_s7 + $0x70] sm:$0xff]  }
  0xf9   : > { %885 = vmatpush1.bf16.msra.mxu0 %v2093_v62  ;;  %988 = vmatpush1.bf16.msra.mxu1 %v2094_v63  ;;  %v2131_v62 = vld [vmem:[%s2695_s7 + $0x68] sm:$0xff]   ;;  %v2132_v63 = vld [vmem:[%s2695_s7 + $0x60] sm:$0xff]  }
  0xfa   : > { %886 = vmatprep.subr.bf16.mxu0 %v2167_v2  ;;  %989 = vmatprep.subr.bf16.mxu1 %v2167_v2 }
  0xfb   : > { %1880 = vmatprep.mubr.msk.bf16.mxu0 %vm880_vm2, %v1869_v0  ;;  %v2133_v0 = vld [vmem:[%s2695_s7 + $0x58] sm:$0xff]  }
  0xfd   : > { %887 = vmatpush1.bf16.msra.mxu0 %v2095_v1  ;;  %990 = vmatpush1.bf16.msra.mxu1 %v2096_v3  ;;  %v2134_v3 = vld [vmem:[%s2695_s7 + $0x50] sm:$0xff]  }
  0xfe   : > { %888 = vmatprep.subr.bf16.mxu0 %v2167_v2  ;;  %991 = vmatprep.subr.bf16.mxu1 %v2167_v2 }
 0x101   : > { %889 = vmatpush1.bf16.msra.mxu0 %v2097_v4  ;;  %992 = vmatpush1.bf16.msra.mxu1 %v2098_v5 }
 0x102   : > { %890 = vmatprep.subr.bf16.mxu0 %v2167_v2  ;;  %993 = vmatprep.subr.bf16.mxu1 %v2167_v2 }
 0x105   : > { %891 = vmatpush1.bf16.msra.mxu0 %v2099_v6  ;;  %994 = vmatpush1.bf16.msra.mxu1 %v2100_v7  ;;  %v2135_v6 = vld [vmem:[%s2695_s7 + $0x98] sm:$0xff]  }
 0x106   : > { %892 = vmatprep.subr.bf16.mxu0 %v2167_v2  ;;  %995 = vmatprep.subr.bf16.mxu1 %v2167_v2 }
 0x109   : > { %893 = vmatpush1.bf16.msra.mxu0 %v2101_v8  ;;  %996 = vmatpush1.bf16.msra.mxu1 %v2102_v9  ;;  %v2136_v8 = vld [vmem:[%s2695_s7 + $0x90] sm:$0xff]  }
 0x10a   : > { %894 = vmatprep.subr.bf16.mxu0 %v2167_v2  ;;  %997 = vmatprep.subr.bf16.mxu1 %v2167_v2 }
 0x10d   : > { %895 = vmatpush1.bf16.msra.mxu0 %v2103_v10  ;;  %998 = vmatpush1.bf16.msra.mxu1 %v2104_v11 }
 0x10e   : > { %896 = vmatprep.subr.bf16.mxu0 %v2167_v2  ;;  %999 = vmatprep.subr.bf16.mxu1 %v2167_v2 }
 0x111   : > { %897 = vmatpush1.bf16.msra.mxu0 %v2105_v12  ;;  %1000 = vmatpush1.bf16.msra.mxu1 %v2106_v13  ;;  %v1963_v13 = vld [vmem:[%s2693_s5 + $0x8] sm:$0xf] }
 0x112   : > { %898 = vmatprep.subr.bf16.mxu0 %v2167_v2  ;;  %1001 = vmatprep.subr.bf16.mxu1 %v2167_v2 }
 0x115   : > { %899 = vmatpush1.bf16.msra.mxu0 %v2107_v14  ;;  %1002 = vmatpush1.bf16.msra.mxu1 %v2108_v15  ;;  %v2137_v14 = vld [vmem:[%s2696_s8 + $0xd8] sm:$0xff]   ;;  %v2139_v15 = vld [vmem:[%s2696_s8 + $0xd0] sm:$0xff]  }
 0x116   : > { %912 = vmatprep.subr.bf16.mxu0 %v2167_v2  ;;  %1015 = vmatprep.subr.bf16.mxu1 %v2167_v2 }
 0x119   : > { %913 = vmatpush2.bf16.msra.mxu0 %v2109_v16  ;;  %1016 = vmatpush2.bf16.msra.mxu1 %v2110_v17  ;;  %v2143_v16 = vld [vmem:[%s2696_s8 + $0xc0] sm:$0xff]   ;;  %v2145_v17 = vld [vmem:[%s2696_s8 + $0xb8] sm:$0xff]  }
 0x11a   : > { %914 = vmatprep.subr.bf16.mxu0 %v2167_v2  ;;  %1017 = vmatprep.subr.bf16.mxu1 %v2167_v2 }
 0x11d   : > { %915 = vmatpush2.bf16.msra.mxu0 %v2111_v19  ;;  %1018 = vmatpush2.bf16.msra.mxu1 %v2112_v20  ;;  %v2147_v19 = vld [vmem:[%s2696_s8 + $0xb0] sm:$0xff]  }
 0x11e   : > { %1894 = vmatprep.subr.msk.bf16.mxu0 %vm673_vm0, %v2352_v54  ;;  %1896 = vmatprep.subr.msk.bf16.mxu1 %vm673_vm0, %v2350_v53 }
 0x120   : > { %917 = vmatmul.mubr.bf16.vlgmr.msra.gmra.mxu0 %v1868_v22 }
 0x121   : > { %1049 = vmatpush1.bf16.msra.mxu0 %v2358_v58  ;;  %1066 = vmatprep.mubr.bf16.mxu0 %v2167_v2 }
 0x122   : > { %1251 = vmatprep.subr.bf16.mxu0 %v2167_v2 }
 0x128   : > { %1895 = vmatmul.mubr.msk.bf16.vlgmr.msra.gmra.mxu0 %vm669_vm1, %v1893_v26 }
 0x129   : > { %1252 = vmatpush1.bf16.msra.mxu0 %v2115_v27  ;;  %1950 = vmatprep.mubr.msk.bf16.mxu0 %vm880_vm2, %v1186_v28 }
 0x12a   : > { %1253 = vmatprep.subr.bf16.mxu0 %v2167_v2 }
 0x12d   : > { %1254 = vmatpush1.bf16.msra.mxu0 %v2116_v29 }
 0x12e   : > { %1255 = vmatprep.subr.bf16.mxu0 %v2167_v2 }
 0x131   : > { %1256 = vmatpush1.bf16.msra.mxu0 %v2117_v30 }
 0x132   : > { %1257 = vmatprep.subr.bf16.mxu0 %v2167_v2 }
 0x135   : > { %1258 = vmatpush1.bf16.msra.mxu0 %v2118_v31 }
 0x136   : > { %1259 = vmatprep.subr.bf16.mxu0 %v2167_v2 }
 0x139   : > { %1260 = vmatpush1.bf16.msra.mxu0 %v2119_v32 }
 0x13a   : > { %1261 = vmatprep.subr.bf16.mxu0 %v2167_v2 }
 0x13d   : > { %1262 = vmatpush1.bf16.msra.mxu0 %v2120_v33 }
 0x13e   : > { %1263 = vmatprep.subr.bf16.mxu0 %v2167_v2 }
 0x141   : > { %1264 = vmatpush1.bf16.msra.mxu0 %v2121_v34 }
 0x142   : > { %1265 = vmatprep.subr.bf16.mxu0 %v2167_v2 }
 0x145   : > { %1266 = vmatpush1.bf16.msra.mxu0 %v2122_v36  ;;  %v1962_v36 = vld [vmem:[%s2692_s4 + $0x8] sm:$0xf] }
 0x146   : > { %1279 = vmatprep.subr.bf16.mxu0 %v2167_v2 }
 0x149   : > { %1280 = vmatpush2.bf16.msra.mxu0 %v2123_v38  ;;  %v2140_v38 = vld [vmem:[%s2695_s7 + $0xd0] sm:$0xff]  }
 0x14a   : > { %1281 = vmatprep.subr.bf16.mxu0 %v2167_v2 }
 0x14d   : > { %1282 = vmatpush2.bf16.msra.mxu0 %v2124_v41  ;;  %v2148_v41 = vld [vmem:[%s2695_s7 + $0xb0] sm:$0xff]  }
 0x14e   : > { %1964 = vmatprep.subr.msk.bf16.mxu0 %vm673_vm0, %v2352_v54  ;;  %v1892_v54 = vld [vmem:[%s2692_s4 + $0x4] sm:$0xf] }
 0x150   : > { %1284 = vmatmul.mubr.bf16.vlgmr.msra.gmra.mxu0 %v1179_v42  ;;  %v2149_v42 = vld [vmem:[%s2696_s8 + $0xa8] sm:$0xff]  }
 0x151   : > { %1417 = vmatpush1.bf16.msra.mxu0 %v2358_v58  ;;  %1434 = vmatprep.mubr.bf16.mxu0 %v2167_v2  ;;  %v2127_v58 = vld [vmem:[%s2695_s7 + $0x88] sm:$0xff]  }
 0x152   : > { %1603 = vmatprep.subr.bf16.mxu0 %v2167_v2 }
 0x158   : > { %1965 = vmatmul.mubr.msk.bf16.vlgmr.msra.gmra.mxu0 %vm669_vm1, %v1963_v13 }
 0x159   : > { %1604 = vmatpush1.bf16.msra.mxu0 %v2137_v14 }
 0x15a   : > { %1605 = vmatprep.subr.bf16.mxu0 %v2167_v2 }
 0x15d   : > { %1606 = vmatpush1.bf16.msra.mxu0 %v2139_v15 }
 0x15e   : > { %1607 = vmatprep.subr.bf16.mxu0 %v2167_v2 }
 0x1b8   : > { %v714_v43 = vpop.f32.mrf.mxu0  ;;  %v764_v44 = vpop.f32.mrf.mxu1 }
 0x1b9   : > { %v765_v45 = vadd.f32 %v764_v44, %v714_v43  ;;  %v2151_v43 = vld [vmem:[%s2696_s8 + $0xa0] sm:$0xff]   ;;  %v2150_v44 = vld [vmem:[%s2695_s7 + $0xa8] sm:$0xff]  }
 0x1ba   : > { %v716_v46 = vpop.f32.mrf.mxu0  ;;  %v766_v47 = vpop.f32.mrf.mxu1 }
 0x1bb   : > { %v767_v48 = vadd.f32 %v766_v47, %v716_v46  ;;  %v771_v52 = vpack.c.bf16 %v765_v45, %v765_v45  ;;  %v2153_v45 = vld [vmem:[%s2696_s8 + $0xe8] sm:$0xff]   ;;  %v2152_v47 = vld [vmem:[%s2695_s7 + $0xa0] sm:$0xff]  }
 0x1bc   : > { %v718_v49 = vpop.f32.mrf.mxu0  ;;  %v768_v50 = vpop.f32.mrf.mxu1 }
 0x1bd   : > { %v772_v51 = vpack.c.bf16 %v767_v48, %v767_v48  ;;  %v1510_v49 = vld [vmem:[%s2348_s16] sm:$0xee] }
 0x1be   : > { %v719_v55 = vpop.f32.mrf.mxu0  ;;  %v769_v56 = vpop.f32.mrf.mxu1  ;;  %v2155_v50 = vld [vmem:[%s2696_s8 + $0xe0] sm:$0xff]  }
 0x1bf   : > { %1891 = vmatprep.mubr.msk.bf16.mxu1 %vm880_vm2, %v772_v51  ;;  %v2009_v51 = vcombine.high %v1510_v49, %v2453_v18  ;;  %v2008_v55 = vcombine.low %v1510_v49, %v2453_v18  ;;  %v2154_v56 = vld [vmem:[%s2695_s7 + $0xe8] sm:$0xff]  }
 0x1c0   : > { %1020 = vmatmul.mubr.bf16.vlgmr.msra.gmra.mxu1 %v771_v52 }
 0x1c1   : > { %1093 = vmatpush1.bf16.msra.mxu1 %v2355_v57  ;;  %1110 = vmatprep.mubr.bf16.mxu1 %v2167_v2 }
 0x1c2   : > { %1354 = vmatprep.subr.bf16.mxu1 %v2167_v2 }
 0x1c8   : > { %1897 = vmatmul.mubr.msk.bf16.vlgmr.msra.gmra.mxu1 %vm669_vm1, %v1892_v54  ;;  %v1538_v54 = vrot.slane %v2009_v51, 1 }
 0x1c9   : > { %1355 = vmatpush1.bf16.msra.mxu1 %v2127_v58 }
 0x1ca   : > { %1356 = vmatprep.subr.bf16.mxu1 %v2167_v2  ;;  %2020 = vmatprep.mubr.msk.bf16.mxu0 %vm880_vm2, %v1538_v54 }
 0x1cd   : > { %1357 = vmatpush1.bf16.msra.mxu1 %v2128_v59  ;;  %v1537_v59 = vrot.slane %v2008_v55, 1 }
 0x1ce   : > { %1358 = vmatprep.subr.bf16.mxu1 %v2167_v2 }
 0x1d1   : > { %1359 = vmatpush1.bf16.msra.mxu1 %v2129_v60  ;;  %v2156_v60 = vld [vmem:[%s2695_s7 + $0xe0] sm:$0xff]  }
 0x1d2   : > { %1360 = vmatprep.subr.bf16.mxu1 %v2167_v2 }
 0x1d5   : > { %1361 = vmatpush1.bf16.msra.mxu1 %v2130_v61 }
 0x1d6   : > { %1362 = vmatprep.subr.bf16.mxu1 %v2167_v2 }
 0x1d9   : > { %1363 = vmatpush1.bf16.msra.mxu1 %v2131_v62 }
 0x1da   : > { %1364 = vmatprep.subr.bf16.mxu1 %v2167_v2 }
 0x1dd   : > { %1365 = vmatpush1.bf16.msra.mxu1 %v2132_v63 }
 0x1de   : > { %1366 = vmatprep.subr.bf16.mxu1 %v2167_v2 }
 0x1e0   : > { %v2560_v1 = vpop.f32.mrf.mxu0 }
 0x1e1   : > { %1367 = vmatpush1.bf16.msra.mxu1 %v2133_v0 }
 0x1e2   : > { %1368 = vmatprep.subr.bf16.mxu1 %v2167_v2  ;;  %v920_v4 = vpop.f32.mrf.mxu0 }
 0x1e4   : > { %v921_v5 = vpop.f32.mrf.mxu0 }
 0x1e5   : > { %1369 = vmatpush1.bf16.msra.mxu1 %v2134_v3 }
 0x1e6   : > { %1382 = vmatprep.subr.bf16.mxu1 %v2167_v2  ;;  %v922_v7 = vpop.f32.mrf.mxu0 }
 0x1e8   : > { %v1068_v9 = vpop.f32.mrf.mxu0 }
 0x1e9   : > { %1383 = vmatpush2.bf16.msra.mxu1 %v2135_v6 }
 0x1ea   : > { %1384 = vmatprep.subr.bf16.mxu1 %v2167_v2  ;;  %v1070_v10 = vpop.f32.mrf.mxu0 }
 0x1ec   : > { %v1072_v11 = vpop.f32.mrf.mxu0 }
 0x1ed   : > { %1385 = vmatpush2.bf16.msra.mxu1 %v2136_v8 }
 0x1ee   : > { %1966 = vmatprep.subr.msk.bf16.mxu1 %vm673_vm0, %v2350_v53  ;;  %v1073_v12 = vpop.f32.mrf.mxu0  ;;  %v2141_v53 = vld [vmem:[%s2696_s8 + $0xc8] sm:$0xff]  }
 0x1ef   : > { %1608 = vmatpush1.bf16.msra.mxu0 %v2141_v53 }
 0x1f0   : > { %1609 = vmatprep.subr.bf16.mxu0 %v2167_v2 }
 0x1f3   : > { %1610 = vmatpush1.bf16.msra.mxu0 %v2143_v16  ;;  %v2032_v16 = vld [vmem:[%s2697_s9] ss:$0 sm:$0xff] }
 0x1f4   : > { %1611 = vmatprep.subr.bf16.mxu0 %v2167_v2 }
 0x1f7   : > { %1612 = vmatpush1.bf16.msra.mxu0 %v2145_v17 }
 0x1f8   : > { %1613 = vmatprep.subr.bf16.mxu0 %v2167_v2 }
 0x1fb   : > { %1614 = vmatpush1.bf16.msra.mxu0 %v2147_v19 }
 0x1fc   : > { %1615 = vmatprep.subr.bf16.mxu0 %v2167_v2 }
 0x1ff   : > { %1616 = vmatpush1.bf16.msra.mxu0 %v2149_v42 }
 0x200   : > { %1617 = vmatprep.subr.bf16.mxu0 %v2167_v2 }
 0x203   : > { %1618 = vmatpush1.bf16.msra.mxu0 %v2151_v43 }
 0x204   : > { %1631 = vmatprep.subr.bf16.mxu0 %v2167_v2 }
 0x207   : > { %1632 = vmatpush2.bf16.msra.mxu0 %v2153_v45 }
 0x208   : > { %1633 = vmatprep.subr.bf16.mxu0 %v2167_v2 }
 0x20b   : > { %1634 = vmatpush2.bf16.msra.mxu0 %v2155_v50 }
 0x20e   : > { %1636 = vmatmul.mubr.bf16.vlgmr.msra.gmra.mxu0 %v1537_v59 }
 0x210   : > { %v2603_v20 = vpop.f32.mrf.mxu0 }
 0x212   : > { %v1287_v21 = vpop.f32.mrf.mxu0 }
 0x214   : > { %v1288_v22 = vpop.f32.mrf.mxu0 }
 0x216   : > { %v1289_v23 = vpop.f32.mrf.mxu0 }
 0x218   : > { %v1436_v46 = vpop.f32.mrf.mxu0 }
 0x21a   : > { %v1438_v48 = vpop.f32.mrf.mxu0 }
 0x21c   : > { %v1440_v52 = vpop.f32.mrf.mxu0 }
 0x21e   : > { %v1441_v58 = vpop.f32.mrf.mxu0 }
 0x280   : > { %v2606_v24 = vpop.f32.mrf.mxu1 }
 0x281   : > { %v1022_v61 = vadd.f32 %v2606_v24, %v2560_v1 }
 0x282   : > { %v1023_v25 = vpop.f32.mrf.mxu1 }
 0x284   : > { %v1024_v26 = vpop.f32.mrf.mxu1 }
 0x286   : > { %v1025_v27 = vpop.f32.mrf.mxu1 }
 0x288   : > { %v1112_v28 = vpop.f32.mrf.mxu1 }
 0x289   : > { %v1113_v29 = vadd.f32 %v1112_v28, %v1068_v9 }
 0x28a   : > { %v1114_v30 = vpop.f32.mrf.mxu1 }
 0x28b   : > { %v1115_v31 = vadd.f32 %v1114_v30, %v1070_v10  ;;  %v1119_v34 = vpack.c.bf16 %v1113_v29, %v1113_v29 }
 0x28c   : > { %v1116_v32 = vpop.f32.mrf.mxu1 }
 0x28d   : > { %v1120_v33 = vpack.c.bf16 %v1115_v31, %v1115_v31 }
 0x28e   : > { %v1117_v35 = vpop.f32.mrf.mxu1 }
 0x28f   : > { %1961 = vmatprep.mubr.msk.bf16.mxu1 %vm880_vm2, %v1120_v33 }
 0x290   : > { %1387 = vmatmul.mubr.bf16.vlgmr.msra.gmra.mxu1 %v1119_v34 }
 0x291   : > { %1461 = vmatpush1.bf16.msra.mxu1 %v2355_v57  ;;  %1478 = vmatprep.mubr.bf16.mxu1 %v2167_v2  ;;  %v2142_v57 = vld [vmem:[%s2695_s7 + $0xc8] sm:$0xff]  }
 0x292   : > { %1706 = vmatprep.subr.bf16.mxu1 %v2167_v2 }
 0x298   : > { %1967 = vmatmul.mubr.msk.bf16.vlgmr.msra.gmra.mxu1 %vm669_vm1, %v1962_v36 }
 0x299   : > { %1707 = vmatpush1.bf16.msra.mxu1 %v2138_v37 }
 0x29a   : > { %1708 = vmatprep.subr.bf16.mxu1 %v2167_v2 }
 0x29d   : > { %1709 = vmatpush1.bf16.msra.mxu1 %v2140_v38 }
 0x29e   : > { %1710 = vmatprep.subr.bf16.mxu1 %v2167_v2 }
 0x2a1   : > { %1711 = vmatpush1.bf16.msra.mxu1 %v2142_v57 }
 0x2a2   : > { %1712 = vmatprep.subr.bf16.mxu1 %v2167_v2 }
 0x2a5   : > { %1713 = vmatpush1.bf16.msra.mxu1 %v2144_v39 }
 0x2a6   : > { %1714 = vmatprep.subr.bf16.mxu1 %v2167_v2 }
 0x2a9   : > { %1715 = vmatpush1.bf16.msra.mxu1 %v2146_v40 }
 0x2aa   : > { %1716 = vmatprep.subr.bf16.mxu1 %v2167_v2 }
 0x2ad   : > { %1717 = vmatpush1.bf16.msra.mxu1 %v2148_v41 }
 0x2ae   : > { %1718 = vmatprep.subr.bf16.mxu1 %v2167_v2 }
 0x2b1   : > { %1719 = vmatpush1.bf16.msra.mxu1 %v2150_v44 }
 0x2b2   : > { %1720 = vmatprep.subr.bf16.mxu1 %v2167_v2 }
 0x2b5   : > { %1721 = vmatpush1.bf16.msra.mxu1 %v2152_v47 }
 0x2b6   : > { %1734 = vmatprep.subr.bf16.mxu1 %v2167_v2 }
 0x2b9   : > { %1735 = vmatpush2.bf16.msra.mxu1 %v2154_v56 }
 0x2ba   : > { %1736 = vmatprep.subr.bf16.mxu1 %v2167_v2 }
 0x2bd   : > { %1737 = vmatpush2.bf16.msra.mxu1 %v2156_v60 }
 0x2ce   : > { %v1637_v12 = vpop.f32.mrf.mxu0 }
 0x2d0   : > { %v1639_v1 = vpop.f32.mrf.mxu0 }
 0x2d2   : > { %v1640_v13 = vpop.f32.mrf.mxu0 }
 0x2d4   : > { %v1641_v14 = vpop.f32.mrf.mxu0 }
 0x350   : > { %v1388_v18 = vpop.f32.mrf.mxu1 }
 0x351   : > { %v1389_v62 = vadd.f32 %v1388_v18, %v2603_v20 }
 0x352   : > { %v1390_v63 = vpop.f32.mrf.mxu1 }
 0x353   : > { %v1394_v0 = vadd.f32 %v1389_v62, %v1022_v61 }
 0x354   : > { %v1391_v3 = vpop.f32.mrf.mxu1 }
 0x356   : > { %v1392_v4 = vpop.f32.mrf.mxu1 }
 0x358   : > { %v1480_v5 = vpop.f32.mrf.mxu1 }
 0x359   : > { %v1481_v6 = vadd.f32 %v1480_v5, %v1436_v46 }
 0x35a   : > { %v1482_v7 = vpop.f32.mrf.mxu1 }
 0x35b   : > { %v1483_v2 = vadd.f32 %v1482_v7, %v1438_v48  ;;  %v1487_v10 = vpack.c.bf16 %v1481_v6, %v1481_v6 }
 0x35c   : > { %v1484_v8 = vpop.f32.mrf.mxu1 }
 0x35d   : > { %v1488_v9 = vpack.c.bf16 %v1483_v2, %v1483_v2 }
 0x35e   : > { %v1485_v11 = vpop.f32.mrf.mxu1 }
 0x35f   : > { %2031 = vmatprep.mubr.msk.bf16.mxu1 %vm880_vm2, %v1488_v9 }
 0x360   : > { %1739 = vmatmul.mubr.bf16.vlgmr.msra.gmra.mxu1 %v1487_v10 }
 0x420   : > { %v1740_v15 = vpop.f32.mrf.mxu1 }
 0x421   : > { %v1741_v53 = vadd.f32 %v1740_v15, %v1637_v12 }
 0x422   : > { %v1742_v17 = vpop.f32.mrf.mxu1 }
 0x423   : > { %v1746_v19 = vadd.f32 %v1741_v53, %v1394_v0 }
 0x424   : > { %v1743_v20 = vpop.f32.mrf.mxu1 }
 0x425   : > { %v1754_v21 = vadd.f32 %v2032_v16, %v1746_v19 }
 0x426   : > { %v1744_v22 = vpop.f32.mrf.mxu1 }
 0x427   : > { %v1755_v23 = vmax.f32 %v1754_v21, 0.0 }
 0x429   : > { %v1756_v24 = vpack.c.bf16 %v1755_v23, %v1755_v23 }
 0x42b   : > { %1757 = vst [vmem:[%s374_s17] sm:$0xf] %v1756_v24 }
 0x42c PF: > { %s20_s13 = sadd.s32 1, %s2165_s13  }
 0x42d   : > { %p17_p4 = scmp.ge.s32.totalorder %s20_s13, 4  }
 0x42f   :  { %19 = sbr.rel (!%p17_p4) target bundleno = 1 (0x1), region = 101 }

// kernel: rep_unet_forward.11
= control target key start
LH: loop header
LB: loop body
LE: loop exit
PB: predicated region body
PF: predicated region fallthrough
CT: control target
= control target key end

     0   :  { %s488_s12 = smov 0   ;;  %s527_s0 = inlined_call_operand.vmem [shape: bf16[2,128,16], index: 0, kind: input, shape index: {}]   ;;  %s528_s1 = inlined_call_operand.vmem [shape: bf16[32,128], index: 1, kind: input, shape index: {}]   ;;  %s529_s2 = inlined_call_operand.vmem [shape: f32[32,1], index: 2, kind: input, shape index: {}]   ;;  %s530_s3 = inlined_call_operand.vmem [shape: f32[2,32,16], index: 3, kind: output, shape index: {}]  }
   0x1 LB: > { %s385_s13 = sadd.s32 4294967295, %s465_s12   ;;  %p389_p0 = scmp.ge.s32.totalorder %s465_s12, 1  ;;  %s465_s12 = sphi %s488_s12, %s13_s12  }
   0x2   : > { %p137_p1 = scmp.lt.s32.totalorder %s465_s12, 3 }
   0x4   : > { %p138_p2 = pnand %p389_p0, %p137_p1 }
   0x5   : > { %p161_p3 = scmp.lt.s32.totalorder (!%p138_p2), %s385_s13, 1 }
   0x6   : > { %141 = sbr.rel (%p138_p2) target bundleno = 249 (0xf9), region = 32 }
   0xb   : > { %v457_v0 = vld [vmem:[%s528_s1] sm:$0xff]   ;;  %s532_s13 = smov (!%p161_p3, %s385_s13), 1  ;;  %v467_v1 = vmov 0   ;;  %v194_v2 = vld [vmem:[%s529_s2 + $0x10] sm:$0xff]  ;;  %v195_v4 = vld [vmem:[%s529_s2 + $0x18] sm:$0xff]  ;;  %vm325_vm0 = vcmask 130048  }
   0xc   : > { %434 = vmatprep.mubr.bf16.mxu0 %v457_v0  ;;  %448 = vset.pattern.permute.xlu1 %v467_v1  ;;  %v192_v3 = vld [vmem:[%s529_s2] sm:$0xff]  ;;  %s406_s20 = sshll.u32 %s532_s13, 6  ;;  %v193_v5 = vld [vmem:[%s529_s2 + $0x8] sm:$0xff]  ;;  %s407_s30 = sshll.u32 %s532_s13, 5 }
   0xd   : > { %447 = vset.pattern.permute.xlu0 %v467_v1  ;;  %208 = vperm.xlu1 %448, %v194_v2   ;;  %s165_s25 = scalar_lea.vmem %s527_s0, %s406_s20  ;;  %v458_v14 = vld [vmem:[%s528_s1 + $0x8] sm:$0xff]   ;;  %s170_s6 = scalar_lea.vmem %s530_s3, %s407_s30 }
   0xe   : > { %198 = vperm.xlu0 %447, %v192_v3   ;;  %v449_v6 = vld [vmem:[%s165_s25 + $0x38] sm:$0xff]   ;;  %v450_v7 = vld [vmem:[%s165_s25 + $0x30] sm:$0xff]   ;;  %v451_v8 = vld [vmem:[%s165_s25 + $0x28] sm:$0xff]  }
   0xf   : > { %418 = vmatprep.subr.bf16.mxu0 %v449_v6  ;;  %v452_v9 = vld [vmem:[%s165_s25 + $0x20] sm:$0xff]   ;;  %v453_v10 = vld [vmem:[%s165_s25 + $0x18] sm:$0xff]   ;;  %v454_v11 = vld [vmem:[%s165_s25 + $0x10] sm:$0xff]  }
  0x10   : > { %419 = vmatpush3.bf16.msra.mxu0 %v449_v6  ;;  %v455_v12 = vld [vmem:[%s165_s25 + $0x8] sm:$0xff]   ;;  %v456_v13 = vld [vmem:[%s165_s25] sm:$0xff]  }
  0x11   : > { %213 = vperm.xlu1 %448, %v195_v4   ;;  %420 = vmatprep.subr.bf16.mxu0 %v450_v7 }
  0x12   : > { %203 = vperm.xlu0 %447, %v193_v5  }
  0x14   : > { %421 = vmatpush3.bf16.msra.mxu0 %v450_v7 }
  0x15   : > { %422 = vmatprep.subr.bf16.mxu0 %v451_v8 }
  0x18   : > { %423 = vmatpush3.bf16.msra.mxu0 %v451_v8 }
  0x19   : > { %424 = vmatprep.subr.bf16.mxu0 %v452_v9 }
  0x1c   : > { %425 = vmatpush3.bf16.msra.mxu0 %v452_v9 }
  0x1d   : > { %426 = vmatprep.subr.bf16.mxu0 %v453_v10 }
  0x20   : > { %427 = vmatpush3.bf16.msra.mxu0 %v453_v10 }
  0x21   : > { %428 = vmatprep.subr.bf16.mxu0 %v454_v11 }
  0x24   : > { %429 = vmatpush3.bf16.msra.mxu0 %v454_v11 }
  0x25   : > { %430 = vmatprep.subr.bf16.mxu0 %v455_v12 }
  0x28   : > { %431 = vmatpush3.bf16.msra.mxu0 %v455_v12 }
  0x29   : > { %432 = vmatprep.subr.bf16.mxu0 %v456_v13 }
  0x2c   : > { %433 = vmatpush3.bf16.msra.mxu0 %v456_v13 }
  0x2f   : > { %435 = vmatmul.mubr.bf16.vlgmr.msra.gmra.mxu0 %v458_v14 }
  0x88   : > { %v209_v15 = vpop.permute.xlu1 %208 }
  0x89   : > { %v199_v16 = vpop.permute.xlu0 %198 }
  0x8c   : > { %v214_v21 = vpop.permute.xlu1 %213 }
  0x8d   : > { %v204_v24 = vpop.permute.xlu0 %203 }
  0xef   : > { %v436_v17 = vpop.f32.mrf.mxu0 }
  0xf0   : > { %v319_v18 = vadd.f32 %v436_v17, %v209_v15 }
  0xf1   : > { %v310_v19 = vpop.f32.mrf.mxu0 }
  0xf2   : > { %328 = vst.msk [vmem:[%s170_s6 + $0x10] sm:$0xff] %vm325_vm0, %v319_v18  ;;  %v311_v20 = vadd.f32 %v310_v19, %v199_v16 }
  0xf3   : > { %v437_v22 = vpop.f32.mrf.mxu0 }
  0xf4   : > { %326 = vst.msk [vmem:[%s170_s6] sm:$0xff] %vm325_vm0, %v311_v20  ;;  %v322_v23 = vadd.f32 %v437_v22, %v214_v21 }
  0xf5   : > { %v313_v25 = vpop.f32.mrf.mxu0 }
  0xf6   : > { %329 = vst.msk [vmem:[%s170_s6 + $0x18] sm:$0xff] %vm325_vm0, %v322_v23  ;;  %v314_v26 = vadd.f32 %v313_v25, %v204_v24 }
  0xf8   : > { %327 = vst.msk [vmem:[%s170_s6 + $0x8] sm:$0xff] %vm325_vm0, %v314_v26 }
  0xf9 PF: > { %s13_s12 = sadd.s32 1, %s465_s12  }
  0xfa   : > { %p10_p4 = scmp.ge.s32.totalorder %s13_s12, 4  }
  0xfc   :  { %12 = sbr.rel (!%p10_p4) target bundleno = 1 (0x1), region = 62 }

// kernel: rep_unet_forward.10
= control target key start
LH: loop header
LB: loop body
LE: loop exit
PB: predicated region body
PF: predicated region fallthrough
CT: control target
= control target key end

     0   :  { %s2279_s13 = smov 0   ;;  %s2738_s0 = inlined_call_operand.vmem [shape: bf16[2,8,128], index: 0, kind: input, shape index: {}]   ;;  %s2739_s1 = inlined_call_operand.vmem [shape: bf16[128,144], index: 1, kind: input, shape index: {}]   ;;  %s2740_s2 = inlined_call_operand.vmem [shape: bf16[128,144], index: 2, kind: input, shape index: {}]   ;;  %s2741_s3 = inlined_call_operand.vmem [shape: f32[1,144], index: 3, kind: input, shape index: {}]   ;;  %s2742_s4 = inlined_call_operand.vmem [shape: bf16[3,16,8], index: 4, kind: input, shape index: {}]   ;;  %s2743_s5 = inlined_call_operand.vmem [shape: bf16[3,16,8], index: 5, kind: input, shape index: {}]   ;;  %s2744_s6 = inlined_call_operand.vmem [shape: bf16[2,18,144], index: 6, kind: input, shape index: {}]   ;;  %s2745_s7 = inlined_call_operand.vmem [shape: bf16[3,144,128], index: 7, kind: input, shape index: {}]   ;;  %s2746_s8 = inlined_call_operand.vmem [shape: bf16[3,144,128], index: 8, kind: input, shape index: {}]   ;;  %s2747_s9 = inlined_call_operand.vmem [shape: f32[1,128], index: 9, kind: input, shape index: {}]   ;;  %s2748_s10 = inlined_call_operand.vmem [shape: bf16[2,16,128], index: 10, kind: output, shape index: {}]  }
   0x1 LB: > { %s1871_s14 = sadd.s32 4294967295, %s2221_s13   ;;  %p1875_p0 = scmp.ge.s32.totalorder %s2221_s13, 1  ;;  %s2221_s13 = sphi %s2279_s13, %s20_s13  }
   0x2   : > { %p321_p1 = scmp.lt.s32.totalorder %s2221_s13, 3 }
   0x4   : > { %p322_p2 = pnand %p1875_p0, %p321_p1 }
   0x5   : > { %p363_p3 = scmp.lt.s32.totalorder (!%p322_p2), %s1871_s14, 1 }
   0x6   : > { %325 = sbr.rel (%p322_p2) target bundleno = 1084 (0x43c), region = 60 }
   0xb   : > { %v2101_v0 = vld [vmem:[%s2739_s1 + $0x74] ss:$8 sps:$4 sm:$0xff]   ;;  %v2223_v2 = vmov 0   ;;  %v2105_v3 = vld [vmem:[%s2739_s1 + $0x70] ss:$8 sps:$4 sm:$0xff]   ;;  %s2750_s14 = smov (!%p363_p3, %s1871_s14), 1  ;;  %v397_v34 = vlaneseq }
   0xc   : > { %v2103_v1 = vld [vmem:[%s2740_s2 + $0x74] ss:$8 sps:$4 sm:$0xff]   ;;  %519 = vmatprep.mubr.bf16.mxu0 %v2223_v2  ;;  %658 = vmatprep.mubr.bf16.mxu1 %v2223_v2  ;;  %v2106_v4 = vld [vmem:[%s2740_s2 + $0x70] ss:$8 sps:$4 sm:$0xff]   ;;  %v2107_v5 = vld [vmem:[%s2739_s1 + $0x64] ss:$8 sps:$4 sm:$0xff]  }
   0xd   : > { %487 = vmatprep.subr.bf16.mxu0 %v2101_v0  ;;  %626 = vmatprep.subr.bf16.mxu1 %v2103_v1  ;;  %v2109_v6 = vld [vmem:[%s2740_s2 + $0x64] ss:$8 sps:$4 sm:$0xff]   ;;  %v2111_v7 = vld [vmem:[%s2739_s1 + $0x60] ss:$8 sps:$4 sm:$0xff]   ;;  %v2113_v9 = vld [vmem:[%s2739_s1 + $0x54] ss:$8 sps:$4 sm:$0xff]  }
   0xe   : > { %488 = vmatpush1.bf16.msra.mxu0 %v2105_v3  ;;  %627 = vmatpush1.bf16.msra.mxu1 %v2106_v4  ;;  %v2112_v8 = vld [vmem:[%s2740_s2 + $0x60] ss:$8 sps:$4 sm:$0xff]   ;;  %v2115_v10 = vld [vmem:[%s2740_s2 + $0x54] ss:$8 sps:$4 sm:$0xff]   ;;  %v2117_v11 = vld [vmem:[%s2739_s1 + $0x50] ss:$8 sps:$4 sm:$0xff]  }
   0xf   : > { %489 = vmatprep.subr.bf16.mxu0 %v2107_v5  ;;  %628 = vmatprep.subr.bf16.mxu1 %v2109_v6  ;;  %v2118_v12 = vld [vmem:[%s2740_s2 + $0x50] ss:$8 sps:$4 sm:$0xff]   ;;  %v2119_v13 = vld [vmem:[%s2739_s1 + $0x44] ss:$8 sps:$4 sm:$0xff]   ;;  %v2123_v15 = vld [vmem:[%s2739_s1 + $0x40] ss:$8 sps:$4 sm:$0xff]  }
  0x10   : > { %v2121_v14 = vld [vmem:[%s2740_s2 + $0x44] ss:$8 sps:$4 sm:$0xff]   ;;  %v2124_v16 = vld [vmem:[%s2740_s2 + $0x40] ss:$8 sps:$4 sm:$0xff]   ;;  %v2125_v17 = vld [vmem:[%s2739_s1 + $0x34] ss:$8 sps:$4 sm:$0xff]  }
  0x11   : > { %v2127_v18 = vld [vmem:[%s2740_s2 + $0x34] ss:$8 sps:$4 sm:$0xff]   ;;  %v2129_v19 = vld [vmem:[%s2739_s1 + $0x30] ss:$8 sps:$4 sm:$0xff]   ;;  %v2131_v21 = vld [vmem:[%s2739_s1 + $0x24] ss:$8 sps:$4 sm:$0xff]  }
  0x12   : > { %490 = vmatpush1.bf16.msra.mxu0 %v2111_v7  ;;  %629 = vmatpush1.bf16.msra.mxu1 %v2112_v8  ;;  %v2130_v20 = vld [vmem:[%s2740_s2 + $0x30] ss:$8 sps:$4 sm:$0xff]   ;;  %v2133_v22 = vld [vmem:[%s2740_s2 + $0x24] ss:$8 sps:$4 sm:$0xff]   ;;  %v2135_v23 = vld [vmem:[%s2739_s1 + $0x20] ss:$8 sps:$4 sm:$0xff]  }
  0x13   : > { %491 = vmatprep.subr.bf16.mxu0 %v2113_v9  ;;  %630 = vmatprep.subr.bf16.mxu1 %v2115_v10  ;;  %v2136_v24 = vld [vmem:[%s2740_s2 + $0x20] ss:$8 sps:$4 sm:$0xff]   ;;  %v2137_v25 = vld [vmem:[%s2739_s1 + $0x14] ss:$8 sps:$4 sm:$0xff]   ;;  %s1876_s11 = sshll.u32 %s2750_s14, 2  ;;  %v398_v35 = vshrl.u32 %v397_v34, 7 }
  0x14   : > { %v2139_v26 = vld [vmem:[%s2740_s2 + $0x14] ss:$8 sps:$4 sm:$0xff]   ;;  %v2141_v27 = vld [vmem:[%s2739_s1 + $0x10] ss:$8 sps:$4 sm:$0xff]   ;;  %v2143_v29 = vld [vmem:[%s2739_s1 + $0x4] ss:$8 sps:$4 sm:$0xff]   ;;  %s366_s28 = scalar_lea.vmem %s2738_s0, %s1876_s11 }
  0x15   : > { %v2142_v28 = vld [vmem:[%s2740_s2 + $0x10] ss:$8 sps:$4 sm:$0xff]   ;;  %v2145_v30 = vld [vmem:[%s2740_s2 + $0x4] ss:$8 sps:$4 sm:$0xff]   ;;  %v2147_v31 = vld [vmem:[%s2739_s1] ss:$8 sps:$4 sm:$0xff]  }
  0x16   : > { %492 = vmatpush1.bf16.msra.mxu0 %v2117_v11  ;;  %631 = vmatpush1.bf16.msra.mxu1 %v2118_v12  ;;  %v2148_v32 = vld [vmem:[%s2740_s2] ss:$8 sps:$4 sm:$0xff]   ;;  %v399_v36 = vsub.s32 0, %v398_v35  ;;  %v403_v38 = vsub.s32 1, %v398_v35  ;;  %s2091_s11 = smul.u32 24, %s2750_s14  ;;  %vm682_vm0 = vcmask 1043456  }
  0x17   : > { %493 = vmatprep.subr.bf16.mxu0 %v2119_v13  ;;  %632 = vmatprep.subr.bf16.mxu1 %v2121_v14  ;;  %v378_v33 = vld [vmem:[%s366_s28] sm:$0xf]  ;;  %vm678_vm1 = vcmask 64512   ;;  %v2151_v63 = vld [vmem:[%s2746_s8 + $0x38] sm:$0xff]   ;;  %vm892_vm2 = vcmask 130048   ;;  %v2153_v3 = vld [vmem:[%s2746_s8 + $0x30] sm:$0xff]  }
  0x18   : > { %v395_v37 = vld [vmem:[%s2741_s3] sm:$0x3]  ;;  %s2404_s16 = scalar_lea.vmem %s2744_s6, %s2091_s11  ;;  %v2152_v0 = vld [vmem:[%s2745_s7 + $0x38] sm:$0xff]   ;;  %v2154_v4 = vld [vmem:[%s2745_s7 + $0x30] sm:$0xff]   ;;  %vm1199_vm3 = vsmask.f32 7424 }
  0x19   : > { %v400_v39 = vrot.slane %v395_v37, %v399_v36  ;;  %v404_v40 = vrot.slane %v395_v37, %v403_v38  ;;  %v2149_v57 = vld [vmem:[%s2743_s5] sm:$0xff]   ;;  %v2430_v62 = vld [vmem:[%s2404_s16 + $0x8] sm:$0xff]  ;;  %v2159_v9 = vld [vmem:[%s2746_s8 + $0x18] sm:$0xff]   ;;  %vm1577_vm4 = vcmask 1046528   ;;  %s2083_s19 = sshll.u32 %s2750_s14, 3 }
  0x1a   : > { %494 = vmatpush1.bf16.msra.mxu0 %v2123_v15  ;;  %633 = vmatpush1.bf16.msra.mxu1 %v2124_v16  ;;  %v2150_v60 = vld [vmem:[%s2742_s4] sm:$0xff]   ;;  %v2155_v5 = vld [vmem:[%s2746_s8 + $0x28] sm:$0xff]   ;;  %v2160_v10 = vld [vmem:[%s2745_s7 + $0x18] sm:$0xff]   ;;  %s376_s22 = scalar_lea.vmem %s2748_s10, %s2083_s19 }
  0x1b   : > { %495 = vmatprep.subr.bf16.mxu0 %v2125_v17  ;;  %634 = vmatprep.subr.bf16.mxu1 %v2127_v18  ;;  %v2427_v61 = vld [vmem:[%s2404_s16] sm:$0xff]  ;;  %v2156_v6 = vld [vmem:[%s2745_s7 + $0x28] sm:$0xff]   ;;  %v2161_v11 = vld [vmem:[%s2746_s8 + $0x10] sm:$0xff]  }
  0x1c   : > { %v2444_v1 = vcombine.high %v2427_v61, %v2430_v62  ;;  %v2157_v7 = vld [vmem:[%s2746_s8 + $0x20] sm:$0xff]   ;;  %v2162_v12 = vld [vmem:[%s2745_s7 + $0x10] sm:$0xff]   ;;  %v2163_v13 = vld [vmem:[%s2746_s8 + $0x8] sm:$0xff]  }
  0x1d   : > { %v2158_v8 = vld [vmem:[%s2745_s7 + $0x20] sm:$0xff]   ;;  %v2164_v14 = vld [vmem:[%s2745_s7 + $0x8] sm:$0xff]   ;;  %v1166_v17 = vld [vmem:[%s2404_s16 + $0x10] sm:$0x11] }
  0x1e   : > { %496 = vmatpush1.bf16.msra.mxu0 %v2129_v19  ;;  %635 = vmatpush1.bf16.msra.mxu1 %v2130_v20  ;;  %v2165_v15 = vld [vmem:[%s2746_s8] sm:$0xff]   ;;  %v2515_v20 = vcombine.high %v1166_v17, %v1166_v17  ;;  %v2177_v35 = vld [vmem:[%s2746_s8 + $0x58] sm:$0xff]   ;;  %v2178_v36 = vld [vmem:[%s2746_s8 + $0x50] sm:$0xff]   ;;  %v2561_v37 = vcombine.low %v1166_v17, %v1166_v17 }
  0x1f   : > { %497 = vmatprep.subr.bf16.mxu0 %v2131_v21  ;;  %636 = vmatprep.subr.bf16.mxu1 %v2133_v22  ;;  %v2166_v16 = vld [vmem:[%s2745_s7] sm:$0xff]   ;;  %v1215_v21 = vshll.u32 %v2444_v1, 16  ;;  %v1918_v22 = vcombine.low %v2427_v61, %v2430_v62  ;;  %v2195_v17 = vld [vmem:[%s2746_s8 + $0xc8] sm:$0xff]  }
  0x20   : > { %v2167_v18 = vld [vmem:[%s2746_s8 + $0x40] sm:$0xff]  }
  0x21   : > { %v2168_v19 = vld [vmem:[%s2745_s7 + $0x40] sm:$0xff]   ;;  %v1203_v38 = vshll.u32 %v1918_v22, 16 }
  0x22   : > { %498 = vmatpush1.bf16.msra.mxu0 %v2135_v23  ;;  %637 = vmatpush1.bf16.msra.mxu1 %v2136_v24  ;;  %v1213_v23 = vshrl.u32 %v2444_v1, 16  ;;  %v1217_v24 = vrot.slane %v1215_v21, 1  ;;  %v2176_v34 = vld [vmem:[%s2746_s8 + $0x60] sm:$0xff]  }
  0x23   : > { %499 = vmatprep.subr.bf16.mxu0 %v2137_v25  ;;  %638 = vmatprep.subr.bf16.mxu1 %v2139_v26  ;;  %v1220_v25 = vshll.u32 %v2515_v20, 16 }
  0x24   : > { %v1218_v26 = vor.u32 %v1217_v24, %v1213_v23 }
  0x26   : > { %500 = vmatpush1.bf16.msra.mxu0 %v2141_v27  ;;  %639 = vmatpush1.bf16.msra.mxu1 %v2142_v28  ;;  %v1222_v27 = vrot.slane %v1220_v25, 1  ;;  %v2171_v28 = vld [vmem:[%s2743_s5 + $0x8] sm:$0xff]  }
  0x27   : > { %501 = vmatprep.subr.bf16.mxu0 %v2143_v29  ;;  %640 = vmatprep.subr.bf16.mxu1 %v2145_v30  ;;  %v2172_v29 = vld [vmem:[%s2746_s8 + $0x80] sm:$0xff]  }
  0x28   : > { %v1223_v30 = vsel %vm1199_vm3, %v1218_v26, %v1222_v27 }
  0x2a   : > { %502 = vmatpush1.bf16.msra.mxu0 %v2147_v31  ;;  %641 = vmatpush1.bf16.msra.mxu1 %v2148_v32  ;;  %v2173_v31 = vld [vmem:[%s2746_s8 + $0x78] sm:$0xff]   ;;  %v2174_v32 = vld [vmem:[%s2746_s8 + $0x70] sm:$0xff]  }
  0x2d   : > { %520 = vmatmul.mubr.bf16.vlgmr.msra.gmra.mxu0 %v378_v33  ;;  %659 = vmatmul.mubr.bf16.vlgmr.msra.gmra.mxu1 %v378_v33  ;;  %v2175_v33 = vld [vmem:[%s2746_s8 + $0x68] sm:$0xff]  }
  0x2e   : > { %721 = vmatprep.mubr.bf16.mxu0 %v2223_v2  ;;  %778 = vmatprep.mubr.bf16.mxu1 %v2223_v2 }
  0xed   : > { %v521_v41 = vpop.f32.mrf.mxu0  ;;  %v660_v42 = vpop.f32.mrf.mxu1 }
  0xee   : > { %v522_v43 = vadd.f32 %v521_v41, %v400_v39  ;;  %v661_v44 = vadd.f32 %v660_v42, %v400_v39  ;;  %v2179_v39 = vld [vmem:[%s2746_s8 + $0x48] sm:$0xff]   ;;  %v1205_v41 = vrot.slane %v1203_v38, 1  ;;  %v1208_v42 = vshll.u32 %v2561_v37, 16 }
  0xef   : > { %v523_v45 = vpop.f32.mrf.mxu0  ;;  %v662_v46 = vpop.f32.mrf.mxu1 }
  0xf0   : > { %v528_v47 = vpack.c.bf16 %v522_v43, %v522_v43  ;;  %v667_v48 = vpack.c.bf16 %v661_v44, %v661_v44  ;;  %v524_v49 = vadd.f32 %v523_v45, %v404_v40  ;;  %v663_v50 = vadd.f32 %v662_v46, %v404_v40  ;;  %v2180_v43 = vld [vmem:[%s2746_s8 + $0x88] sm:$0xff]  }
  0xf1   : > { %v525_v51 = vpop.f32.mrf.mxu0  ;;  %v664_v52 = vpop.f32.mrf.mxu1  ;;  %v1201_v40 = vshrl.u32 %v1918_v22, 16  ;;  %v1210_v45 = vrot.slane %v1208_v42, 1  ;;  %v2196_v42 = vld [vmem:[%s2745_s7 + $0xc8] sm:$0xff]  }
  0xf2   : > { %v2406_v53 = vpack.c.bf16 %v524_v49, %v524_v49  ;;  %v2408_v54 = vpack.c.bf16 %v663_v50, %v663_v50  ;;  %v2414_v58 = vsel %vm682_vm0, %v528_v47, 0  ;;  %v2417_v59 = vsel %vm682_vm0, %v667_v48, 0 }
  0xf3   : > { %v526_v55 = vpop.f32.mrf.mxu0  ;;  %v665_v56 = vpop.f32.mrf.mxu1  ;;  %v1206_v44 = vor.u32 %v1205_v41, %v1201_v40  ;;  %v2194_v41 = vld [vmem:[%s2742_s4 + $0x10] sm:$0xff]  }
  0xf4   : > { %1913 = vmatprep.subr.msk.bf16.mxu0 %vm682_vm0, %v2408_v54  ;;  %1916 = vmatprep.subr.msk.bf16.mxu1 %vm682_vm0, %v2406_v53 }
  0xf5   : > { %704 = vmatpush1.bf16.msra.mxu0 %v2417_v59  ;;  %761 = vmatpush1.bf16.msra.mxu1 %v2414_v58  ;;  %v1211_v46 = vsel %vm1199_vm3, %v1206_v44, %v1210_v45  ;;  %v2202_v44 = vld [vmem:[%s2745_s7 + $0xb0] sm:$0xff]   ;;  %v2203_v45 = vld [vmem:[%s2746_s8 + $0xa8] sm:$0xff]  }
  0xf6   : > { %896 = vmatprep.subr.bf16.mxu0 %v2223_v2  ;;  %994 = vmatprep.subr.bf16.mxu1 %v2223_v2 }
  0xf8   : > { %1914 = vmatmul.mubr.msk.bf16.vlgmr.msra.gmra.mxu0 %vm678_vm1, %v2149_v57  ;;  %1917 = vmatmul.mubr.msk.bf16.vlgmr.msra.gmra.mxu1 %vm678_vm1, %v2150_v60 }
  0xf9   : > { %897 = vmatpush1.bf16.msra.mxu0 %v2151_v63  ;;  %995 = vmatpush1.bf16.msra.mxu1 %v2152_v0 }
  0xfa   : > { %898 = vmatprep.subr.bf16.mxu0 %v2223_v2  ;;  %996 = vmatprep.subr.bf16.mxu1 %v2223_v2 }
  0xfb   : > { %1929 = vmatprep.mubr.msk.bf16.mxu0 %vm892_vm2, %v2444_v1  ;;  %v2184_v1 = vld [vmem:[%s2745_s7 + $0x80] sm:$0xff]  }
  0xfd   : > { %899 = vmatpush1.bf16.msra.mxu0 %v2153_v3  ;;  %997 = vmatpush1.bf16.msra.mxu1 %v2154_v4  ;;  %v2185_v3 = vld [vmem:[%s2745_s7 + $0x78] sm:$0xff]   ;;  %v2186_v4 = vld [vmem:[%s2745_s7 + $0x70] sm:$0xff]  }
  0xfe   : > { %900 = vmatprep.subr.bf16.mxu0 %v2223_v2  ;;  %998 = vmatprep.subr.bf16.mxu1 %v2223_v2 }
 0x101   : > { %901 = vmatpush1.bf16.msra.mxu0 %v2155_v5  ;;  %999 = vmatpush1.bf16.msra.mxu1 %v2156_v6  ;;  %v2187_v5 = vld [vmem:[%s2745_s7 + $0x68] sm:$0xff]   ;;  %v2188_v6 = vld [vmem:[%s2745_s7 + $0x60] sm:$0xff]  }
 0x102   : > { %902 = vmatprep.subr.bf16.mxu0 %v2223_v2  ;;  %1000 = vmatprep.subr.bf16.mxu1 %v2223_v2 }
 0x105   : > { %903 = vmatpush1.bf16.msra.mxu0 %v2157_v7  ;;  %1001 = vmatpush1.bf16.msra.mxu1 %v2158_v8  ;;  %v2189_v8 = vld [vmem:[%s2745_s7 + $0x58] sm:$0xff]  }
 0x106   : > { %904 = vmatprep.subr.bf16.mxu0 %v2223_v2  ;;  %1002 = vmatprep.subr.bf16.mxu1 %v2223_v2 }
 0x109   : > { %905 = vmatpush1.bf16.msra.mxu0 %v2159_v9  ;;  %1003 = vmatpush1.bf16.msra.mxu1 %v2160_v10  ;;  %v2190_v10 = vld [vmem:[%s2745_s7 + $0x50] sm:$0xff]  }
 0x10a   : > { %906 = vmatprep.subr.bf16.mxu0 %v2223_v2  ;;  %1004 = vmatprep.subr.bf16.mxu1 %v2223_v2 }
 0x10d   : > { %907 = vmatpush1.bf16.msra.mxu0 %v2161_v11  ;;  %1005 = vmatpush1.bf16.msra.mxu1 %v2162_v12  ;;  %v2191_v11 = vld [vmem:[%s2745_s7 + $0x48] sm:$0xff]  }
 0x10e   : > { %908 = vmatprep.subr.bf16.mxu0 %v2223_v2  ;;  %1006 = vmatprep.subr.bf16.mxu1 %v2223_v2  ;;  %v2192_v12 = vld [vmem:[%s2745_s7 + $0x88] sm:$0xff]  }
 0x111   : > { %909 = vmatpush1.bf16.msra.mxu0 %v2163_v13  ;;  %1007 = vmatpush1.bf16.msra.mxu1 %v2164_v14 }
 0x112   : > { %910 = vmatprep.subr.bf16.mxu0 %v2223_v2  ;;  %1008 = vmatprep.subr.bf16.mxu1 %v2223_v2 }
 0x115   : > { %911 = vmatpush1.bf16.msra.mxu0 %v2165_v15  ;;  %1009 = vmatpush1.bf16.msra.mxu1 %v2166_v16  ;;  %v2193_v15 = vld [vmem:[%s2743_s5 + $0x10] sm:$0xff]  }
 0x116   : > { %926 = vmatprep.subr.bf16.mxu0 %v2223_v2  ;;  %1024 = vmatprep.subr.bf16.mxu1 %v2223_v2 }
 0x119   : > { %927 = vmatpush2.bf16.msra.mxu0 %v2167_v18  ;;  %1025 = vmatpush2.bf16.msra.mxu1 %v2168_v19  ;;  %v2197_v18 = vld [vmem:[%s2746_s8 + $0xc0] sm:$0xff]   ;;  %v2199_v19 = vld [vmem:[%s2746_s8 + $0xb8] sm:$0xff]  }
 0x11a   : > { %1945 = vmatprep.subr.msk.bf16.mxu0 %vm682_vm0, %v2408_v54  ;;  %1948 = vmatprep.subr.msk.bf16.mxu1 %vm682_vm0, %v2406_v53 }
 0x11c   : > { %929 = vmatmul.mubr.bf16.vlgmr.msra.gmra.mxu0 %v1918_v22  ;;  %v2201_v22 = vld [vmem:[%s2746_s8 + $0xb0] sm:$0xff]  }
 0x11d   : > { %1064 = vmatpush1.bf16.msra.mxu0 %v2417_v59  ;;  %1081 = vmatprep.mubr.bf16.mxu0 %v2223_v2 }
 0x11e   : > { %1282 = vmatprep.subr.bf16.mxu0 %v2223_v2 }
 0x124   : > { %1946 = vmatmul.mubr.msk.bf16.vlgmr.msra.gmra.mxu0 %vm678_vm1, %v2171_v28 }
 0x125   : > { %1283 = vmatpush1.bf16.msra.mxu0 %v2172_v29  ;;  %1999 = vmatprep.mubr.msk.bf16.mxu0 %vm892_vm2, %v1223_v30 }
 0x126   : > { %1284 = vmatprep.subr.bf16.mxu0 %v2223_v2 }
 0x129   : > { %1285 = vmatpush1.bf16.msra.mxu0 %v2173_v31 }
 0x12a   : > { %1286 = vmatprep.subr.bf16.mxu0 %v2223_v2 }
 0x12d   : > { %1287 = vmatpush1.bf16.msra.mxu0 %v2174_v32 }
 0x12e   : > { %1288 = vmatprep.subr.bf16.mxu0 %v2223_v2 }
 0x131   : > { %1289 = vmatpush1.bf16.msra.mxu0 %v2175_v33 }
 0x132   : > { %1290 = vmatprep.subr.bf16.mxu0 %v2223_v2 }
 0x135   : > { %1291 = vmatpush1.bf16.msra.mxu0 %v2176_v34 }
 0x136   : > { %1292 = vmatprep.subr.bf16.mxu0 %v2223_v2 }
 0x139   : > { %1293 = vmatpush1.bf16.msra.mxu0 %v2177_v35 }
 0x13a   : > { %1294 = vmatprep.subr.bf16.mxu0 %v2223_v2 }
 0x13d   : > { %1295 = vmatpush1.bf16.msra.mxu0 %v2178_v36 }
 0x13e   : > { %1296 = vmatprep.subr.bf16.mxu0 %v2223_v2 }
 0x141   : > { %1297 = vmatpush1.bf16.msra.mxu0 %v2179_v39 }
 0x142   : > { %1312 = vmatprep.subr.bf16.mxu0 %v2223_v2 }
 0x145   : > { %1313 = vmatpush2.bf16.msra.mxu0 %v2180_v43  ;;  %v2198_v43 = vld [vmem:[%s2745_s7 + $0xc0] sm:$0xff]  }
 0x146   : > { %2015 = vmatprep.subr.msk.bf16.mxu0 %vm682_vm0, %v2408_v54 }
 0x148   : > { %1315 = vmatmul.mubr.bf16.vlgmr.msra.gmra.mxu0 %v1211_v46  ;;  %v2205_v46 = vld [vmem:[%s2746_s8 + $0xa0] sm:$0xff]  }
 0x149   : > { %1452 = vmatpush1.bf16.msra.mxu0 %v2417_v59  ;;  %1469 = vmatprep.mubr.bf16.mxu0 %v2223_v2  ;;  %v2183_v59 = vld [vmem:[%s2742_s4 + $0x8] sm:$0xff]  }
 0x14a   : > { %1642 = vmatprep.subr.bf16.mxu0 %v2223_v2 }
 0x150   : > { %2016 = vmatmul.mubr.msk.bf16.vlgmr.msra.gmra.mxu0 %vm678_vm1, %v2193_v15 }
 0x151   : > { %1643 = vmatpush1.bf16.msra.mxu0 %v2195_v17 }
 0x152   : > { %1644 = vmatprep.subr.bf16.mxu0 %v2223_v2 }
 0x155   : > { %1645 = vmatpush1.bf16.msra.mxu0 %v2197_v18 }
 0x156   : > { %1646 = vmatprep.subr.bf16.mxu0 %v2223_v2 }
 0x159   : > { %1647 = vmatpush1.bf16.msra.mxu0 %v2199_v19 }
 0x15a   : > { %1648 = vmatprep.subr.bf16.mxu0 %v2223_v2 }
 0x15d   : > { %1649 = vmatpush1.bf16.msra.mxu0 %v2201_v22 }
 0x15e   : > { %1650 = vmatprep.subr.bf16.mxu0 %v2223_v2 }
 0x161   : > { %1651 = vmatpush1.bf16.msra.mxu0 %v2203_v45 }
 0x162   : > { %1652 = vmatprep.subr.bf16.mxu0 %v2223_v2 }
 0x165   : > { %1653 = vmatpush1.bf16.msra.mxu0 %v2205_v46 }
 0x166   : > { %1654 = vmatprep.subr.bf16.mxu0 %v2223_v2 }
 0x1b8   : > { %v723_v47 = vpop.f32.mrf.mxu0  ;;  %v780_v48 = vpop.f32.mrf.mxu1 }
 0x1b9   : > { %v781_v63 = vadd.f32 %v780_v48, %v723_v47  ;;  %v2204_v48 = vld [vmem:[%s2745_s7 + $0xa8] sm:$0xff]  }
 0x1ba   : > { %v725_v49 = vpop.f32.mrf.mxu0  ;;  %v782_v50 = vpop.f32.mrf.mxu1 }
 0x1bb   : > { %v783_v60 = vadd.f32 %v782_v50, %v725_v49  ;;  %v2207_v50 = vld [vmem:[%s2746_s8 + $0x98] sm:$0xff]  }
 0x1bc   : > { %v727_v51 = vpop.f32.mrf.mxu0  ;;  %v784_v52 = vpop.f32.mrf.mxu1  ;;  %1655 = vmatpush1.bf16.msra.mxu0 %v2207_v50 }
 0x1bd   : > { %v785_v55 = vadd.f32 %v784_v52, %v727_v51  ;;  %v2206_v51 = vld [vmem:[%s2745_s7 + $0xa0] sm:$0xff]   ;;  %1656 = vmatprep.subr.bf16.mxu0 %v2223_v2  ;;  %v2209_v52 = vld [vmem:[%s2746_s8 + $0x90] sm:$0xff]  }
 0x1be   : > { %v729_v56 = vpop.f32.mrf.mxu0  ;;  %v786_v57 = vpop.f32.mrf.mxu1 }
 0x1bf   : > { %v787_v61 = vadd.f32 %v786_v57, %v729_v56  ;;  %v789_v0 = vpack.c.bf16 %v785_v55, %v781_v63  ;;  %v2208_v55 = vld [vmem:[%s2745_s7 + $0x98] sm:$0xff]   ;;  %v1552_v56 = vld [vmem:[%s2404_s16] sm:$0xee] }
 0x1c0   : > { %1657 = vmatpush1.bf16.msra.mxu0 %v2209_v52  ;;  %v2057_v57 = vcombine.high %v1552_v56, %v2430_v62 }
 0x1c1   : > { %v790_v54 = vpack.c.bf16 %v787_v61, %v783_v60  ;;  %1672 = vmatprep.subr.bf16.mxu0 %v2223_v2  ;;  %v2211_v60 = vld [vmem:[%s2746_s8 + $0xd0] sm:$0xff]   ;;  %v2056_v61 = vcombine.low %v1552_v56, %v2430_v62 }
 0x1c2   : > { %v1581_v63 = vrot.slane %v2057_v57, 1  ;;  %v2212_v62 = vld [vmem:[%s2745_s7 + $0xd0] sm:$0xff]  }
 0x1c3   : > { %1939 = vmatprep.mubr.msk.bf16.mxu1 %vm892_vm2, %v790_v54  ;;  %v1582_v54 = vrot.slane %v2515_v20, 1 }
 0x1c4   : > { %1027 = vmatmul.mubr.bf16.vlgmr.msra.gmra.mxu1 %v789_v0  ;;  %v2210_v0 = vld [vmem:[%s2745_s7 + $0x90] sm:$0xff]   ;;  %1673 = vmatpush2.bf16.msra.mxu0 %v2211_v60 }
 0x1c5   : > { %1115 = vmatpush1.bf16.msra.mxu1 %v2414_v58  ;;  %1132 = vmatprep.mubr.bf16.mxu1 %v2223_v2 }
 0x1c6   : > { %1380 = vmatprep.subr.bf16.mxu1 %v2223_v2 }
 0x1cc   : > { %1949 = vmatmul.mubr.msk.bf16.vlgmr.msra.gmra.mxu1 %vm678_vm1, %v2183_v59  ;;  %v1578_v59 = vrot.slane %v2056_v61, 1 }
 0x1cd   : > { %1381 = vmatpush1.bf16.msra.mxu1 %v2184_v1  ;;  %v1579_v1 = vrot.slane %v2561_v37, 1 }
 0x1ce   : > { %1382 = vmatprep.subr.bf16.mxu1 %v2223_v2 }
 0x1d1   : > { %1383 = vmatpush1.bf16.msra.mxu1 %v2185_v3  ;;  %v1583_v3 = vsel %vm1577_vm4, %v1581_v63, %v1582_v54 }
 0x1d2   : > { %1384 = vmatprep.subr.bf16.mxu1 %v2223_v2  ;;  %2067 = vmatprep.mubr.msk.bf16.mxu0 %vm892_vm2, %v1583_v3 }
 0x1d5   : > { %1385 = vmatpush1.bf16.msra.mxu1 %v2186_v4  ;;  %v1580_v4 = vsel %vm1577_vm4, %v1578_v59, %v1579_v1 }
 0x1d6   : > { %1386 = vmatprep.subr.bf16.mxu1 %v2223_v2  ;;  %1675 = vmatmul.mubr.bf16.vlgmr.msra.gmra.mxu0 %v1580_v4 }
 0x1d9   : > { %1387 = vmatpush1.bf16.msra.mxu1 %v2187_v5 }
 0x1da   : > { %1388 = vmatprep.subr.bf16.mxu1 %v2223_v2 }
 0x1dc   : > { %v2606_v7 = vpop.f32.mrf.mxu0 }
 0x1dd   : > { %1389 = vmatpush1.bf16.msra.mxu1 %v2188_v6 }
 0x1de   : > { %1390 = vmatprep.subr.bf16.mxu1 %v2223_v2  ;;  %v932_v9 = vpop.f32.mrf.mxu0 }
 0x1e0   : > { %v2626_v13 = vpop.f32.mrf.mxu0 }
 0x1e1   : > { %1391 = vmatpush1.bf16.msra.mxu1 %v2189_v8 }
 0x1e2   : > { %1392 = vmatprep.subr.bf16.mxu1 %v2223_v2  ;;  %v935_v14 = vpop.f32.mrf.mxu0 }
 0x1e4   : > { %v1083_v16 = vpop.f32.mrf.mxu0 }
 0x1e5   : > { %1393 = vmatpush1.bf16.msra.mxu1 %v2190_v10 }
 0x1e6   : > { %1394 = vmatprep.subr.bf16.mxu1 %v2223_v2 }
 0x1e9   : > { %1395 = vmatpush1.bf16.msra.mxu1 %v2191_v11 }
 0x1ea   : > { %1410 = vmatprep.subr.bf16.mxu1 %v2223_v2 }
 0x1ed   : > { %1411 = vmatpush2.bf16.msra.mxu1 %v2192_v12 }
 0x1ee   : > { %2018 = vmatprep.subr.msk.bf16.mxu1 %vm682_vm0, %v2406_v53  ;;  %v1085_v53 = vpop.f32.mrf.mxu0 }
 0x1f0   : > { %v1087_v21 = vpop.f32.mrf.mxu0 }
 0x1f2   : > { %v1089_v23 = vpop.f32.mrf.mxu0 }
 0x208   : > { %v2647_v24 = vpop.f32.mrf.mxu0 }
 0x20a   : > { %v1318_v25 = vpop.f32.mrf.mxu0 }
 0x20c   : > { %v1319_v47 = vpop.f32.mrf.mxu0 }
 0x20e   : > { %v1321_v49 = vpop.f32.mrf.mxu0 }
 0x210   : > { %v1471_v8 = vpop.f32.mrf.mxu0 }
 0x212   : > { %v1473_v14 = vpop.f32.mrf.mxu0 }
 0x214   : > { %v1475_v18 = vpop.f32.mrf.mxu0 }
 0x284   : > { %v2650_v26 = vpop.f32.mrf.mxu1 }
 0x285   : > { %v1029_v5 = vadd.f32 %v2650_v26, %v2606_v7 }
 0x286   : > { %v1030_v27 = vpop.f32.mrf.mxu1 }
 0x288   : > { %v2652_v28 = vpop.f32.mrf.mxu1 }
 0x289   : > { %v1032_v11 = vadd.f32 %v2652_v28, %v2626_v13 }
 0x28a   : > { %v1033_v29 = vpop.f32.mrf.mxu1 }
 0x28c   : > { %v1134_v30 = vpop.f32.mrf.mxu1 }
 0x28d   : > { %v1135_v38 = vadd.f32 %v1134_v30, %v1083_v16 }
 0x28e   : > { %v1136_v31 = vpop.f32.mrf.mxu1 }
 0x28f   : > { %v1137_v35 = vadd.f32 %v1136_v31, %v1085_v53 }
 0x290   : > { %v1138_v32 = vpop.f32.mrf.mxu1 }
 0x291   : > { %v1139_v33 = vadd.f32 %v1138_v32, %v1087_v21  ;;  %v1477_v21 = vpop.f32.mrf.mxu0 }
 0x292   : > { %v1140_v34 = vpop.f32.mrf.mxu1 }
 0x293   : > { %v1141_v36 = vadd.f32 %v1140_v34, %v1089_v23  ;;  %v1143_v40 = vpack.c.bf16 %v1139_v33, %v1135_v38  ;;  %v2078_v34 = vld [vmem:[%s2747_s9] ss:$0 sm:$0xff] }
 0x295   : > { %v1144_v39 = vpack.c.bf16 %v1141_v36, %v1137_v35 }
 0x296   : > { %v1676_v13 = vpop.f32.mrf.mxu0 }
 0x297   : > { %2009 = vmatprep.mubr.msk.bf16.mxu1 %vm892_vm2, %v1144_v39 }
 0x298   : > { %1413 = vmatmul.mubr.bf16.vlgmr.msra.gmra.mxu1 %v1143_v40  ;;  %v1678_v27 = vpop.f32.mrf.mxu0 }
 0x299   : > { %1503 = vmatpush1.bf16.msra.mxu1 %v2414_v58  ;;  %1520 = vmatprep.mubr.bf16.mxu1 %v2223_v2  ;;  %v2200_v58 = vld [vmem:[%s2745_s7 + $0xb8] sm:$0xff]  }
 0x29a   : > { %1740 = vmatprep.subr.bf16.mxu1 %v2223_v2  ;;  %v1679_v28 = vpop.f32.mrf.mxu0 }
 0x29c   : > { %v1681_v29 = vpop.f32.mrf.mxu0 }
 0x2a0   : > { %2019 = vmatmul.mubr.msk.bf16.vlgmr.msra.gmra.mxu1 %vm678_vm1, %v2194_v41 }
 0x2a1   : > { %1741 = vmatpush1.bf16.msra.mxu1 %v2196_v42 }
 0x2a2   : > { %1742 = vmatprep.subr.bf16.mxu1 %v2223_v2 }
 0x2a5   : > { %1743 = vmatpush1.bf16.msra.mxu1 %v2198_v43 }
 0x2a6   : > { %1744 = vmatprep.subr.bf16.mxu1 %v2223_v2 }
 0x2a9   : > { %1745 = vmatpush1.bf16.msra.mxu1 %v2200_v58 }
 0x2aa   : > { %1746 = vmatprep.subr.bf16.mxu1 %v2223_v2 }
 0x2ad   : > { %1747 = vmatpush1.bf16.msra.mxu1 %v2202_v44 }
 0x2ae   : > { %1748 = vmatprep.subr.bf16.mxu1 %v2223_v2 }
 0x2b1   : > { %1749 = vmatpush1.bf16.msra.mxu1 %v2204_v48 }
 0x2b2   : > { %1750 = vmatprep.subr.bf16.mxu1 %v2223_v2 }
 0x2b5   : > { %1751 = vmatpush1.bf16.msra.mxu1 %v2206_v51 }
 0x2b6   : > { %1752 = vmatprep.subr.bf16.mxu1 %v2223_v2 }
 0x2b9   : > { %1753 = vmatpush1.bf16.msra.mxu1 %v2208_v55 }
 0x2ba   : > { %1754 = vmatprep.subr.bf16.mxu1 %v2223_v2 }
 0x2bd   : > { %1755 = vmatpush1.bf16.msra.mxu1 %v2210_v0 }
 0x2be   : > { %1770 = vmatprep.subr.bf16.mxu1 %v2223_v2 }
 0x2c1   : > { %1771 = vmatpush2.bf16.msra.mxu1 %v2212_v62 }
 0x358   : > { %v1414_v20 = vpop.f32.mrf.mxu1 }
 0x359   : > { %v1415_v6 = vadd.f32 %v1414_v20, %v2647_v24 }
 0x35a   : > { %v1416_v37 = vpop.f32.mrf.mxu1 }
 0x35b   : > { %v1421_v9 = vadd.f32 %v1415_v6, %v1029_v5 }
 0x35c   : > { %v1417_v10 = vpop.f32.mrf.mxu1 }
 0x35d   : > { %v1418_v2 = vadd.f32 %v1417_v10, %v1319_v47 }
 0x35e   : > { %v1419_v12 = vpop.f32.mrf.mxu1 }
 0x35f   : > { %v1422_v15 = vadd.f32 %v1418_v2, %v1032_v11 }
 0x360   : > { %v1522_v16 = vpop.f32.mrf.mxu1 }
 0x361   : > { %v1523_v24 = vadd.f32 %v1522_v16, %v1471_v8 }
 0x362   : > { %v1524_v17 = vpop.f32.mrf.mxu1 }
 0x363   : > { %v1525_v22 = vadd.f32 %v1524_v17, %v1473_v14 }
 0x364   : > { %v1526_v53 = vpop.f32.mrf.mxu1 }
 0x365   : > { %v1527_v19 = vadd.f32 %v1526_v53, %v1475_v18 }
 0x366   : > { %v1528_v7 = vpop.f32.mrf.mxu1 }
 0x367   : > { %v1529_v23 = vadd.f32 %v1528_v7, %v1477_v21  ;;  %v1531_v26 = vpack.c.bf16 %v1527_v19, %v1523_v24 }
 0x369   : > { %v1532_v25 = vpack.c.bf16 %v1529_v23, %v1525_v22 }
 0x36b   : > { %2077 = vmatprep.mubr.msk.bf16.mxu1 %vm892_vm2, %v1532_v25 }
 0x36c   : > { %1773 = vmatmul.mubr.bf16.vlgmr.msra.gmra.mxu1 %v1531_v26 }
 0x42c   : > { %v1774_v30 = vpop.f32.mrf.mxu1 }
 0x42d   : > { %v1775_v31 = vadd.f32 %v1774_v30, %v1676_v13 }
 0x42e   : > { %v1776_v32 = vpop.f32.mrf.mxu1 }
 0x42f   : > { %v1781_v33 = vadd.f32 %v1775_v31, %v1421_v9 }
 0x430   : > { %v1777_v35 = vpop.f32.mrf.mxu1 }
 0x431   : > { %v1778_v36 = vadd.f32 %v1777_v35, %v1679_v28  ;;  %v1790_v39 = vadd.f32 %v2078_v34, %v1781_v33 }
 0x432   : > { %v1779_v38 = vpop.f32.mrf.mxu1 }
 0x433   : > { %v1782_v40 = vadd.f32 %v1778_v36, %v1422_v15  ;;  %v1792_v42 = vmax.f32 %v1790_v39, 0.0 }
 0x435   : > { %v1791_v41 = vadd.f32 %v2078_v34, %v1782_v40 }
 0x437   : > { %v1793_v43 = vmax.f32 %v1791_v41, 0.0 }
 0x439   : > { %v2089_v58 = vpack.c.bf16 %v1793_v43, %v1792_v42 }
 0x43b   : > { %2090 = vst [vmem:[%s376_s22] sm:$0xff] %v2089_v58  }
 0x43c PF: > { %s20_s13 = sadd.s32 1, %s2221_s13  }
 0x43d   : > { %p17_p4 = scmp.ge.s32.totalorder %s20_s13, 4  }
 0x43f   :  { %19 = sbr.rel (!%p17_p4) target bundleno = 1 (0x1), region = 101 }

</bundles_post_ra>
